<compile_context>
chip_gen: v6e
topology: v6e:2x2x1
jax: 0.10.0
libtpu: 0.0.40
codegen_flags: <defaults>
</compile_context>

<pallas_src>
import functools

import jax
import jax.numpy as jnp
from jax import lax
from jax.experimental import pallas as pl
from jax.experimental.pallas import tpu as pltpu

EPS = 1e-5
_K = 3          # every spatial conv in the module is 3x3x3 (convatt2 is 1x1x1)


# ---------------------------------------------------------------------------
# small helpers
# ---------------------------------------------------------------------------
def _round_up(x, m):
    return (x + m - 1) // m * m


def _fit_last(a, n):
    """Zero-pad or slice the last dim of `a` to length n."""
    cur = a.shape[-1]
    if cur == n:
        return a
    if cur > n:
        return a[..., :n]
    return jnp.pad(a, [(0, 0)] * (a.ndim - 1) + [(0, n - cur)])


def _fold_bn(w, b, g, be, mu, var):
    s = g / jnp.sqrt(var + EPS)
    return w * s[:, None, None, None, None], (b - mu) * s + be


def _wmat(w, b, dtype):
    """(Cout, Cin, Kd, Kh, Kw) + bias -> (Cout, K^3*Cin + 1), bias last column.
    Column order (kd, kh, kw, cin) matches the kernel's im2col fill order."""
    cout = w.shape[0]
    m = jnp.transpose(w, (0, 2, 3, 4, 1)).reshape(cout, -1)
    return jnp.concatenate([m, b.reshape(cout, 1)], axis=1).astype(dtype)


# ---------------------------------------------------------------------------
# Kernel A: VALID 3^3 conv (+folded BN bias + optional ReLU), grid=(N,).
# One im2col matmul per output depth slice.
# ---------------------------------------------------------------------------
def _conv_kernel(x_ref, w_ref, o_ref, scratch, *, groups, Cin, Do, Lacc, relu):
    ntaps = sum(len(offs) for _, offs in groups)
    # Constant ones row folds the bias into the matmul; never overwritten.
    scratch[ntaps * Cin:ntaps * Cin + 1, :] = jnp.ones(
        (1, scratch.shape[1]), scratch.dtype)

    def body(do, carry):
        r = 0
        for dd, offs in groups:
            plane = x_ref[do + dd]                       # (Cin, L_in)
            for off in offs:
                scratch[r:r + Cin, :Lacc] = plane[:, off:off + Lacc]
                r += Cin
        y = jnp.dot(w_ref[...], scratch[...],
                    preferred_element_type=jnp.float32)  # (Cout, Lpad)
        if relu:
            y = jnp.maximum(y, 0.0)
        o_ref[do] = y.astype(o_ref.dtype)
        return carry

    lax.fori_loop(0, Do, body, 0)


def conv3d_valid(x_t, wmat, H, W, *, dil, relu, out_dtype):
    """x_t: (N, D, Cin, H*W) ; wmat: (Cout, K^3*Cin + 1) with bias last column.
    Returns ((N, Do, Cout, Lpad), (Do, Ho, Wo, Lkeep)) where valid columns are
    [0, Lkeep) with output (ho, wo) stored at column ho*W + wo."""
    N, D, Cin, L = x_t.shape
    Cout, nrows = wmat.shape
    assert nrows == _K ** 3 * Cin + 1
    Do = D - dil * (_K - 1)
    Ho = H - dil * (_K - 1)
    Wo = W - dil * (_K - 1)
    Lkeep = (Ho - 1) * W + Wo
    Lpad = _round_up(Lkeep, 128)
    groups = tuple(
        (kd * dil,
         tuple(kh * dil * W + kw * dil for kh in range(_K) for kw in range(_K)))
        for kd in range(_K))
    assert max(o for _, offs in groups for o in offs) + Lkeep <= L

    kernel = functools.partial(_conv_kernel, groups=groups, Cin=Cin, Do=Do,
                               Lacc=Lkeep, relu=relu)
    out = pl.pallas_call(
        kernel,
        out_shape=jax.ShapeDtypeStruct((N, Do, Cout, Lpad), out_dtype),
        grid=(N,),
        in_specs=[
            pl.BlockSpec((None, D, Cin, L), lambda n: (n, 0, 0, 0)),
            pl.BlockSpec((Cout, nrows), lambda n: (0, 0)),
        ],
        out_specs=pl.BlockSpec((None, Do, Cout, Lpad), lambda n: (n, 0, 0, 0)),
        scratch_shapes=[pltpu.VMEM((nrows, Lpad), x_t.dtype)],
        compiler_params=pltpu.CompilerParams(
            dimension_semantics=("parallel",),
            vmem_limit_bytes=32 * 1024 * 1024),
    )(x_t, wmat)
    return out, (Do, Ho, Wo, Lkeep)


# ---------------------------------------------------------------------------
# Kernel B: fully fused autofocus body, grid=(N,).
#   per output depth slice:
#     attention (convatt1 im2col matmul + ReLU + convatt2 1x1 + softmax)
#     -> residual (+ optional 1x1 downsample) + per-branch BN bias via TB@att
#     -> num_branches dilated conv2 branches, one im2col matmul each,
#        attention-weighted accumulation, ReLU, lane-dense store.
# ---------------------------------------------------------------------------
def _fused_kernel(*args, C1, D2, Lacc, att_groups, branch_groups, branch_cols,
                  has_downsample):
    if has_downsample:
        (xp_ref, res_ref, wbr_ref, tb_ref, wa1_ref, wa2_ref, ba2_ref,
         wds_ref, bds_ref, o_ref, scratch) = args
    else:
        (xp_ref, res_ref, wbr_ref, tb_ref, wa1_ref, wa2_ref, ba2_ref,
         o_ref, scratch) = args
        wds_ref = bds_ref = None

    Ka = sum(len(offs) for _, offs in att_groups) * C1
    # Ones row folds the convatt1 bias into its matmul; branch fills only ever
    # write rows < Ka, so it survives the whole grid step.
    scratch[Ka:Ka + 1, :] = jnp.ones((1, scratch.shape[1]), scratch.dtype)

    def body(do, carry):
        # ---- attention head on the cropped window -------------------------
        r = 0
        for dd, offs in att_groups:
            plane = xp_ref[do + dd]                      # (C1, Lp)
            for off in offs:
                scratch[r:r + C1, :Lacc] = plane[:, off:off + Lacc]
                r += C1
        a1 = jnp.dot(wa1_ref[...], scratch[...],
                     preferred_element_type=jnp.float32)
        a1 = jnp.maximum(a1, 0.0)
        z = jnp.dot(wa2_ref[...], a1,
                    preferred_element_type=jnp.float32) + ba2_ref[...]
        z = z - jnp.max(z, axis=0, keepdims=True)
        e = jnp.exp(z)
        att = e * pl.reciprocal(jnp.sum(e, axis=0, keepdims=True), approx=True)

        # ---- residual path + all per-branch folded-BN biases in one matmul -
        out = jnp.dot(tb_ref[...], att, preferred_element_type=jnp.float32)
        if has_downsample:
            out = out + jnp.dot(wds_ref[...], res_ref[do],
                                preferred_element_type=jnp.float32)
            out = out + bds_ref[...]
        else:
            out = out + res_ref[do].astype(jnp.float32)

        # ---- the dilated conv2 branches (shared weights, folded BN) --------
        for i, groups in enumerate(branch_groups):
            r = 0
            for dd, lo, hi, offs in groups:
                nrows = len(offs) * C1
                if lo == 0 and hi == D2:
                    plane = xp_ref[do + dd]
                    for j, off in enumerate(offs):
                        scratch[r + j * C1:r + (j + 1) * C1, :Lacc] = \
                            plane[:, off:off + Lacc]
                else:
                    valid = jnp.logical_and(do >= lo, do < hi)

                    @pl.when(valid)
                    def _copy(r=r, dd=dd, offs=offs):
                        plane = xp_ref[do + dd]
                        for j, off in enumerate(offs):
                            scratch[r + j * C1:r + (j + 1) * C1, :Lacc] = \
                                plane[:, off:off + Lacc]

                    @pl.when(jnp.logical_not(valid))
                    def _zero(r=r, nrows=nrows):
                        scratch[r:r + nrows, :Lacc] = jnp.zeros(
                            (nrows, Lacc), scratch.dtype)
                r += nrows
            c_lo, c_hi = branch_cols[i]
            acc = jnp.dot(wbr_ref[:, c_lo:c_hi], scratch[0:c_hi - c_lo, :],
                          preferred_element_type=jnp.float32)
            out = out + acc * att[i:i + 1, :]

        o_ref[do] = jnp.maximum(out, 0.0).astype(o_ref.dtype)
        return carry

    lax.fori_loop(0, D2, body, 0)


# ---------------------------------------------------------------------------
# Static tap planning for the branches.
# ---------------------------------------------------------------------------
def _plan_branches(pads, dils, D1, H1, W1, D2, H2, W2):
    """Per branch: groups of retained taps, grouped by depth offset.
    Taps that never touch real input are dropped entirely; depth-partial taps
    carry a [lo, hi) do-range; H/W-partial taps rely on the zero-padded plane.
    Also returns the H/W padding P actually required by the retained taps."""
    P = 0
    raw = []
    for p, d in zip(pads, dils):
        groups = []
        for kd in range(_K):
            dd = kd * d - p
            lo, hi = max(0, -dd), min(D2, D1 - dd)
            if hi <= lo:
                continue
            items = []
            for kh in range(_K):
                rh = kh * d - p
                if rh + H2 <= 0 or rh >= H1:
                    continue
                for kw in range(_K):
                    rw = kw * d - p
                    if rw + W2 <= 0 or rw >= W1:
                        continue
                    items.append((rh, rw, (kd * _K + kh) * _K + kw))
                    P = max(P, -rh, rh + H2 - H1, -rw, rw + W2 - W1)
            if items:
                groups.append((dd, lo, hi, items))
        raw.append(groups)
    return raw, P


# ---------------------------------------------------------------------------
# Forward pass (2 pallas_calls total).
# ---------------------------------------------------------------------------
def autofocus_forward(params, x, *, padding_list, dilation_list, num_branches):
    f32, bf16 = jnp.float32, jnp.bfloat16
    N, Cin, D, H, W = x.shape
    pads = list(padding_list)[:num_branches]
    dils = list(dilation_list)[:num_branches]
    assert len(pads) == len(dils) == num_branches

    # -------- conv1 (dilation 2) + bn1 + ReLU : pallas_call #1 --------------
    w1, b1 = _fold_bn(*params['conv1'], *params['bn1'])
    C1 = w1.shape[0]
    x_t = jnp.transpose(x, (0, 2, 1, 3, 4)).reshape(N, D, Cin, H * W)
    x1, (D1, H1, W1, Lk1) = conv3d_valid(
        x_t.astype(bf16), _wmat(w1, b1, bf16), H, W, dil=2, relu=True,
        out_dtype=bf16)

    # branch / attention output geometry
    d0 = dils[0]
    D2, H2, W2 = D1 - d0 * (_K - 1), H1 - d0 * (_K - 1), W1 - d0 * (_K - 1)
    for p, d in zip(pads, dils):
        assert D1 + 2 * p - d * (_K - 1) == D2, "branch output depths differ"
        assert H1 + 2 * p - d * (_K - 1) == H2
        assert W1 + 2 * p - d * (_K - 1) == W2
    # the attention crop [1:-1] only lines up when branch-0 shrinks by 4
    assert (D2, H2, W2) == (D1 - 4, H1 - 4, W1 - 4)

    raw, P = _plan_branches(pads, dils, D1, H1, W1, D2, H2, W2)
    Hp, Wp = H1 + 2 * P, W1 + 2 * P
    Lp = Hp * Wp
    Lacc = (H2 - 1) * Wp + W2
    Lpad = _round_up(Lacc, 128)

    branch_groups, branch_ids, branch_cols = [], [], []
    col = 0
    for groups in raw:
        bg, ids = [], []
        for dd, lo, hi, items in groups:
            offs = []
            for rh, rw, tid in items:
                off = (P + rh) * Wp + (P + rw)
                assert 0 <= off and off + Lacc <= Lp, "tap reads past padded plane"
                offs.append(off)
                ids.append(tid)
            bg.append((dd, lo, hi, tuple(offs)))
        branch_groups.append(tuple(bg))
        branch_ids.append(ids)
        branch_cols.append((col, col + len(ids) * C1))
        col += len(ids) * C1

    # attention (convatt1, dil=1) taps, already shifted for the [1:-1] crop
    att_groups = tuple(
        (kd + 1,
         tuple((P + 1 + kh) * Wp + (P + 1 + kw)
               for kh in range(_K) for kw in range(_K)))
        for kd in range(_K))

    # -------- x1 -> compact -> H/W zero-padded plane buffer (bf16) ----------
    x1 = _fit_last(x1[..., :Lk1], H1 * W)
    x1 = x1.reshape(N, D1, C1, H1, W)[..., :W1]
    xp = jnp.pad(x1, ((0, 0), (0, 0), (0, 0), (P, P), (P, P)))
    xp = xp.reshape(N, D1, C1, Lp)

    # -------- residual, pre-laid-out in kernel-B lane coordinates -----------
    res = jnp.transpose(x[:, :, 4:-4, 4:-4, 4:-4], (0, 2, 1, 3, 4))
    res = jnp.pad(res, ((0, 0),) * 4 + ((0, Wp - W2),))
    res = _fit_last(res.reshape(N, D2, Cin, H2 * Wp), Lpad)

    # -------- fold BN into conv2 / downsample, build weight matrices --------
    w2, b2 = params['conv2']
    C2 = w2.shape[0]
    wbr_list, tb_list = [], []
    for i in range(num_branches):
        g, be, mu, var = params['bn2_list'][i]
        s = g / jnp.sqrt(var + EPS)
        w2i = jnp.transpose(w2 * s[:, None, None, None, None],
                            (0, 2, 3, 4, 1)).reshape(C2, _K ** 3, C1)
        ids = jnp.asarray(branch_ids[i], dtype=jnp.int32)
        wbr_list.append(w2i[:, ids, :].reshape(C2, len(branch_ids[i]) * C1))
        bias_in = b2 if i == 0 else jnp.zeros_like(b2)   # only branch 0 has bias
        tb_list.append((bias_in - mu) * s + be)
    wbr = jnp.concatenate(wbr_list, axis=1).astype(bf16)
    tb = jnp.stack(tb_list, axis=1).astype(f32)          # (C2, nb)

    wa1, ba1 = params['convatt1']
    wa1m = _wmat(wa1, ba1, bf16)                         # (natt, 27*C1+1)
    wa2, ba2 = params['convatt2']
    nb = wa2.shape[0]
    wa2m = wa2.reshape(nb, wa1.shape[0]).astype(f32)
    ba2v = ba2.reshape(nb, 1).astype(f32)

    has_ds = params.get('downsample') is not None
    inputs = [xp, res, wbr, tb, wa1m, wa2m, ba2v]
    in_specs = [
        pl.BlockSpec((None, D1, C1, Lp), lambda n: (n, 0, 0, 0)),
        pl.BlockSpec((None, D2, Cin, Lpad), lambda n: (n, 0, 0, 0)),
        pl.BlockSpec(wbr.shape, lambda n: (0, 0)),
        pl.BlockSpec(tb.shape, lambda n: (0, 0)),
        pl.BlockSpec(wa1m.shape, lambda n: (0, 0)),
        pl.BlockSpec(wa2m.shape, lambda n: (0, 0)),
        pl.BlockSpec(ba2v.shape, lambda n: (0, 0)),
    ]
    if has_ds:
        wd, bd, (gd, bed, mud, vard) = params['downsample']
        sd = gd / jnp.sqrt(vard + EPS)
        wds = (wd.reshape(C2, Cin) * sd[:, None]).astype(f32)
        bds = ((bd - mud) * sd + bed).reshape(C2, 1).astype(f32)
        inputs += [wds, bds]
        in_specs += [pl.BlockSpec(wds.shape, lambda n: (0, 0)),
                     pl.BlockSpec(bds.shape, lambda n: (0, 0))]
    else:
        assert Cin == C2, "identity residual requires inplanes1 == outplanes2"

    nrows = _K ** 3 * C1 + 1                             # 27*C1 taps + ones row
    kernel = functools.partial(
        _fused_kernel, C1=C1, D2=D2, Lacc=Lacc,
        att_groups=att_groups, branch_groups=tuple(branch_groups),
        branch_cols=tuple(branch_cols), has_downsample=has_ds)

    out = pl.pallas_call(
        kernel,
        out_shape=jax.ShapeDtypeStruct((N, D2, C2, Lpad), x.dtype),
        grid=(N,),
        in_specs=in_specs,
        out_specs=pl.BlockSpec((None, D2, C2, Lpad), lambda n: (n, 0, 0, 0)),
        scratch_shapes=[pltpu.VMEM((nrows, Lpad), bf16)],
        compiler_params=pltpu.CompilerParams(
            dimension_semantics=("parallel",),
            vmem_limit_bytes=32 * 1024 * 1024),
    )(*inputs)

    # -------- compact row stride Wp -> W2 and emit NCDHW --------------------
    out = _fit_last(out[..., :Lacc], H2 * Wp)
    out = out.reshape(N, D2, C2, H2, Wp)[..., :W2]
    return jnp.transpose(out, (0, 2, 1, 3, 4))


# ---------------------------------------------------------------------------
# Parameter init (mirrors the module __init__: conv weights N(0, 0.01),
# BatchNorm gamma=1 / beta=0, running stats at defaults).
# ---------------------------------------------------------------------------
def _conv_init(key, cout, cin, k):
    kw_, kb_ = jax.random.split(key)
    w = 0.01 * jax.random.normal(kw_, (cout, cin, k, k, k), jnp.float32)
    bound = 1.0 / float(cin * k ** 3) ** 0.5
    b = jax.random.uniform(kb_, (cout,), jnp.float32, -bound, bound)
    return w, b


def _bn_init(c):
    return (jnp.ones((c,), jnp.float32), jnp.zeros((c,), jnp.float32),
            jnp.zeros((c,), jnp.float32), jnp.ones((c,), jnp.float32))


def init_params(key, inplanes1, outplanes1, outplanes2, num_branches, kernel=3):
    ks = jax.random.split(key, 5)
    p = {
        'conv1': _conv_init(ks[0], outplanes1, inplanes1, kernel),
        'bn1': _bn_init(outplanes1),
        'conv2': _conv_init(ks[1], outplanes2, outplanes1, kernel),
        'bn2_list': [_bn_init(outplanes2) for _ in range(num_branches)],
        'convatt1': _conv_init(ks[2], outplanes1 // 2, outplanes1, kernel),
        'convatt2': _conv_init(ks[3], num_branches, outplanes1 // 2, 1),
        'downsample': None,
    }
    if inplanes1 != outplanes2:
        wd, bd = _conv_init(ks[4], outplanes2, inplanes1, 1)
        p['downsample'] = (wd, bd, _bn_init(outplanes2))
    return p


# ---------------------------------------------------------------------------
# Pure-JAX (XLA) reference for correctness checking.
# ---------------------------------------------------------------------------
def _ref_conv(x, w, b=None, pad=0, dil=1):
    out = lax.conv_general_dilated(
        x, w, window_strides=(1, 1, 1), padding=[(pad, pad)] * 3,
        rhs_dilation=(dil, dil, dil),
        dimension_numbers=('NCDHW', 'OIDHW', 'NCDHW'))
    if b is not None:
        out = out + b[None, :, None, None, None]
    return out


def _ref_bn(x, g, be, mu, var):
    inv = (g / jnp.sqrt(var + EPS))[None, :, None, None, None]
    return (x - mu[None, :, None, None, None]) * inv \
        + be[None, :, None, None, None]


def ref_forward(p, x, *, padding_list, dilation_list, num_branches):
    residual = x[:, :, 4:-4, 4:-4, 4:-4]
    h = jax.nn.relu(_ref_bn(_ref_conv(x, *p['conv1'], dil=2), *p['bn1']))
    att = jax.nn.relu(_ref_conv(h, *p['convatt1']))
    att = jax.nn.softmax(_ref_conv(att, *p['convatt2']), axis=1)
    att = att[:, :, 1:-1, 1:-1, 1:-1]
    w2, b2 = p['conv2']
    x1 = _ref_bn(_ref_conv(h, w2, b2, dil=dilation_list[0]),
                 *p['bn2_list'][0]) * att[:, 0:1]
    for i in range(1, num_branches):
        x2 = _ref_conv(h, w2, None, pad=padding_list[i], dil=dilation_list[i])
        x1 = x1 + _ref_bn(x2, *p['bn2_list'][i]) * att[:, i:i + 1]
    if p['downsample'] is not None:
        wd, bd, bn = p['downsample']
        residual = _ref_bn(_ref_conv(residual, wd, bd), *bn)
    return jax.nn.relu(x1 + residual)


if __name__ == "__main__":
    inplanes1, outplanes1, outplanes2 = 4, 8, 16
    padding_list = (0, 4, 8, 12)
    dilation_list = (2, 6, 10, 14)
    num_branches = 4
    S = 19                                   # output spatial size = S - 8 = 11

    key = jax.random.PRNGKey(0)
    kx, kp = jax.random.split(key)
    x = jax.random.normal(kx, (2, inplanes1, S, S, S), jnp.float32)
    params = init_params(kp, inplanes1, outplanes1, outplanes2, num_branches)

    fwd = jax.jit(functools.partial(
        autofocus_forward, padding_list=padding_list,
        dilation_list=dilation_list, num_branches=num_branches))

    out = jax.block_until_ready(fwd(params, x))
    ref = jax.block_until_ready(ref_forward(
        params, x, padding_list=padding_list, dilation_list=dilation_list,
        num_branches=num_branches))

    assert out.shape == ref.shape == (2, outplanes2, S - 8, S - 8, S - 8), \
        (out.shape, ref.shape)
    max_err = float(jnp.max(jnp.abs(out - ref)))
    # bf16 matmul operands + approximate softmax reciprocal -> slightly looser
    # tolerance than a pure-f32 path.
    assert bool(jnp.allclose(out, ref, rtol=2e-2, atol=2e-3)), max_err
    print("KERNEL_OK")
</pallas_src>

<mosaic_0001>
module attributes {stable_mosaic.version = 11 : i64} {
  func.func @_conv_kernel(%arg0: i32, %arg1: memref<1x19x4x361xbf16, #tpu.memory_space<vmem>>, %arg2: memref<8x109xbf16, #tpu.memory_space<vmem>>, %arg3: memref<1x15x8x384xbf16, #tpu.memory_space<vmem>>, %arg4: memref<109x384xbf16, #tpu.memory_space<vmem>>) attributes {dimension_semantics = [#tpu.dimension_semantics<parallel>], iteration_bounds = array<i64: 2>, scalar_prefetch = 0 : i64, scratch_operands = 1 : i64, tpu.core_type = #tpu.core_type<tc>, window_params = [{transform_indices = @transform_0, window_bounds = array<i64: 1, 19, 4, 361>}, {pipeline_mode = #tpu.pipeline_mode<synchronous>, transform_indices = @transform_1, window_bounds = array<i64: 8, 109>}, {transform_indices = @transform_2, window_bounds = array<i64: 1, 15, 8, 384>}]} {
    %cst = arith.constant 1.000000e+00 : bf16
    %0 = vector.broadcast %cst : bf16 to vector<1x384xbf16>
    %c108 = arith.constant 108 : index
    %c0 = arith.constant 0 : index
    %1 = vector.load %arg4[%c108, %c0] : memref<109x384xbf16, #tpu.memory_space<vmem>>, vector<1x384xbf16>
    tpu.vector_store %arg4[%c108, %c0], %0 {strides = array<i32>} : memref<109x384xbf16, #tpu.memory_space<vmem>>, vector<1x384xbf16>,
    %c0_i32 = arith.constant 0 : i32
    %c15_i32 = arith.constant 15 : i32
    %2 = arith.addi %c0_i32, %c15_i32 : i32
    %c1_i32 = arith.constant 1 : i32
    scf.for %arg5 = %c0_i32 to %2 step %c1_i32  : i32 {
      %c0_i32_1 = arith.constant 0 : i32
      %3 = arith.addi %arg5, %c0_i32_1 : i32
      %c0_2 = arith.constant 0 : index
      %4 = arith.index_cast %3 : i32 to index
      %c0_3 = arith.constant 0 : index
      %c0_4 = arith.constant 0 : index
      %5 = vector.load %arg1[%c0_2, %4, %c0_3, %c0_4] : memref<1x19x4x361xbf16, #tpu.memory_space<vmem>>, vector<1x1x4x361xbf16>
      %6 = vector.shape_cast %5 : vector<1x1x4x361xbf16> to vector<4x361xbf16>
      %7 = vector.extract_strided_slice %6 {offsets = [0, 0], sizes = [4, 281], strides = [1, 1]} : vector<4x361xbf16> to vector<4x281xbf16>
      %c0_5 = arith.constant 0 : index
      %c0_6 = arith.constant 0 : index
      %8 = vector.load %arg4[%c0_5, %c0_6] : memref<109x384xbf16, #tpu.memory_space<vmem>>, vector<4x281xbf16>
      tpu.vector_store %arg4[%c0_5, %c0_6], %7 {strides = array<i32>} : memref<109x384xbf16, #tpu.memory_space<vmem>>, vector<4x281xbf16>,
      %9 = vector.extract_strided_slice %6 {offsets = [0, 2], sizes = [4, 281], strides = [1, 1]} : vector<4x361xbf16> to vector<4x281xbf16>
      %c4 = arith.constant 4 : index
      %c0_7 = arith.constant 0 : index
      %10 = vector.load %arg4[%c4, %c0_7] : memref<109x384xbf16, #tpu.memory_space<vmem>>, vector<4x281xbf16>
      tpu.vector_store %arg4[%c4, %c0_7], %9 {strides = array<i32>} : memref<109x384xbf16, #tpu.memory_space<vmem>>, vector<4x281xbf16>,
      %11 = vector.extract_strided_slice %6 {offsets = [0, 4], sizes = [4, 281], strides = [1, 1]} : vector<4x361xbf16> to vector<4x281xbf16>
      %c8 = arith.constant 8 : index
      %c0_8 = arith.constant 0 : index
      %12 = vector.load %arg4[%c8, %c0_8] : memref<109x384xbf16, #tpu.memory_space<vmem>>, vector<4x281xbf16>
      tpu.vector_store %arg4[%c8, %c0_8], %11 {strides = array<i32>} : memref<109x384xbf16, #tpu.memory_space<vmem>>, vector<4x281xbf16>,
      %13 = vector.extract_strided_slice %6 {offsets = [0, 38], sizes = [4, 281], strides = [1, 1]} : vector<4x361xbf16> to vector<4x281xbf16>
      %c12 = arith.constant 12 : index
      %c0_9 = arith.constant 0 : index
      %14 = vector.load %arg4[%c12, %c0_9] : memref<109x384xbf16, #tpu.memory_space<vmem>>, vector<4x281xbf16>
      tpu.vector_store %arg4[%c12, %c0_9], %13 {strides = array<i32>} : memref<109x384xbf16, #tpu.memory_space<vmem>>, vector<4x281xbf16>,
      %15 = vector.extract_strided_slice %6 {offsets = [0, 40], sizes = [4, 281], strides = [1, 1]} : vector<4x361xbf16> to vector<4x281xbf16>
      %c16 = arith.constant 16 : index
      %c0_10 = arith.constant 0 : index
      %16 = vector.load %arg4[%c16, %c0_10] : memref<109x384xbf16, #tpu.memory_space<vmem>>, vector<4x281xbf16>
      tpu.vector_store %arg4[%c16, %c0_10], %15 {strides = array<i32>} : memref<109x384xbf16, #tpu.memory_space<vmem>>, vector<4x281xbf16>,
      %17 = vector.extract_strided_slice %6 {offsets = [0, 42], sizes = [4, 281], strides = [1, 1]} : vector<4x361xbf16> to vector<4x281xbf16>
      %c20 = arith.constant 20 : index
      %c0_11 = arith.constant 0 : index
      %18 = vector.load %arg4[%c20, %c0_11] : memref<109x384xbf16, #tpu.memory_space<vmem>>, vector<4x281xbf16>
      tpu.vector_store %arg4[%c20, %c0_11], %17 {strides = array<i32>} : memref<109x384xbf16, #tpu.memory_space<vmem>>, vector<4x281xbf16>,
      %19 = vector.extract_strided_slice %6 {offsets = [0, 76], sizes = [4, 281], strides = [1, 1]} : vector<4x361xbf16> to vector<4x281xbf16>
      %c24 = arith.constant 24 : index
      %c0_12 = arith.constant 0 : index
      %20 = vector.load %arg4[%c24, %c0_12] : memref<109x384xbf16, #tpu.memory_space<vmem>>, vector<4x281xbf16>
      tpu.vector_store %arg4[%c24, %c0_12], %19 {strides = array<i32>} : memref<109x384xbf16, #tpu.memory_space<vmem>>, vector<4x281xbf16>,
      %21 = vector.extract_strided_slice %6 {offsets = [0, 78], sizes = [4, 281], strides = [1, 1]} : vector<4x361xbf16> to vector<4x281xbf16>
      %c28 = arith.constant 28 : index
      %c0_13 = arith.constant 0 : index
      %22 = vector.load %arg4[%c28, %c0_13] : memref<109x384xbf16, #tpu.memory_space<vmem>>, vector<4x281xbf16>
      tpu.vector_store %arg4[%c28, %c0_13], %21 {strides = array<i32>} : memref<109x384xbf16, #tpu.memory_space<vmem>>, vector<4x281xbf16>,
      %23 = vector.extract_strided_slice %6 {offsets = [0, 80], sizes = [4, 281], strides = [1, 1]} : vector<4x361xbf16> to vector<4x281xbf16>
      %c32 = arith.constant 32 : index
      %c0_14 = arith.constant 0 : index
      %24 = vector.load %arg4[%c32, %c0_14] : memref<109x384xbf16, #tpu.memory_space<vmem>>, vector<4x281xbf16>
      tpu.vector_store %arg4[%c32, %c0_14], %23 {strides = array<i32>} : memref<109x384xbf16, #tpu.memory_space<vmem>>, vector<4x281xbf16>,
      %c2_i32 = arith.constant 2 : i32
      %25 = arith.addi %arg5, %c2_i32 : i32
      %c0_15 = arith.constant 0 : index
      %26 = arith.index_cast %25 : i32 to index
      %c0_16 = arith.constant 0 : index
      %c0_17 = arith.constant 0 : index
      %27 = vector.load %arg1[%c0_15, %26, %c0_16, %c0_17] : memref<1x19x4x361xbf16, #tpu.memory_space<vmem>>, vector<1x1x4x361xbf16>
      %28 = vector.shape_cast %27 : vector<1x1x4x361xbf16> to vector<4x361xbf16>
      %29 = vector.extract_strided_slice %28 {offsets = [0, 0], sizes = [4, 281], strides = [1, 1]} : vector<4x361xbf16> to vector<4x281xbf16>
      %c36 = arith.constant 36 : index
      %c0_18 = arith.constant 0 : index
      %30 = vector.load %arg4[%c36, %c0_18] : memref<109x384xbf16, #tpu.memory_space<vmem>>, vector<4x281xbf16>
      tpu.vector_store %arg4[%c36, %c0_18], %29 {strides = array<i32>} : memref<109x384xbf16, #tpu.memory_space<vmem>>, vector<4x281xbf16>,
      %31 = vector.extract_strided_slice %28 {offsets = [0, 2], sizes = [4, 281], strides = [1, 1]} : vector<4x361xbf16> to vector<4x281xbf16>
      %c40 = arith.constant 40 : index
      %c0_19 = arith.constant 0 : index
      %32 = vector.load %arg4[%c40, %c0_19] : memref<109x384xbf16, #tpu.memory_space<vmem>>, vector<4x281xbf16>
      tpu.vector_store %arg4[%c40, %c0_19], %31 {strides = array<i32>} : memref<109x384xbf16, #tpu.memory_space<vmem>>, vector<4x281xbf16>,
      %33 = vector.extract_strided_slice %28 {offsets = [0, 4], sizes = [4, 281], strides = [1, 1]} : vector<4x361xbf16> to vector<4x281xbf16>
      %c44 = arith.constant 44 : index
      %c0_20 = arith.constant 0 : index
      %34 = vector.load %arg4[%c44, %c0_20] : memref<109x384xbf16, #tpu.memory_space<vmem>>, vector<4x281xbf16>
      tpu.vector_store %arg4[%c44, %c0_20], %33 {strides = array<i32>} : memref<109x384xbf16, #tpu.memory_space<vmem>>, vector<4x281xbf16>,
      %35 = vector.extract_strided_slice %28 {offsets = [0, 38], sizes = [4, 281], strides = [1, 1]} : vector<4x361xbf16> to vector<4x281xbf16>
      %c48 = arith.constant 48 : index
      %c0_21 = arith.constant 0 : index
      %36 = vector.load %arg4[%c48, %c0_21] : memref<109x384xbf16, #tpu.memory_space<vmem>>, vector<4x281xbf16>
      tpu.vector_store %arg4[%c48, %c0_21], %35 {strides = array<i32>} : memref<109x384xbf16, #tpu.memory_space<vmem>>, vector<4x281xbf16>,
      %37 = vector.extract_strided_slice %28 {offsets = [0, 40], sizes = [4, 281], strides = [1, 1]} : vector<4x361xbf16> to vector<4x281xbf16>
      %c52 = arith.constant 52 : index
      %c0_22 = arith.constant 0 : index
      %38 = vector.load %arg4[%c52, %c0_22] : memref<109x384xbf16, #tpu.memory_space<vmem>>, vector<4x281xbf16>
      tpu.vector_store %arg4[%c52, %c0_22], %37 {strides = array<i32>} : memref<109x384xbf16, #tpu.memory_space<vmem>>, vector<4x281xbf16>,
      %39 = vector.extract_strided_slice %28 {offsets = [0, 42], sizes = [4, 281], strides = [1, 1]} : vector<4x361xbf16> to vector<4x281xbf16>
      %c56 = arith.constant 56 : index
      %c0_23 = arith.constant 0 : index
      %40 = vector.load %arg4[%c56, %c0_23] : memref<109x384xbf16, #tpu.memory_space<vmem>>, vector<4x281xbf16>
      tpu.vector_store %arg4[%c56, %c0_23], %39 {strides = array<i32>} : memref<109x384xbf16, #tpu.memory_space<vmem>>, vector<4x281xbf16>,
      %41 = vector.extract_strided_slice %28 {offsets = [0, 76], sizes = [4, 281], strides = [1, 1]} : vector<4x361xbf16> to vector<4x281xbf16>
      %c60 = arith.constant 60 : index
      %c0_24 = arith.constant 0 : index
      %42 = vector.load %arg4[%c60, %c0_24] : memref<109x384xbf16, #tpu.memory_space<vmem>>, vector<4x281xbf16>
      tpu.vector_store %arg4[%c60, %c0_24], %41 {strides = array<i32>} : memref<109x384xbf16, #tpu.memory_space<vmem>>, vector<4x281xbf16>,
      %43 = vector.extract_strided_slice %28 {offsets = [0, 78], sizes = [4, 281], strides = [1, 1]} : vector<4x361xbf16> to vector<4x281xbf16>
      %c64 = arith.constant 64 : index
      %c0_25 = arith.constant 0 : index
      %44 = vector.load %arg4[%c64, %c0_25] : memref<109x384xbf16, #tpu.memory_space<vmem>>, vector<4x281xbf16>
      tpu.vector_store %arg4[%c64, %c0_25], %43 {strides = array<i32>} : memref<109x384xbf16, #tpu.memory_space<vmem>>, vector<4x281xbf16>,
      %45 = vector.extract_strided_slice %28 {offsets = [0, 80], sizes = [4, 281], strides = [1, 1]} : vector<4x361xbf16> to vector<4x281xbf16>
      %c68 = arith.constant 68 : index
      %c0_26 = arith.constant 0 : index
      %46 = vector.load %arg4[%c68, %c0_26] : memref<109x384xbf16, #tpu.memory_space<vmem>>, vector<4x281xbf16>
      tpu.vector_store %arg4[%c68, %c0_26], %45 {strides = array<i32>} : memref<109x384xbf16, #tpu.memory_space<vmem>>, vector<4x281xbf16>,
      %c4_i32 = arith.constant 4 : i32
      %47 = arith.addi %arg5, %c4_i32 : i32
      %c0_27 = arith.constant 0 : index
      %48 = arith.index_cast %47 : i32 to index
      %c0_28 = arith.constant 0 : index
      %c0_29 = arith.constant 0 : index
      %49 = vector.load %arg1[%c0_27, %48, %c0_28, %c0_29] : memref<1x19x4x361xbf16, #tpu.memory_space<vmem>>, vector<1x1x4x361xbf16>
      %50 = vector.shape_cast %49 : vector<1x1x4x361xbf16> to vector<4x361xbf16>
      %51 = vector.extract_strided_slice %50 {offsets = [0, 0], sizes = [4, 281], strides = [1, 1]} : vector<4x361xbf16> to vector<4x281xbf16>
      %c72 = arith.constant 72 : index
      %c0_30 = arith.constant 0 : index
      %52 = vector.load %arg4[%c72, %c0_30] : memref<109x384xbf16, #tpu.memory_space<vmem>>, vector<4x281xbf16>
      tpu.vector_store %arg4[%c72, %c0_30], %51 {strides = array<i32>} : memref<109x384xbf16, #tpu.memory_space<vmem>>, vector<4x281xbf16>,
      %53 = vector.extract_strided_slice %50 {offsets = [0, 2], sizes = [4, 281], strides = [1, 1]} : vector<4x361xbf16> to vector<4x281xbf16>
      %c76 = arith.constant 76 : index
      %c0_31 = arith.constant 0 : index
      %54 = vector.load %arg4[%c76, %c0_31] : memref<109x384xbf16, #tpu.memory_space<vmem>>, vector<4x281xbf16>
      tpu.vector_store %arg4[%c76, %c0_31], %53 {strides = array<i32>} : memref<109x384xbf16, #tpu.memory_space<vmem>>, vector<4x281xbf16>,
      %55 = vector.extract_strided_slice %50 {offsets = [0, 4], sizes = [4, 281], strides = [1, 1]} : vector<4x361xbf16> to vector<4x281xbf16>
      %c80 = arith.constant 80 : index
      %c0_32 = arith.constant 0 : index
      %56 = vector.load %arg4[%c80, %c0_32] : memref<109x384xbf16, #tpu.memory_space<vmem>>, vector<4x281xbf16>
      tpu.vector_store %arg4[%c80, %c0_32], %55 {strides = array<i32>} : memref<109x384xbf16, #tpu.memory_space<vmem>>, vector<4x281xbf16>,
      %57 = vector.extract_strided_slice %50 {offsets = [0, 38], sizes = [4, 281], strides = [1, 1]} : vector<4x361xbf16> to vector<4x281xbf16>
      %c84 = arith.constant 84 : index
      %c0_33 = arith.constant 0 : index
      %58 = vector.load %arg4[%c84, %c0_33] : memref<109x384xbf16, #tpu.memory_space<vmem>>, vector<4x281xbf16>
      tpu.vector_store %arg4[%c84, %c0_33], %57 {strides = array<i32>} : memref<109x384xbf16, #tpu.memory_space<vmem>>, vector<4x281xbf16>,
      %59 = vector.extract_strided_slice %50 {offsets = [0, 40], sizes = [4, 281], strides = [1, 1]} : vector<4x361xbf16> to vector<4x281xbf16>
      %c88 = arith.constant 88 : index
      %c0_34 = arith.constant 0 : index
      %60 = vector.load %arg4[%c88, %c0_34] : memref<109x384xbf16, #tpu.memory_space<vmem>>, vector<4x281xbf16>
      tpu.vector_store %arg4[%c88, %c0_34], %59 {strides = array<i32>} : memref<109x384xbf16, #tpu.memory_space<vmem>>, vector<4x281xbf16>,
      %61 = vector.extract_strided_slice %50 {offsets = [0, 42], sizes = [4, 281], strides = [1, 1]} : vector<4x361xbf16> to vector<4x281xbf16>
      %c92 = arith.constant 92 : index
      %c0_35 = arith.constant 0 : index
      %62 = vector.load %arg4[%c92, %c0_35] : memref<109x384xbf16, #tpu.memory_space<vmem>>, vector<4x281xbf16>
      tpu.vector_store %arg4[%c92, %c0_35], %61 {strides = array<i32>} : memref<109x384xbf16, #tpu.memory_space<vmem>>, vector<4x281xbf16>,
      %63 = vector.extract_strided_slice %50 {offsets = [0, 76], sizes = [4, 281], strides = [1, 1]} : vector<4x361xbf16> to vector<4x281xbf16>
      %c96 = arith.constant 96 : index
      %c0_36 = arith.constant 0 : index
      %64 = vector.load %arg4[%c96, %c0_36] : memref<109x384xbf16, #tpu.memory_space<vmem>>, vector<4x281xbf16>
      tpu.vector_store %arg4[%c96, %c0_36], %63 {strides = array<i32>} : memref<109x384xbf16, #tpu.memory_space<vmem>>, vector<4x281xbf16>,
      %65 = vector.extract_strided_slice %50 {offsets = [0, 78], sizes = [4, 281], strides = [1, 1]} : vector<4x361xbf16> to vector<4x281xbf16>
      %c100 = arith.constant 100 : index
      %c0_37 = arith.constant 0 : index
      %66 = vector.load %arg4[%c100, %c0_37] : memref<109x384xbf16, #tpu.memory_space<vmem>>, vector<4x281xbf16>
      tpu.vector_store %arg4[%c100, %c0_37], %65 {strides = array<i32>} : memref<109x384xbf16, #tpu.memory_space<vmem>>, vector<4x281xbf16>,
      %67 = vector.extract_strided_slice %50 {offsets = [0, 80], sizes = [4, 281], strides = [1, 1]} : vector<4x361xbf16> to vector<4x281xbf16>
      %c104 = arith.constant 104 : index
      %c0_38 = arith.constant 0 : index
      %68 = vector.load %arg4[%c104, %c0_38] : memref<109x384xbf16, #tpu.memory_space<vmem>>, vector<4x281xbf16>
      tpu.vector_store %arg4[%c104, %c0_38], %67 {strides = array<i32>} : memref<109x384xbf16, #tpu.memory_space<vmem>>, vector<4x281xbf16>,
      %c0_39 = arith.constant 0 : index
      %c0_40 = arith.constant 0 : index
      %69 = vector.load %arg2[%c0_39, %c0_40] : memref<8x109xbf16, #tpu.memory_space<vmem>>, vector<8x109xbf16>
      %c0_41 = arith.constant 0 : index
      %c0_42 = arith.constant 0 : index
      %70 = vector.load %arg4[%c0_41, %c0_42] : memref<109x384xbf16, #tpu.memory_space<vmem>>, vector<109x384xbf16>
      %cst_43 = arith.constant dense<0.000000e+00> : vector<8x384xf32>
      %71 = tpu.matmul %69, %70, %cst_43 {dimension_numbers = #tpu.dot_dimension_numbers<[1], [0], [0], [1], [0, 0, 1, 1], [], []>} : vector<8x109xbf16>, vector<109x384xbf16>, vector<8x384xf32> -> vector<8x384xf32>
      %cst_44 = arith.constant 0.000000e+00 : f32
      %72 = vector.broadcast %cst_44 : f32 to vector<8x384xf32>
      %73 = arith.maximumf %71, %72 : vector<8x384xf32>
      %74 = arith.truncf %73 : vector<8x384xf32> to vector<8x384xbf16>
      %c0_45 = arith.constant 0 : index
      %75 = arith.index_cast %arg5 : i32 to index
      %c0_46 = arith.constant 0 : index
      %c0_47 = arith.constant 0 : index
      %76 = vector.load %arg3[%c0_45, %75, %c0_46, %c0_47] : memref<1x15x8x384xbf16, #tpu.memory_space<vmem>>, vector<1x1x8x384xbf16>
      %77 = vector.shape_cast %76 : vector<1x1x8x384xbf16> to vector<8x384xbf16>
      %78 = vector.shape_cast %74 : vector<8x384xbf16> to vector<1x1x8x384xbf16>
      tpu.vector_store %arg3[%c0_45, %75, %c0_46, %c0_47], %78 {strides = array<i32>} : memref<1x15x8x384xbf16, #tpu.memory_space<vmem>>, vector<1x1x8x384xbf16>,
    }
    %c15_i32_0 = arith.constant 15 : i32
    return
  }
  func.func @transform_0(%arg0: i32) -> (i32, i32, i32, i32) {
    %c0_i32 = arith.constant 0 : i32
    %c0_i32_0 = arith.constant 0 : i32
    %c0_i32_1 = arith.constant 0 : i32
    %c0_i32_2 = arith.constant 0 : i32
    return %arg0, %c0_i32, %c0_i32_0, %c0_i32_1 : i32, i32, i32, i32
  }
  func.func @transform_1(%arg0: i32) -> (i32, i32) {
    %c0_i32 = arith.constant 0 : i32
    %c0_i32_0 = arith.constant 0 : i32
    %c0_i32_1 = arith.constant 0 : i32
    return %c0_i32, %c0_i32_0 : i32, i32
  }
  func.func @transform_2(%arg0: i32) -> (i32, i32, i32, i32) {
    %c0_i32 = arith.constant 0 : i32
    %c0_i32_0 = arith.constant 0 : i32
    %c0_i32_1 = arith.constant 0 : i32
    %c0_i32_2 = arith.constant 0 : i32
    return %arg0, %c0_i32, %c0_i32_0, %c0_i32_1 : i32, i32, i32, i32
  }
}

module attributes {stable_mosaic.version = 11 : i64} {
  func.func @_fused_kernel(%arg0: i32, %arg1: memref<1x15x8x961xbf16, #tpu.memory_space<vmem>>, %arg2: memref<1x11x4x384xf32, #tpu.memory_space<vmem>>, %arg3: memref<16x656xbf16, #tpu.memory_space<vmem>>, %arg4: memref<16x4xf32, #tpu.memory_space<vmem>>, %arg5: memref<4x217xbf16, #tpu.memory_space<vmem>>, %arg6: memref<4x4xf32, #tpu.memory_space<vmem>>, %arg7: memref<4x1xf32, #tpu.memory_space<vmem>>, %arg8: memref<16x4xf32, #tpu.memory_space<vmem>>, %arg9: memref<16x1xf32, #tpu.memory_space<vmem>>, %arg10: memref<1x11x16x384xf32, #tpu.memory_space<vmem>>, %arg11: memref<217x384xbf16, #tpu.memory_space<vmem>>) attributes {dimension_semantics = [#tpu.dimension_semantics<parallel>], iteration_bounds = array<i64: 2>, scalar_prefetch = 0 : i64, scratch_operands = 1 : i64, tpu.core_type = #tpu.core_type<tc>, window_params = [{transform_indices = @transform_0, window_bounds = array<i64: 1, 15, 8, 961>}, {transform_indices = @transform_1, window_bounds = array<i64: 1, 11, 4, 384>}, {pipeline_mode = #tpu.pipeline_mode<synchronous>, transform_indices = @transform_2, window_bounds = array<i64: 16, 656>}, {pipeline_mode = #tpu.pipeline_mode<synchronous>, transform_indices = @transform_3, window_bounds = array<i64: 16, 4>}, {pipeline_mode = #tpu.pipeline_mode<synchronous>, transform_indices = @transform_4, window_bounds = array<i64: 4, 217>}, {pipeline_mode = #tpu.pipeline_mode<synchronous>, transform_indices = @transform_5, window_bounds = array<i64: 4, 4>}, {pipeline_mode = #tpu.pipeline_mode<synchronous>, transform_indices = @transform_6, window_bounds = array<i64: 4, 1>}, {pipeline_mode = #tpu.pipeline_mode<synchronous>, transform_indices = @transform_7, window_bounds = array<i64: 16, 4>}, {pipeline_mode = #tpu.pipeline_mode<synchronous>, transform_indices = @transform_8, window_bounds = array<i64: 16, 1>}, {transform_indices = @transform_9, window_bounds = array<i64: 1, 11, 16, 384>}]} {
    %cst = arith.constant 1.000000e+00 : bf16
    %0 = vector.broadcast %cst : bf16 to vector<1x384xbf16>
    %c216 = arith.constant 216 : index
    %c0 = arith.constant 0 : index
    %1 = vector.load %arg11[%c216, %c0] : memref<217x384xbf16, #tpu.memory_space<vmem>>, vector<1x384xbf16>
    tpu.vector_store %arg11[%c216, %c0], %0 {strides = array<i32>} : memref<217x384xbf16, #tpu.memory_space<vmem>>, vector<1x384xbf16>,
    %c0_i32 = arith.constant 0 : i32
    %c11_i32 = arith.constant 11 : i32
    %2 = arith.addi %c0_i32, %c11_i32 : i32
    %c1_i32 = arith.constant 1 : i32
    scf.for %arg12 = %c0_i32 to %2 step %c1_i32  : i32 {
      %c1_i32_1 = arith.constant 1 : i32
      %3 = arith.addi %arg12, %c1_i32_1 : i32
      %c0_2 = arith.constant 0 : index
      %4 = arith.index_cast %3 : i32 to index
      %c0_3 = arith.constant 0 : index
      %c0_4 = arith.constant 0 : index
      %5 = vector.load %arg1[%c0_2, %4, %c0_3, %c0_4] : memref<1x15x8x961xbf16, #tpu.memory_space<vmem>>, vector<1x1x8x961xbf16>
      %6 = vector.shape_cast %5 : vector<1x1x8x961xbf16> to vector<8x961xbf16>
      %7 = vector.extract_strided_slice %6 {offsets = [0, 288], sizes = [8, 321], strides = [1, 1]} : vector<8x961xbf16> to vector<8x321xbf16>
      %c0_5 = arith.constant 0 : index
      %c0_6 = arith.constant 0 : index
      %8 = vector.load %arg11[%c0_5, %c0_6] : memref<217x384xbf16, #tpu.memory_space<vmem>>, vector<8x321xbf16>
      tpu.vector_store %arg11[%c0_5, %c0_6], %7 {strides = array<i32>} : memref<217x384xbf16, #tpu.memory_space<vmem>>, vector<8x321xbf16>,
      %9 = vector.extract_strided_slice %6 {offsets = [0, 289], sizes = [8, 321], strides = [1, 1]} : vector<8x961xbf16> to vector<8x321xbf16>
      %c8 = arith.constant 8 : index
      %c0_7 = arith.constant 0 : index
      %10 = vector.load %arg11[%c8, %c0_7] : memref<217x384xbf16, #tpu.memory_space<vmem>>, vector<8x321xbf16>
      tpu.vector_store %arg11[%c8, %c0_7], %9 {strides = array<i32>} : memref<217x384xbf16, #tpu.memory_space<vmem>>, vector<8x321xbf16>,
      %11 = vector.extract_strided_slice %6 {offsets = [0, 290], sizes = [8, 321], strides = [1, 1]} : vector<8x961xbf16> to vector<8x321xbf16>
      %c16 = arith.constant 16 : index
      %c0_8 = arith.constant 0 : index
      %12 = vector.load %arg11[%c16, %c0_8] : memref<217x384xbf16, #tpu.memory_space<vmem>>, vector<8x321xbf16>
      tpu.vector_store %arg11[%c16, %c0_8], %11 {strides = array<i32>} : memref<217x384xbf16, #tpu.memory_space<vmem>>, vector<8x321xbf16>,
      %13 = vector.extract_strided_slice %6 {offsets = [0, 319], sizes = [8, 321], strides = [1, 1]} : vector<8x961xbf16> to vector<8x321xbf16>
      %c24 = arith.constant 24 : index
      %c0_9 = arith.constant 0 : index
      %14 = vector.load %arg11[%c24, %c0_9] : memref<217x384xbf16, #tpu.memory_space<vmem>>, vector<8x321xbf16>
      tpu.vector_store %arg11[%c24, %c0_9], %13 {strides = array<i32>} : memref<217x384xbf16, #tpu.memory_space<vmem>>, vector<8x321xbf16>,
      %15 = vector.extract_strided_slice %6 {offsets = [0, 320], sizes = [8, 321], strides = [1, 1]} : vector<8x961xbf16> to vector<8x321xbf16>
      %c32 = arith.constant 32 : index
      %c0_10 = arith.constant 0 : index
      %16 = vector.load %arg11[%c32, %c0_10] : memref<217x384xbf16, #tpu.memory_space<vmem>>, vector<8x321xbf16>
      tpu.vector_store %arg11[%c32, %c0_10], %15 {strides = array<i32>} : memref<217x384xbf16, #tpu.memory_space<vmem>>, vector<8x321xbf16>,
      %17 = vector.extract_strided_slice %6 {offsets = [0, 321], sizes = [8, 321], strides = [1, 1]} : vector<8x961xbf16> to vector<8x321xbf16>
      %c40 = arith.constant 40 : index
      %c0_11 = arith.constant 0 : index
      %18 = vector.load %arg11[%c40, %c0_11] : memref<217x384xbf16, #tpu.memory_space<vmem>>, vector<8x321xbf16>
      tpu.vector_store %arg11[%c40, %c0_11], %17 {strides = array<i32>} : memref<217x384xbf16, #tpu.memory_space<vmem>>, vector<8x321xbf16>,
      %19 = vector.extract_strided_slice %6 {offsets = [0, 350], sizes = [8, 321], strides = [1, 1]} : vector<8x961xbf16> to vector<8x321xbf16>
      %c48 = arith.constant 48 : index
      %c0_12 = arith.constant 0 : index
      %20 = vector.load %arg11[%c48, %c0_12] : memref<217x384xbf16, #tpu.memory_space<vmem>>, vector<8x321xbf16>
      tpu.vector_store %arg11[%c48, %c0_12], %19 {strides = array<i32>} : memref<217x384xbf16, #tpu.memory_space<vmem>>, vector<8x321xbf16>,
      %21 = vector.extract_strided_slice %6 {offsets = [0, 351], sizes = [8, 321], strides = [1, 1]} : vector<8x961xbf16> to vector<8x321xbf16>
      %c56 = arith.constant 56 : index
      %c0_13 = arith.constant 0 : index
      %22 = vector.load %arg11[%c56, %c0_13] : memref<217x384xbf16, #tpu.memory_space<vmem>>, vector<8x321xbf16>
      tpu.vector_store %arg11[%c56, %c0_13], %21 {strides = array<i32>} : memref<217x384xbf16, #tpu.memory_space<vmem>>, vector<8x321xbf16>,
      %23 = vector.extract_strided_slice %6 {offsets = [0, 352], sizes = [8, 321], strides = [1, 1]} : vector<8x961xbf16> to vector<8x321xbf16>
      %c64 = arith.constant 64 : index
      %c0_14 = arith.constant 0 : index
      %24 = vector.load %arg11[%c64, %c0_14] : memref<217x384xbf16, #tpu.memory_space<vmem>>, vector<8x321xbf16>
      tpu.vector_store %arg11[%c64, %c0_14], %23 {strides = array<i32>} : memref<217x384xbf16, #tpu.memory_space<vmem>>, vector<8x321xbf16>,
      %c2_i32 = arith.constant 2 : i32
      %25 = arith.addi %arg12, %c2_i32 : i32
      %c0_15 = arith.constant 0 : index
      %26 = arith.index_cast %25 : i32 to index
      %c0_16 = arith.constant 0 : index
      %c0_17 = arith.constant 0 : index
      %27 = vector.load %arg1[%c0_15, %26, %c0_16, %c0_17] : memref<1x15x8x961xbf16, #tpu.memory_space<vmem>>, vector<1x1x8x961xbf16>
      %28 = vector.shape_cast %27 : vector<1x1x8x961xbf16> to vector<8x961xbf16>
      %29 = vector.extract_strided_slice %28 {offsets = [0, 288], sizes = [8, 321], strides = [1, 1]} : vector<8x961xbf16> to vector<8x321xbf16>
      %c72 = arith.constant 72 : index
      %c0_18 = arith.constant 0 : index
      %30 = vector.load %arg11[%c72, %c0_18] : memref<217x384xbf16, #tpu.memory_space<vmem>>, vector<8x321xbf16>
      tpu.vector_store %arg11[%c72, %c0_18], %29 {strides = array<i32>} : memref<217x384xbf16, #tpu.memory_space<vmem>>, vector<8x321xbf16>,
      %31 = vector.extract_strided_slice %28 {offsets = [0, 289], sizes = [8, 321], strides = [1, 1]} : vector<8x961xbf16> to vector<8x321xbf16>
      %c80 = arith.constant 80 : index
      %c0_19 = arith.constant 0 : index
      %32 = vector.load %arg11[%c80, %c0_19] : memref<217x384xbf16, #tpu.memory_space<vmem>>, vector<8x321xbf16>
      tpu.vector_store %arg11[%c80, %c0_19], %31 {strides = array<i32>} : memref<217x384xbf16, #tpu.memory_space<vmem>>, vector<8x321xbf16>,
      %33 = vector.extract_strided_slice %28 {offsets = [0, 290], sizes = [8, 321], strides = [1, 1]} : vector<8x961xbf16> to vector<8x321xbf16>
      %c88 = arith.constant 88 : index
      %c0_20 = arith.constant 0 : index
      %34 = vector.load %arg11[%c88, %c0_20] : memref<217x384xbf16, #tpu.memory_space<vmem>>, vector<8x321xbf16>
      tpu.vector_store %arg11[%c88, %c0_20], %33 {strides = array<i32>} : memref<217x384xbf16, #tpu.memory_space<vmem>>, vector<8x321xbf16>,
      %35 = vector.extract_strided_slice %28 {offsets = [0, 319], sizes = [8, 321], strides = [1, 1]} : vector<8x961xbf16> to vector<8x321xbf16>
      %c96 = arith.constant 96 : index
      %c0_21 = arith.constant 0 : index
      %36 = vector.load %arg11[%c96, %c0_21] : memref<217x384xbf16, #tpu.memory_space<vmem>>, vector<8x321xbf16>
      tpu.vector_store %arg11[%c96, %c0_21], %35 {strides = array<i32>} : memref<217x384xbf16, #tpu.memory_space<vmem>>, vector<8x321xbf16>,
      %37 = vector.extract_strided_slice %28 {offsets = [0, 320], sizes = [8, 321], strides = [1, 1]} : vector<8x961xbf16> to vector<8x321xbf16>
      %c104 = arith.constant 104 : index
      %c0_22 = arith.constant 0 : index
      %38 = vector.load %arg11[%c104, %c0_22] : memref<217x384xbf16, #tpu.memory_space<vmem>>, vector<8x321xbf16>
      tpu.vector_store %arg11[%c104, %c0_22], %37 {strides = array<i32>} : memref<217x384xbf16, #tpu.memory_space<vmem>>, vector<8x321xbf16>,
      %39 = vector.extract_strided_slice %28 {offsets = [0, 321], sizes = [8, 321], strides = [1, 1]} : vector<8x961xbf16> to vector<8x321xbf16>
      %c112 = arith.constant 112 : index
      %c0_23 = arith.constant 0 : index
      %40 = vector.load %arg11[%c112, %c0_23] : memref<217x384xbf16, #tpu.memory_space<vmem>>, vector<8x321xbf16>
      tpu.vector_store %arg11[%c112, %c0_23], %39 {strides = array<i32>} : memref<217x384xbf16, #tpu.memory_space<vmem>>, vector<8x321xbf16>,
      %41 = vector.extract_strided_slice %28 {offsets = [0, 350], sizes = [8, 321], strides = [1, 1]} : vector<8x961xbf16> to vector<8x321xbf16>
      %c120 = arith.constant 120 : index
      %c0_24 = arith.constant 0 : index
      %42 = vector.load %arg11[%c120, %c0_24] : memref<217x384xbf16, #tpu.memory_space<vmem>>, vector<8x321xbf16>
      tpu.vector_store %arg11[%c120, %c0_24], %41 {strides = array<i32>} : memref<217x384xbf16, #tpu.memory_space<vmem>>, vector<8x321xbf16>,
      %43 = vector.extract_strided_slice %28 {offsets = [0, 351], sizes = [8, 321], strides = [1, 1]} : vector<8x961xbf16> to vector<8x321xbf16>
      %c128 = arith.constant 128 : index
      %c0_25 = arith.constant 0 : index
      %44 = vector.load %arg11[%c128, %c0_25] : memref<217x384xbf16, #tpu.memory_space<vmem>>, vector<8x321xbf16>
      tpu.vector_store %arg11[%c128, %c0_25], %43 {strides = array<i32>} : memref<217x384xbf16, #tpu.memory_space<vmem>>, vector<8x321xbf16>,
      %45 = vector.extract_strided_slice %28 {offsets = [0, 352], sizes = [8, 321], strides = [1, 1]} : vector<8x961xbf16> to vector<8x321xbf16>
      %c136 = arith.constant 136 : index
      %c0_26 = arith.constant 0 : index
      %46 = vector.load %arg11[%c136, %c0_26] : memref<217x384xbf16, #tpu.memory_space<vmem>>, vector<8x321xbf16>
      tpu.vector_store %arg11[%c136, %c0_26], %45 {strides = array<i32>} : memref<217x384xbf16, #tpu.memory_space<vmem>>, vector<8x321xbf16>,
      %c3_i32 = arith.constant 3 : i32
      %47 = arith.addi %arg12, %c3_i32 : i32
      %c0_27 = arith.constant 0 : index
      %48 = arith.index_cast %47 : i32 to index
      %c0_28 = arith.constant 0 : index
      %c0_29 = arith.constant 0 : index
      %49 = vector.load %arg1[%c0_27, %48, %c0_28, %c0_29] : memref<1x15x8x961xbf16, #tpu.memory_space<vmem>>, vector<1x1x8x961xbf16>
      %50 = vector.shape_cast %49 : vector<1x1x8x961xbf16> to vector<8x961xbf16>
      %51 = vector.extract_strided_slice %50 {offsets = [0, 288], sizes = [8, 321], strides = [1, 1]} : vector<8x961xbf16> to vector<8x321xbf16>
      %c144 = arith.constant 144 : index
      %c0_30 = arith.constant 0 : index
      %52 = vector.load %arg11[%c144, %c0_30] : memref<217x384xbf16, #tpu.memory_space<vmem>>, vector<8x321xbf16>
      tpu.vector_store %arg11[%c144, %c0_30], %51 {strides = array<i32>} : memref<217x384xbf16, #tpu.memory_space<vmem>>, vector<8x321xbf16>,
      %53 = vector.extract_strided_slice %50 {offsets = [0, 289], sizes = [8, 321], strides = [1, 1]} : vector<8x961xbf16> to vector<8x321xbf16>
      %c152 = arith.constant 152 : index
      %c0_31 = arith.constant 0 : index
      %54 = vector.load %arg11[%c152, %c0_31] : memref<217x384xbf16, #tpu.memory_space<vmem>>, vector<8x321xbf16>
      tpu.vector_store %arg11[%c152, %c0_31], %53 {strides = array<i32>} : memref<217x384xbf16, #tpu.memory_space<vmem>>, vector<8x321xbf16>,
      %55 = vector.extract_strided_slice %50 {offsets = [0, 290], sizes = [8, 321], strides = [1, 1]} : vector<8x961xbf16> to vector<8x321xbf16>
      %c160 = arith.constant 160 : index
      %c0_32 = arith.constant 0 : index
      %56 = vector.load %arg11[%c160, %c0_32] : memref<217x384xbf16, #tpu.memory_space<vmem>>, vector<8x321xbf16>
      tpu.vector_store %arg11[%c160, %c0_32], %55 {strides = array<i32>} : memref<217x384xbf16, #tpu.memory_space<vmem>>, vector<8x321xbf16>,
      %57 = vector.extract_strided_slice %50 {offsets = [0, 319], sizes = [8, 321], strides = [1, 1]} : vector<8x961xbf16> to vector<8x321xbf16>
      %c168 = arith.constant 168 : index
      %c0_33 = arith.constant 0 : index
      %58 = vector.load %arg11[%c168, %c0_33] : memref<217x384xbf16, #tpu.memory_space<vmem>>, vector<8x321xbf16>
      tpu.vector_store %arg11[%c168, %c0_33], %57 {strides = array<i32>} : memref<217x384xbf16, #tpu.memory_space<vmem>>, vector<8x321xbf16>,
      %59 = vector.extract_strided_slice %50 {offsets = [0, 320], sizes = [8, 321], strides = [1, 1]} : vector<8x961xbf16> to vector<8x321xbf16>
      %c176 = arith.constant 176 : index
      %c0_34 = arith.constant 0 : index
      %60 = vector.load %arg11[%c176, %c0_34] : memref<217x384xbf16, #tpu.memory_space<vmem>>, vector<8x321xbf16>
      tpu.vector_store %arg11[%c176, %c0_34], %59 {strides = array<i32>} : memref<217x384xbf16, #tpu.memory_space<vmem>>, vector<8x321xbf16>,
      %61 = vector.extract_strided_slice %50 {offsets = [0, 321], sizes = [8, 321], strides = [1, 1]} : vector<8x961xbf16> to vector<8x321xbf16>
      %c184 = arith.constant 184 : index
      %c0_35 = arith.constant 0 : index
      %62 = vector.load %arg11[%c184, %c0_35] : memref<217x384xbf16, #tpu.memory_space<vmem>>, vector<8x321xbf16>
      tpu.vector_store %arg11[%c184, %c0_35], %61 {strides = array<i32>} : memref<217x384xbf16, #tpu.memory_space<vmem>>, vector<8x321xbf16>,
      %63 = vector.extract_strided_slice %50 {offsets = [0, 350], sizes = [8, 321], strides = [1, 1]} : vector<8x961xbf16> to vector<8x321xbf16>
      %c192 = arith.constant 192 : index
      %c0_36 = arith.constant 0 : index
      %64 = vector.load %arg11[%c192, %c0_36] : memref<217x384xbf16, #tpu.memory_space<vmem>>, vector<8x321xbf16>
      tpu.vector_store %arg11[%c192, %c0_36], %63 {strides = array<i32>} : memref<217x384xbf16, #tpu.memory_space<vmem>>, vector<8x321xbf16>,
      %65 = vector.extract_strided_slice %50 {offsets = [0, 351], sizes = [8, 321], strides = [1, 1]} : vector<8x961xbf16> to vector<8x321xbf16>
      %c200 = arith.constant 200 : index
      %c0_37 = arith.constant 0 : index
      %66 = vector.load %arg11[%c200, %c0_37] : memref<217x384xbf16, #tpu.memory_space<vmem>>, vector<8x321xbf16>
      tpu.vector_store %arg11[%c200, %c0_37], %65 {strides = array<i32>} : memref<217x384xbf16, #tpu.memory_space<vmem>>, vector<8x321xbf16>,
      %67 = vector.extract_strided_slice %50 {offsets = [0, 352], sizes = [8, 321], strides = [1, 1]} : vector<8x961xbf16> to vector<8x321xbf16>
      %c208 = arith.constant 208 : index
      %c0_38 = arith.constant 0 : index
      %68 = vector.load %arg11[%c208, %c0_38] : memref<217x384xbf16, #tpu.memory_space<vmem>>, vector<8x321xbf16>
      tpu.vector_store %arg11[%c208, %c0_38], %67 {strides = array<i32>} : memref<217x384xbf16, #tpu.memory_space<vmem>>, vector<8x321xbf16>,
      %c0_39 = arith.constant 0 : index
      %c0_40 = arith.constant 0 : index
      %69 = vector.load %arg5[%c0_39, %c0_40] : memref<4x217xbf16, #tpu.memory_space<vmem>>, vector<4x217xbf16>
      %c0_41 = arith.constant 0 : index
      %c0_42 = arith.constant 0 : index
      %70 = vector.load %arg11[%c0_41, %c0_42] : memref<217x384xbf16, #tpu.memory_space<vmem>>, vector<217x384xbf16>
      %cst_43 = arith.constant dense<0.000000e+00> : vector<4x384xf32>
      %71 = tpu.matmul %69, %70, %cst_43 {dimension_numbers = #tpu.dot_dimension_numbers<[1], [0], [0], [1], [0, 0, 1, 1], [], []>} : vector<4x217xbf16>, vector<217x384xbf16>, vector<4x384xf32> -> vector<4x384xf32>
      %cst_44 = arith.constant 0.000000e+00 : f32
      %72 = vector.broadcast %cst_44 : f32 to vector<4x384xf32>
      %73 = arith.maximumf %71, %72 : vector<4x384xf32>
      %c0_45 = arith.constant 0 : index
      %c0_46 = arith.constant 0 : index
      %74 = vector.load %arg6[%c0_45, %c0_46] : memref<4x4xf32, #tpu.memory_space<vmem>>, vector<4x4xf32>
      %cst_47 = arith.constant dense<0.000000e+00> : vector<4x384xf32>
      %75 = tpu.matmul %74, %73, %cst_47 {dimension_numbers = #tpu.dot_dimension_numbers<[1], [0], [0], [1], [0, 0, 1, 1], [], []>} : vector<4x4xf32>, vector<4x384xf32>, vector<4x384xf32> -> vector<4x384xf32>
      %c0_48 = arith.constant 0 : index
      %c0_49 = arith.constant 0 : index
      %76 = vector.load %arg7[%c0_48, %c0_49] : memref<4x1xf32, #tpu.memory_space<vmem>>, vector<4x1xf32>
      %77 = vector.broadcast %76 : vector<4x1xf32> to vector<4x384xf32>
      %78 = arith.addf %75, %77 : vector<4x384xf32>
      %cst_50 = arith.constant dense<0xFF800000> : vector<384xf32>
      %79 = vector.multi_reduction <maximumf>, %78, %cst_50 [0] : vector<4x384xf32> to vector<384xf32>
      %80 = vector.shape_cast %79 : vector<384xf32> to vector<1x384xf32>
      %81 = vector.broadcast %80 : vector<1x384xf32> to vector<4x384xf32>
      %82 = arith.subf %78, %81 : vector<4x384xf32>
      %83 = math.exp %82 : vector<4x384xf32>
      %cst_51 = arith.constant dense<0.000000e+00> : vector<384xf32>
      %84 = vector.multi_reduction <add>, %83, %cst_51 [0] : vector<4x384xf32> to vector<384xf32>
      %85 = vector.shape_cast %84 : vector<384xf32> to vector<1x384xf32>
      %86 = tpu.reciprocal %85 {approx = true} : vector<1x384xf32> -> vector<1x384xf32>
      %87 = vector.broadcast %86 : vector<1x384xf32> to vector<4x384xf32>
      %88 = arith.mulf %83, %87 : vector<4x384xf32>
      %c0_52 = arith.constant 0 : index
      %c0_53 = arith.constant 0 : index
      %89 = vector.load %arg4[%c0_52, %c0_53] : memref<16x4xf32, #tpu.memory_space<vmem>>, vector<16x4xf32>
      %cst_54 = arith.constant dense<0.000000e+00> : vector<16x384xf32>
      %90 = tpu.matmul %89, %88, %cst_54 {dimension_numbers = #tpu.dot_dimension_numbers<[1], [0], [0], [1], [0, 0, 1, 1], [], []>} : vector<16x4xf32>, vector<4x384xf32>, vector<16x384xf32> -> vector<16x384xf32>
      %c0_55 = arith.constant 0 : index
      %c0_56 = arith.constant 0 : index
      %91 = vector.load %arg8[%c0_55, %c0_56] : memref<16x4xf32, #tpu.memory_space<vmem>>, vector<16x4xf32>
      %c0_57 = arith.constant 0 : index
      %92 = arith.index_cast %arg12 : i32 to index
      %c0_58 = arith.constant 0 : index
      %c0_59 = arith.constant 0 : index
      %93 = vector.load %arg2[%c0_57, %92, %c0_58, %c0_59] : memref<1x11x4x384xf32, #tpu.memory_space<vmem>>, vector<1x1x4x384xf32>
      %94 = vector.shape_cast %93 : vector<1x1x4x384xf32> to vector<4x384xf32>
      %cst_60 = arith.constant dense<0.000000e+00> : vector<16x384xf32>
      %95 = tpu.matmul %91, %94, %cst_60 {dimension_numbers = #tpu.dot_dimension_numbers<[1], [0], [0], [1], [0, 0, 1, 1], [], []>} : vector<16x4xf32>, vector<4x384xf32>, vector<16x384xf32> -> vector<16x384xf32>
      %96 = arith.addf %90, %95 : vector<16x384xf32>
      %c0_61 = arith.constant 0 : index
      %c0_62 = arith.constant 0 : index
      %97 = vector.load %arg9[%c0_61, %c0_62] : memref<16x1xf32, #tpu.memory_space<vmem>>, vector<16x1xf32>
      %98 = vector.broadcast %97 : vector<16x1xf32> to vector<16x384xf32>
      %99 = arith.addf %96, %98 : vector<16x384xf32>
      %c0_i32_63 = arith.constant 0 : i32
      %100 = arith.addi %arg12, %c0_i32_63 : i32
      %c0_64 = arith.constant 0 : index
      %101 = arith.index_cast %100 : i32 to index
      %c0_65 = arith.constant 0 : index
      %c0_66 = arith.constant 0 : index
      %102 = vector.load %arg1[%c0_64, %101, %c0_65, %c0_66] : memref<1x15x8x961xbf16, #tpu.memory_space<vmem>>, vector<1x1x8x961xbf16>
      %103 = vector.shape_cast %102 : vector<1x1x8x961xbf16> to vector<8x961xbf16>
      %104 = vector.extract_strided_slice %103 {offsets = [0, 256], sizes = [8, 321], strides = [1, 1]} : vector<8x961xbf16> to vector<8x321xbf16>
      %c0_67 = arith.constant 0 : index
      %c0_68 = arith.constant 0 : index
      %105 = vector.load %arg11[%c0_67, %c0_68] : memref<217x384xbf16, #tpu.memory_space<vmem>>, vector<8x321xbf16>
      tpu.vector_store %arg11[%c0_67, %c0_68], %104 {strides = array<i32>} : memref<217x384xbf16, #tpu.memory_space<vmem>>, vector<8x321xbf16>,
      %106 = vector.extract_strided_slice %103 {offsets = [0, 258], sizes = [8, 321], strides = [1, 1]} : vector<8x961xbf16> to vector<8x321xbf16>
      %c8_69 = arith.constant 8 : index
      %c0_70 = arith.constant 0 : index
      %107 = vector.load %arg11[%c8_69, %c0_70] : memref<217x384xbf16, #tpu.memory_space<vmem>>, vector<8x321xbf16>
      tpu.vector_store %arg11[%c8_69, %c0_70], %106 {strides = array<i32>} : memref<217x384xbf16, #tpu.memory_space<vmem>>, vector<8x321xbf16>,
      %108 = vector.extract_strided_slice %103 {offsets = [0, 260], sizes = [8, 321], strides = [1, 1]} : vector<8x961xbf16> to vector<8x321xbf16>
      %c16_71 = arith.constant 16 : index
      %c0_72 = arith.constant 0 : index
      %109 = vector.load %arg11[%c16_71, %c0_72] : memref<217x384xbf16, #tpu.memory_space<vmem>>, vector<8x321xbf16>
      tpu.vector_store %arg11[%c16_71, %c0_72], %108 {strides = array<i32>} : memref<217x384xbf16, #tpu.memory_space<vmem>>, vector<8x321xbf16>,
      %110 = vector.extract_strided_slice %103 {offsets = [0, 318], sizes = [8, 321], strides = [1, 1]} : vector<8x961xbf16> to vector<8x321xbf16>
      %c24_73 = arith.constant 24 : index
      %c0_74 = arith.constant 0 : index
      %111 = vector.load %arg11[%c24_73, %c0_74] : memref<217x384xbf16, #tpu.memory_space<vmem>>, vector<8x321xbf16>
      tpu.vector_store %arg11[%c24_73, %c0_74], %110 {strides = array<i32>} : memref<217x384xbf16, #tpu.memory_space<vmem>>, vector<8x321xbf16>,
      %112 = vector.extract_strided_slice %103 {offsets = [0, 320], sizes = [8, 321], strides = [1, 1]} : vector<8x961xbf16> to vector<8x321xbf16>
      %c32_75 = arith.constant 32 : index
      %c0_76 = arith.constant 0 : index
      %113 = vector.load %arg11[%c32_75, %c0_76] : memref<217x384xbf16, #tpu.memory_space<vmem>>, vector<8x321xbf16>
      tpu.vector_store %arg11[%c32_75, %c0_76], %112 {strides = array<i32>} : memref<217x384xbf16, #tpu.memory_space<vmem>>, vector<8x321xbf16>,
      %114 = vector.extract_strided_slice %103 {offsets = [0, 322], sizes = [8, 321], strides = [1, 1]} : vector<8x961xbf16> to vector<8x321xbf16>
      %c40_77 = arith.constant 40 : index
      %c0_78 = arith.constant 0 : index
      %115 = vector.load %arg11[%c40_77, %c0_78] : memref<217x384xbf16, #tpu.memory_space<vmem>>, vector<8x321xbf16>
      tpu.vector_store %arg11[%c40_77, %c0_78], %114 {strides = array<i32>} : memref<217x384xbf16, #tpu.memory_space<vmem>>, vector<8x321xbf16>,
      %116 = vector.extract_strided_slice %103 {offsets = [0, 380], sizes = [8, 321], strides = [1, 1]} : vector<8x961xbf16> to vector<8x321xbf16>
      %c48_79 = arith.constant 48 : index
      %c0_80 = arith.constant 0 : index
      %117 = vector.load %arg11[%c48_79, %c0_80] : memref<217x384xbf16, #tpu.memory_space<vmem>>, vector<8x321xbf16>
      tpu.vector_store %arg11[%c48_79, %c0_80], %116 {strides = array<i32>} : memref<217x384xbf16, #tpu.memory_space<vmem>>, vector<8x321xbf16>,
      %118 = vector.extract_strided_slice %103 {offsets = [0, 382], sizes = [8, 321], strides = [1, 1]} : vector<8x961xbf16> to vector<8x321xbf16>
      %c56_81 = arith.constant 56 : index
      %c0_82 = arith.constant 0 : index
      %119 = vector.load %arg11[%c56_81, %c0_82] : memref<217x384xbf16, #tpu.memory_space<vmem>>, vector<8x321xbf16>
      tpu.vector_store %arg11[%c56_81, %c0_82], %118 {strides = array<i32>} : memref<217x384xbf16, #tpu.memory_space<vmem>>, vector<8x321xbf16>,
      %120 = vector.extract_strided_slice %103 {offsets = [0, 384], sizes = [8, 321], strides = [1, 1]} : vector<8x961xbf16> to vector<8x321xbf16>
      %c64_83 = arith.constant 64 : index
      %c0_84 = arith.constant 0 : index
      %121 = vector.load %arg11[%c64_83, %c0_84] : memref<217x384xbf16, #tpu.memory_space<vmem>>, vector<8x321xbf16>
      tpu.vector_store %arg11[%c64_83, %c0_84], %120 {strides = array<i32>} : memref<217x384xbf16, #tpu.memory_space<vmem>>, vector<8x321xbf16>,
      %c2_i32_85 = arith.constant 2 : i32
      %122 = arith.addi %arg12, %c2_i32_85 : i32
      %c0_86 = arith.constant 0 : index
      %123 = arith.index_cast %122 : i32 to index
      %c0_87 = arith.constant 0 : index
      %c0_88 = arith.constant 0 : index
      %124 = vector.load %arg1[%c0_86, %123, %c0_87, %c0_88] : memref<1x15x8x961xbf16, #tpu.memory_space<vmem>>, vector<1x1x8x961xbf16>
      %125 = vector.shape_cast %124 : vector<1x1x8x961xbf16> to vector<8x961xbf16>
      %126 = vector.extract_strided_slice %125 {offsets = [0, 256], sizes = [8, 321], strides = [1, 1]} : vector<8x961xbf16> to vector<8x321xbf16>
      %c72_89 = arith.constant 72 : index
      %c0_90 = arith.constant 0 : index
      %127 = vector.load %arg11[%c72_89, %c0_90] : memref<217x384xbf16, #tpu.memory_space<vmem>>, vector<8x321xbf16>
      tpu.vector_store %arg11[%c72_89, %c0_90], %126 {strides = array<i32>} : memref<217x384xbf16, #tpu.memory_space<vmem>>, vector<8x321xbf16>,
      %128 = vector.extract_strided_slice %125 {offsets = [0, 258], sizes = [8, 321], strides = [1, 1]} : vector<8x961xbf16> to vector<8x321xbf16>
      %c80_91 = arith.constant 80 : index
      %c0_92 = arith.constant 0 : index
      %129 = vector.load %arg11[%c80_91, %c0_92] : memref<217x384xbf16, #tpu.memory_space<vmem>>, vector<8x321xbf16>
      tpu.vector_store %arg11[%c80_91, %c0_92], %128 {strides = array<i32>} : memref<217x384xbf16, #tpu.memory_space<vmem>>, vector<8x321xbf16>,
      %130 = vector.extract_strided_slice %125 {offsets = [0, 260], sizes = [8, 321], strides = [1, 1]} : vector<8x961xbf16> to vector<8x321xbf16>
      %c88_93 = arith.constant 88 : index
      %c0_94 = arith.constant 0 : index
      %131 = vector.load %arg11[%c88_93, %c0_94] : memref<217x384xbf16, #tpu.memory_space<vmem>>, vector<8x321xbf16>
      tpu.vector_store %arg11[%c88_93, %c0_94], %130 {strides = array<i32>} : memref<217x384xbf16, #tpu.memory_space<vmem>>, vector<8x321xbf16>,
      %132 = vector.extract_strided_slice %125 {offsets = [0, 318], sizes = [8, 321], strides = [1, 1]} : vector<8x961xbf16> to vector<8x321xbf16>
      %c96_95 = arith.constant 96 : index
      %c0_96 = arith.constant 0 : index
      %133 = vector.load %arg11[%c96_95, %c0_96] : memref<217x384xbf16, #tpu.memory_space<vmem>>, vector<8x321xbf16>
      tpu.vector_store %arg11[%c96_95, %c0_96], %132 {strides = array<i32>} : memref<217x384xbf16, #tpu.memory_space<vmem>>, vector<8x321xbf16>,
      %134 = vector.extract_strided_slice %125 {offsets = [0, 320], sizes = [8, 321], strides = [1, 1]} : vector<8x961xbf16> to vector<8x321xbf16>
      %c104_97 = arith.constant 104 : index
      %c0_98 = arith.constant 0 : index
      %135 = vector.load %arg11[%c104_97, %c0_98] : memref<217x384xbf16, #tpu.memory_space<vmem>>, vector<8x321xbf16>
      tpu.vector_store %arg11[%c104_97, %c0_98], %134 {strides = array<i32>} : memref<217x384xbf16, #tpu.memory_space<vmem>>, vector<8x321xbf16>,
      %136 = vector.extract_strided_slice %125 {offsets = [0, 322], sizes = [8, 321], strides = [1, 1]} : vector<8x961xbf16> to vector<8x321xbf16>
      %c112_99 = arith.constant 112 : index
      %c0_100 = arith.constant 0 : index
      %137 = vector.load %arg11[%c112_99, %c0_100] : memref<217x384xbf16, #tpu.memory_space<vmem>>, vector<8x321xbf16>
      tpu.vector_store %arg11[%c112_99, %c0_100], %136 {strides = array<i32>} : memref<217x384xbf16, #tpu.memory_space<vmem>>, vector<8x321xbf16>,
      %138 = vector.extract_strided_slice %125 {offsets = [0, 380], sizes = [8, 321], strides = [1, 1]} : vector<8x961xbf16> to vector<8x321xbf16>
      %c120_101 = arith.constant 120 : index
      %c0_102 = arith.constant 0 : index
      %139 = vector.load %arg11[%c120_101, %c0_102] : memref<217x384xbf16, #tpu.memory_space<vmem>>, vector<8x321xbf16>
      tpu.vector_store %arg11[%c120_101, %c0_102], %138 {strides = array<i32>} : memref<217x384xbf16, #tpu.memory_space<vmem>>, vector<8x321xbf16>,
      %140 = vector.extract_strided_slice %125 {offsets = [0, 382], sizes = [8, 321], strides = [1, 1]} : vector<8x961xbf16> to vector<8x321xbf16>
      %c128_103 = arith.constant 128 : index
      %c0_104 = arith.constant 0 : index
      %141 = vector.load %arg11[%c128_103, %c0_104] : memref<217x384xbf16, #tpu.memory_space<vmem>>, vector<8x321xbf16>
      tpu.vector_store %arg11[%c128_103, %c0_104], %140 {strides = array<i32>} : memref<217x384xbf16, #tpu.memory_space<vmem>>, vector<8x321xbf16>,
      %142 = vector.extract_strided_slice %125 {offsets = [0, 384], sizes = [8, 321], strides = [1, 1]} : vector<8x961xbf16> to vector<8x321xbf16>
      %c136_105 = arith.constant 136 : index
      %c0_106 = arith.constant 0 : index
      %143 = vector.load %arg11[%c136_105, %c0_106] : memref<217x384xbf16, #tpu.memory_space<vmem>>, vector<8x321xbf16>
      tpu.vector_store %arg11[%c136_105, %c0_106], %142 {strides = array<i32>} : memref<217x384xbf16, #tpu.memory_space<vmem>>, vector<8x321xbf16>,
      %c4_i32 = arith.constant 4 : i32
      %144 = arith.addi %arg12, %c4_i32 : i32
      %c0_107 = arith.constant 0 : index
      %145 = arith.index_cast %144 : i32 to index
      %c0_108 = arith.constant 0 : index
      %c0_109 = arith.constant 0 : index
      %146 = vector.load %arg1[%c0_107, %145, %c0_108, %c0_109] : memref<1x15x8x961xbf16, #tpu.memory_space<vmem>>, vector<1x1x8x961xbf16>
      %147 = vector.shape_cast %146 : vector<1x1x8x961xbf16> to vector<8x961xbf16>
      %148 = vector.extract_strided_slice %147 {offsets = [0, 256], sizes = [8, 321], strides = [1, 1]} : vector<8x961xbf16> to vector<8x321xbf16>
      %c144_110 = arith.constant 144 : index
      %c0_111 = arith.constant 0 : index
      %149 = vector.load %arg11[%c144_110, %c0_111] : memref<217x384xbf16, #tpu.memory_space<vmem>>, vector<8x321xbf16>
      tpu.vector_store %arg11[%c144_110, %c0_111], %148 {strides = array<i32>} : memref<217x384xbf16, #tpu.memory_space<vmem>>, vector<8x321xbf16>,
      %150 = vector.extract_strided_slice %147 {offsets = [0, 258], sizes = [8, 321], strides = [1, 1]} : vector<8x961xbf16> to vector<8x321xbf16>
      %c152_112 = arith.constant 152 : index
      %c0_113 = arith.constant 0 : index
      %151 = vector.load %arg11[%c152_112, %c0_113] : memref<217x384xbf16, #tpu.memory_space<vmem>>, vector<8x321xbf16>
      tpu.vector_store %arg11[%c152_112, %c0_113], %150 {strides = array<i32>} : memref<217x384xbf16, #tpu.memory_space<vmem>>, vector<8x321xbf16>,
      %152 = vector.extract_strided_slice %147 {offsets = [0, 260], sizes = [8, 321], strides = [1, 1]} : vector<8x961xbf16> to vector<8x321xbf16>
      %c160_114 = arith.constant 160 : index
      %c0_115 = arith.constant 0 : index
      %153 = vector.load %arg11[%c160_114, %c0_115] : memref<217x384xbf16, #tpu.memory_space<vmem>>, vector<8x321xbf16>
      tpu.vector_store %arg11[%c160_114, %c0_115], %152 {strides = array<i32>} : memref<217x384xbf16, #tpu.memory_space<vmem>>, vector<8x321xbf16>,
      %154 = vector.extract_strided_slice %147 {offsets = [0, 318], sizes = [8, 321], strides = [1, 1]} : vector<8x961xbf16> to vector<8x321xbf16>
      %c168_116 = arith.constant 168 : index
      %c0_117 = arith.constant 0 : index
      %155 = vector.load %arg11[%c168_116, %c0_117] : memref<217x384xbf16, #tpu.memory_space<vmem>>, vector<8x321xbf16>
      tpu.vector_store %arg11[%c168_116, %c0_117], %154 {strides = array<i32>} : memref<217x384xbf16, #tpu.memory_space<vmem>>, vector<8x321xbf16>,
      %156 = vector.extract_strided_slice %147 {offsets = [0, 320], sizes = [8, 321], strides = [1, 1]} : vector<8x961xbf16> to vector<8x321xbf16>
      %c176_118 = arith.constant 176 : index
      %c0_119 = arith.constant 0 : index
      %157 = vector.load %arg11[%c176_118, %c0_119] : memref<217x384xbf16, #tpu.memory_space<vmem>>, vector<8x321xbf16>
      tpu.vector_store %arg11[%c176_118, %c0_119], %156 {strides = array<i32>} : memref<217x384xbf16, #tpu.memory_space<vmem>>, vector<8x321xbf16>,
      %158 = vector.extract_strided_slice %147 {offsets = [0, 322], sizes = [8, 321], strides = [1, 1]} : vector<8x961xbf16> to vector<8x321xbf16>
      %c184_120 = arith.constant 184 : index
      %c0_121 = arith.constant 0 : index
      %159 = vector.load %arg11[%c184_120, %c0_121] : memref<217x384xbf16, #tpu.memory_space<vmem>>, vector<8x321xbf16>
      tpu.vector_store %arg11[%c184_120, %c0_121], %158 {strides = array<i32>} : memref<217x384xbf16, #tpu.memory_space<vmem>>, vector<8x321xbf16>,
      %160 = vector.extract_strided_slice %147 {offsets = [0, 380], sizes = [8, 321], strides = [1, 1]} : vector<8x961xbf16> to vector<8x321xbf16>
      %c192_122 = arith.constant 192 : index
      %c0_123 = arith.constant 0 : index
      %161 = vector.load %arg11[%c192_122, %c0_123] : memref<217x384xbf16, #tpu.memory_space<vmem>>, vector<8x321xbf16>
      tpu.vector_store %arg11[%c192_122, %c0_123], %160 {strides = array<i32>} : memref<217x384xbf16, #tpu.memory_space<vmem>>, vector<8x321xbf16>,
      %162 = vector.extract_strided_slice %147 {offsets = [0, 382], sizes = [8, 321], strides = [1, 1]} : vector<8x961xbf16> to vector<8x321xbf16>
      %c200_124 = arith.constant 200 : index
      %c0_125 = arith.constant 0 : index
      %163 = vector.load %arg11[%c200_124, %c0_125] : memref<217x384xbf16, #tpu.memory_space<vmem>>, vector<8x321xbf16>
      tpu.vector_store %arg11[%c200_124, %c0_125], %162 {strides = array<i32>} : memref<217x384xbf16, #tpu.memory_space<vmem>>, vector<8x321xbf16>,
      %164 = vector.extract_strided_slice %147 {offsets = [0, 384], sizes = [8, 321], strides = [1, 1]} : vector<8x961xbf16> to vector<8x321xbf16>
      %c208_126 = arith.constant 208 : index
      %c0_127 = arith.constant 0 : index
      %165 = vector.load %arg11[%c208_126, %c0_127] : memref<217x384xbf16, #tpu.memory_space<vmem>>, vector<8x321xbf16>
      tpu.vector_store %arg11[%c208_126, %c0_127], %164 {strides = array<i32>} : memref<217x384xbf16, #tpu.memory_space<vmem>>, vector<8x321xbf16>,
      %c0_128 = arith.constant 0 : index
      %c0_129 = arith.constant 0 : index
      %166 = vector.load %arg3[%c0_128, %c0_129] : memref<16x656xbf16, #tpu.memory_space<vmem>>, vector<16x216xbf16>
      %c0_130 = arith.constant 0 : index
      %c0_131 = arith.constant 0 : index
      %167 = vector.load %arg11[%c0_130, %c0_131] : memref<217x384xbf16, #tpu.memory_space<vmem>>, vector<216x384xbf16>
      %cst_132 = arith.constant dense<0.000000e+00> : vector<16x384xf32>
      %168 = tpu.matmul %166, %167, %cst_132 {dimension_numbers = #tpu.dot_dimension_numbers<[1], [0], [0], [1], [0, 0, 1, 1], [], []>} : vector<16x216xbf16>, vector<216x384xbf16>, vector<16x384xf32> -> vector<16x384xf32>
      %169 = vector.extract_strided_slice %88 {offsets = [0, 0], sizes = [1, 384], strides = [1, 1]} : vector<4x384xf32> to vector<1x384xf32>
      %170 = vector.broadcast %169 : vector<1x384xf32> to vector<16x384xf32>
      %171 = arith.mulf %168, %170 : vector<16x384xf32>
      %172 = arith.addf %99, %171 : vector<16x384xf32>
      %c4_i32_133 = arith.constant 4 : i32
      %173 = arith.cmpi sge, %arg12, %c4_i32_133 : i32
      %c11_i32_134 = arith.constant 11 : i32
      %174 = arith.cmpi slt, %arg12, %c11_i32_134 : i32
      %175 = arith.andi %173, %174 : i1
      %176 = arith.extui %175 : i1 to i32
      %c0_i32_135 = arith.constant 0 : i32
      %177 = arith.cmpi ne, %176, %c0_i32_135 : i32
      scf.if %177 {
        %c-4_i32 = arith.constant -4 : i32
        %282 = arith.addi %arg12, %c-4_i32 : i32
        %c0_217 = arith.constant 0 : index
        %283 = arith.index_cast %282 : i32 to index
        %c0_218 = arith.constant 0 : index
        %c0_219 = arith.constant 0 : index
        %284 = vector.load %arg1[%c0_217, %283, %c0_218, %c0_219] : memref<1x15x8x961xbf16, #tpu.memory_space<vmem>>, vector<1x1x8x961xbf16>
        %285 = vector.shape_cast %284 : vector<1x1x8x961xbf16> to vector<8x961xbf16>
        %286 = vector.extract_strided_slice %285 {offsets = [0, 128], sizes = [8, 321], strides = [1, 1]} : vector<8x961xbf16> to vector<8x321xbf16>
        %c0_220 = arith.constant 0 : index
        %c0_221 = arith.constant 0 : index
        %287 = vector.load %arg11[%c0_220, %c0_221] : memref<217x384xbf16, #tpu.memory_space<vmem>>, vector<8x321xbf16>
        tpu.vector_store %arg11[%c0_220, %c0_221], %286 {strides = array<i32>} : memref<217x384xbf16, #tpu.memory_space<vmem>>, vector<8x321xbf16>,
        %288 = vector.extract_strided_slice %285 {offsets = [0, 134], sizes = [8, 321], strides = [1, 1]} : vector<8x961xbf16> to vector<8x321xbf16>
        %c8_222 = arith.constant 8 : index
        %c0_223 = arith.constant 0 : index
        %289 = vector.load %arg11[%c8_222, %c0_223] : memref<217x384xbf16, #tpu.memory_space<vmem>>, vector<8x321xbf16>
        tpu.vector_store %arg11[%c8_222, %c0_223], %288 {strides = array<i32>} : memref<217x384xbf16, #tpu.memory_space<vmem>>, vector<8x321xbf16>,
        %290 = vector.extract_strided_slice %285 {offsets = [0, 140], sizes = [8, 321], strides = [1, 1]} : vector<8x961xbf16> to vector<8x321xbf16>
        %c16_224 = arith.constant 16 : index
        %c0_225 = arith.constant 0 : index
        %291 = vector.load %arg11[%c16_224, %c0_225] : memref<217x384xbf16, #tpu.memory_space<vmem>>, vector<8x321xbf16>
        tpu.vector_store %arg11[%c16_224, %c0_225], %290 {strides = array<i32>} : memref<217x384xbf16, #tpu.memory_space<vmem>>, vector<8x321xbf16>,
        %292 = vector.extract_strided_slice %285 {offsets = [0, 314], sizes = [8, 321], strides = [1, 1]} : vector<8x961xbf16> to vector<8x321xbf16>
        %c24_226 = arith.constant 24 : index
        %c0_227 = arith.constant 0 : index
        %293 = vector.load %arg11[%c24_226, %c0_227] : memref<217x384xbf16, #tpu.memory_space<vmem>>, vector<8x321xbf16>
        tpu.vector_store %arg11[%c24_226, %c0_227], %292 {strides = array<i32>} : memref<217x384xbf16, #tpu.memory_space<vmem>>, vector<8x321xbf16>,
        %294 = vector.extract_strided_slice %285 {offsets = [0, 320], sizes = [8, 321], strides = [1, 1]} : vector<8x961xbf16> to vector<8x321xbf16>
        %c32_228 = arith.constant 32 : index
        %c0_229 = arith.constant 0 : index
        %295 = vector.load %arg11[%c32_228, %c0_229] : memref<217x384xbf16, #tpu.memory_space<vmem>>, vector<8x321xbf16>
        tpu.vector_store %arg11[%c32_228, %c0_229], %294 {strides = array<i32>} : memref<217x384xbf16, #tpu.memory_space<vmem>>, vector<8x321xbf16>,
        %296 = vector.extract_strided_slice %285 {offsets = [0, 326], sizes = [8, 321], strides = [1, 1]} : vector<8x961xbf16> to vector<8x321xbf16>
        %c40_230 = arith.constant 40 : index
        %c0_231 = arith.constant 0 : index
        %297 = vector.load %arg11[%c40_230, %c0_231] : memref<217x384xbf16, #tpu.memory_space<vmem>>, vector<8x321xbf16>
        tpu.vector_store %arg11[%c40_230, %c0_231], %296 {strides = array<i32>} : memref<217x384xbf16, #tpu.memory_space<vmem>>, vector<8x321xbf16>,
        %298 = vector.extract_strided_slice %285 {offsets = [0, 500], sizes = [8, 321], strides = [1, 1]} : vector<8x961xbf16> to vector<8x321xbf16>
        %c48_232 = arith.constant 48 : index
        %c0_233 = arith.constant 0 : index
        %299 = vector.load %arg11[%c48_232, %c0_233] : memref<217x384xbf16, #tpu.memory_space<vmem>>, vector<8x321xbf16>
        tpu.vector_store %arg11[%c48_232, %c0_233], %298 {strides = array<i32>} : memref<217x384xbf16, #tpu.memory_space<vmem>>, vector<8x321xbf16>,
        %300 = vector.extract_strided_slice %285 {offsets = [0, 506], sizes = [8, 321], strides = [1, 1]} : vector<8x961xbf16> to vector<8x321xbf16>
        %c56_234 = arith.constant 56 : index
        %c0_235 = arith.constant 0 : index
        %301 = vector.load %arg11[%c56_234, %c0_235] : memref<217x384xbf16, #tpu.memory_space<vmem>>, vector<8x321xbf16>
        tpu.vector_store %arg11[%c56_234, %c0_235], %300 {strides = array<i32>} : memref<217x384xbf16, #tpu.memory_space<vmem>>, vector<8x321xbf16>,
        %302 = vector.extract_strided_slice %285 {offsets = [0, 512], sizes = [8, 321], strides = [1, 1]} : vector<8x961xbf16> to vector<8x321xbf16>
        %c64_236 = arith.constant 64 : index
        %c0_237 = arith.constant 0 : index
        %303 = vector.load %arg11[%c64_236, %c0_237] : memref<217x384xbf16, #tpu.memory_space<vmem>>, vector<8x321xbf16>
        tpu.vector_store %arg11[%c64_236, %c0_237], %302 {strides = array<i32>} : memref<217x384xbf16, #tpu.memory_space<vmem>>, vector<8x321xbf16>,
      } else {
      }
      %true = arith.constant true
      %178 = arith.xori %175, %true : i1
      %179 = arith.extui %178 : i1 to i32
      %c0_i32_136 = arith.constant 0 : i32
      %180 = arith.cmpi ne, %179, %c0_i32_136 : i32
      scf.if %180 {
        %cst_217 = arith.constant 0.000000e+00 : bf16
        %282 = vector.broadcast %cst_217 : bf16 to vector<72x321xbf16>
        %c0_218 = arith.constant 0 : index
        %c0_219 = arith.constant 0 : index
        %283 = vector.load %arg11[%c0_218, %c0_219] : memref<217x384xbf16, #tpu.memory_space<vmem>>, vector<72x321xbf16>
        tpu.vector_store %arg11[%c0_218, %c0_219], %282 {strides = array<i32>} : memref<217x384xbf16, #tpu.memory_space<vmem>>, vector<72x321xbf16>,
      } else {
      }
      %c2_i32_137 = arith.constant 2 : i32
      %181 = arith.addi %arg12, %c2_i32_137 : i32
      %c0_138 = arith.constant 0 : index
      %182 = arith.index_cast %181 : i32 to index
      %c0_139 = arith.constant 0 : index
      %c0_140 = arith.constant 0 : index
      %183 = vector.load %arg1[%c0_138, %182, %c0_139, %c0_140] : memref<1x15x8x961xbf16, #tpu.memory_space<vmem>>, vector<1x1x8x961xbf16>
      %184 = vector.shape_cast %183 : vector<1x1x8x961xbf16> to vector<8x961xbf16>
      %185 = vector.extract_strided_slice %184 {offsets = [0, 128], sizes = [8, 321], strides = [1, 1]} : vector<8x961xbf16> to vector<8x321xbf16>
      %c72_141 = arith.constant 72 : index
      %c0_142 = arith.constant 0 : index
      %186 = vector.load %arg11[%c72_141, %c0_142] : memref<217x384xbf16, #tpu.memory_space<vmem>>, vector<8x321xbf16>
      tpu.vector_store %arg11[%c72_141, %c0_142], %185 {strides = array<i32>} : memref<217x384xbf16, #tpu.memory_space<vmem>>, vector<8x321xbf16>,
      %187 = vector.extract_strided_slice %184 {offsets = [0, 134], sizes = [8, 321], strides = [1, 1]} : vector<8x961xbf16> to vector<8x321xbf16>
      %c80_143 = arith.constant 80 : index
      %c0_144 = arith.constant 0 : index
      %188 = vector.load %arg11[%c80_143, %c0_144] : memref<217x384xbf16, #tpu.memory_space<vmem>>, vector<8x321xbf16>
      tpu.vector_store %arg11[%c80_143, %c0_144], %187 {strides = array<i32>} : memref<217x384xbf16, #tpu.memory_space<vmem>>, vector<8x321xbf16>,
      %189 = vector.extract_strided_slice %184 {offsets = [0, 140], sizes = [8, 321], strides = [1, 1]} : vector<8x961xbf16> to vector<8x321xbf16>
      %c88_145 = arith.constant 88 : index
      %c0_146 = arith.constant 0 : index
      %190 = vector.load %arg11[%c88_145, %c0_146] : memref<217x384xbf16, #tpu.memory_space<vmem>>, vector<8x321xbf16>
      tpu.vector_store %arg11[%c88_145, %c0_146], %189 {strides = array<i32>} : memref<217x384xbf16, #tpu.memory_space<vmem>>, vector<8x321xbf16>,
      %191 = vector.extract_strided_slice %184 {offsets = [0, 314], sizes = [8, 321], strides = [1, 1]} : vector<8x961xbf16> to vector<8x321xbf16>
      %c96_147 = arith.constant 96 : index
      %c0_148 = arith.constant 0 : index
      %192 = vector.load %arg11[%c96_147, %c0_148] : memref<217x384xbf16, #tpu.memory_space<vmem>>, vector<8x321xbf16>
      tpu.vector_store %arg11[%c96_147, %c0_148], %191 {strides = array<i32>} : memref<217x384xbf16, #tpu.memory_space<vmem>>, vector<8x321xbf16>,
      %193 = vector.extract_strided_slice %184 {offsets = [0, 320], sizes = [8, 321], strides = [1, 1]} : vector<8x961xbf16> to vector<8x321xbf16>
      %c104_149 = arith.constant 104 : index
      %c0_150 = arith.constant 0 : index
      %194 = vector.load %arg11[%c104_149, %c0_150] : memref<217x384xbf16, #tpu.memory_space<vmem>>, vector<8x321xbf16>
      tpu.vector_store %arg11[%c104_149, %c0_150], %193 {strides = array<i32>} : memref<217x384xbf16, #tpu.memory_space<vmem>>, vector<8x321xbf16>,
      %195 = vector.extract_strided_slice %184 {offsets = [0, 326], sizes = [8, 321], strides = [1, 1]} : vector<8x961xbf16> to vector<8x321xbf16>
      %c112_151 = arith.constant 112 : index
      %c0_152 = arith.constant 0 : index
      %196 = vector.load %arg11[%c112_151, %c0_152] : memref<217x384xbf16, #tpu.memory_space<vmem>>, vector<8x321xbf16>
      tpu.vector_store %arg11[%c112_151, %c0_152], %195 {strides = array<i32>} : memref<217x384xbf16, #tpu.memory_space<vmem>>, vector<8x321xbf16>,
      %197 = vector.extract_strided_slice %184 {offsets = [0, 500], sizes = [8, 321], strides = [1, 1]} : vector<8x961xbf16> to vector<8x321xbf16>
      %c120_153 = arith.constant 120 : index
      %c0_154 = arith.constant 0 : index
      %198 = vector.load %arg11[%c120_153, %c0_154] : memref<217x384xbf16, #tpu.memory_space<vmem>>, vector<8x321xbf16>
      tpu.vector_store %arg11[%c120_153, %c0_154], %197 {strides = array<i32>} : memref<217x384xbf16, #tpu.memory_space<vmem>>, vector<8x321xbf16>,
      %199 = vector.extract_strided_slice %184 {offsets = [0, 506], sizes = [8, 321], strides = [1, 1]} : vector<8x961xbf16> to vector<8x321xbf16>
      %c128_155 = arith.constant 128 : index
      %c0_156 = arith.constant 0 : index
      %200 = vector.load %arg11[%c128_155, %c0_156] : memref<217x384xbf16, #tpu.memory_space<vmem>>, vector<8x321xbf16>
      tpu.vector_store %arg11[%c128_155, %c0_156], %199 {strides = array<i32>} : memref<217x384xbf16, #tpu.memory_space<vmem>>, vector<8x321xbf16>,
      %201 = vector.extract_strided_slice %184 {offsets = [0, 512], sizes = [8, 321], strides = [1, 1]} : vector<8x961xbf16> to vector<8x321xbf16>
      %c136_157 = arith.constant 136 : index
      %c0_158 = arith.constant 0 : index
      %202 = vector.load %arg11[%c136_157, %c0_158] : memref<217x384xbf16, #tpu.memory_space<vmem>>, vector<8x321xbf16>
      tpu.vector_store %arg11[%c136_157, %c0_158], %201 {strides = array<i32>} : memref<217x384xbf16, #tpu.memory_space<vmem>>, vector<8x321xbf16>,
      %c0_i32_159 = arith.constant 0 : i32
      %203 = arith.cmpi sge, %arg12, %c0_i32_159 : i32
      %c7_i32 = arith.constant 7 : i32
      %204 = arith.cmpi slt, %arg12, %c7_i32 : i32
      %205 = arith.andi %203, %204 : i1
      %206 = arith.extui %205 : i1 to i32
      %c0_i32_160 = arith.constant 0 : i32
      %207 = arith.cmpi ne, %206, %c0_i32_160 : i32
      scf.if %207 {
        %c8_i32_217 = arith.constant 8 : i32
        %282 = arith.addi %arg12, %c8_i32_217 : i32
        %c0_218 = arith.constant 0 : index
        %283 = arith.index_cast %282 : i32 to index
        %c0_219 = arith.constant 0 : index
        %c0_220 = arith.constant 0 : index
        %284 = vector.load %arg1[%c0_218, %283, %c0_219, %c0_220] : memref<1x15x8x961xbf16, #tpu.memory_space<vmem>>, vector<1x1x8x961xbf16>
        %285 = vector.shape_cast %284 : vector<1x1x8x961xbf16> to vector<8x961xbf16>
        %286 = vector.extract_strided_slice %285 {offsets = [0, 128], sizes = [8, 321], strides = [1, 1]} : vector<8x961xbf16> to vector<8x321xbf16>
        %c144_221 = arith.constant 144 : index
        %c0_222 = arith.constant 0 : index
        %287 = vector.load %arg11[%c144_221, %c0_222] : memref<217x384xbf16, #tpu.memory_space<vmem>>, vector<8x321xbf16>
        tpu.vector_store %arg11[%c144_221, %c0_222], %286 {strides = array<i32>} : memref<217x384xbf16, #tpu.memory_space<vmem>>, vector<8x321xbf16>,
        %288 = vector.extract_strided_slice %285 {offsets = [0, 134], sizes = [8, 321], strides = [1, 1]} : vector<8x961xbf16> to vector<8x321xbf16>
        %c152_223 = arith.constant 152 : index
        %c0_224 = arith.constant 0 : index
        %289 = vector.load %arg11[%c152_223, %c0_224] : memref<217x384xbf16, #tpu.memory_space<vmem>>, vector<8x321xbf16>
        tpu.vector_store %arg11[%c152_223, %c0_224], %288 {strides = array<i32>} : memref<217x384xbf16, #tpu.memory_space<vmem>>, vector<8x321xbf16>,
        %290 = vector.extract_strided_slice %285 {offsets = [0, 140], sizes = [8, 321], strides = [1, 1]} : vector<8x961xbf16> to vector<8x321xbf16>
        %c160_225 = arith.constant 160 : index
        %c0_226 = arith.constant 0 : index
        %291 = vector.load %arg11[%c160_225, %c0_226] : memref<217x384xbf16, #tpu.memory_space<vmem>>, vector<8x321xbf16>
        tpu.vector_store %arg11[%c160_225, %c0_226], %290 {strides = array<i32>} : memref<217x384xbf16, #tpu.memory_space<vmem>>, vector<8x321xbf16>,
        %292 = vector.extract_strided_slice %285 {offsets = [0, 314], sizes = [8, 321], strides = [1, 1]} : vector<8x961xbf16> to vector<8x321xbf16>
        %c168_227 = arith.constant 168 : index
        %c0_228 = arith.constant 0 : index
        %293 = vector.load %arg11[%c168_227, %c0_228] : memref<217x384xbf16, #tpu.memory_space<vmem>>, vector<8x321xbf16>
        tpu.vector_store %arg11[%c168_227, %c0_228], %292 {strides = array<i32>} : memref<217x384xbf16, #tpu.memory_space<vmem>>, vector<8x321xbf16>,
        %294 = vector.extract_strided_slice %285 {offsets = [0, 320], sizes = [8, 321], strides = [1, 1]} : vector<8x961xbf16> to vector<8x321xbf16>
        %c176_229 = arith.constant 176 : index
        %c0_230 = arith.constant 0 : index
        %295 = vector.load %arg11[%c176_229, %c0_230] : memref<217x384xbf16, #tpu.memory_space<vmem>>, vector<8x321xbf16>
        tpu.vector_store %arg11[%c176_229, %c0_230], %294 {strides = array<i32>} : memref<217x384xbf16, #tpu.memory_space<vmem>>, vector<8x321xbf16>,
        %296 = vector.extract_strided_slice %285 {offsets = [0, 326], sizes = [8, 321], strides = [1, 1]} : vector<8x961xbf16> to vector<8x321xbf16>
        %c184_231 = arith.constant 184 : index
        %c0_232 = arith.constant 0 : index
        %297 = vector.load %arg11[%c184_231, %c0_232] : memref<217x384xbf16, #tpu.memory_space<vmem>>, vector<8x321xbf16>
        tpu.vector_store %arg11[%c184_231, %c0_232], %296 {strides = array<i32>} : memref<217x384xbf16, #tpu.memory_space<vmem>>, vector<8x321xbf16>,
        %298 = vector.extract_strided_slice %285 {offsets = [0, 500], sizes = [8, 321], strides = [1, 1]} : vector<8x961xbf16> to vector<8x321xbf16>
        %c192_233 = arith.constant 192 : index
        %c0_234 = arith.constant 0 : index
        %299 = vector.load %arg11[%c192_233, %c0_234] : memref<217x384xbf16, #tpu.memory_space<vmem>>, vector<8x321xbf16>
        tpu.vector_store %arg11[%c192_233, %c0_234], %298 {strides = array<i32>} : memref<217x384xbf16, #tpu.memory_space<vmem>>, vector<8x321xbf16>,
        %300 = vector.extract_strided_slice %285 {offsets = [0, 506], sizes = [8, 321], strides = [1, 1]} : vector<8x961xbf16> to vector<8x321xbf16>
        %c200_235 = arith.constant 200 : index
        %c0_236 = arith.constant 0 : index
        %301 = vector.load %arg11[%c200_235, %c0_236] : memref<217x384xbf16, #tpu.memory_space<vmem>>, vector<8x321xbf16>
        tpu.vector_store %arg11[%c200_235, %c0_236], %300 {strides = array<i32>} : memref<217x384xbf16, #tpu.memory_space<vmem>>, vector<8x321xbf16>,
        %302 = vector.extract_strided_slice %285 {offsets = [0, 512], sizes = [8, 321], strides = [1, 1]} : vector<8x961xbf16> to vector<8x321xbf16>
        %c208_237 = arith.constant 208 : index
        %c0_238 = arith.constant 0 : index
        %303 = vector.load %arg11[%c208_237, %c0_238] : memref<217x384xbf16, #tpu.memory_space<vmem>>, vector<8x321xbf16>
        tpu.vector_store %arg11[%c208_237, %c0_238], %302 {strides = array<i32>} : memref<217x384xbf16, #tpu.memory_space<vmem>>, vector<8x321xbf16>,
      } else {
      }
      %true_161 = arith.constant true
      %208 = arith.xori %205, %true_161 : i1
      %209 = arith.extui %208 : i1 to i32
      %c0_i32_162 = arith.constant 0 : i32
      %210 = arith.cmpi ne, %209, %c0_i32_162 : i32
      scf.if %210 {
        %cst_217 = arith.constant 0.000000e+00 : bf16
        %282 = vector.broadcast %cst_217 : bf16 to vector<72x321xbf16>
        %c144_218 = arith.constant 144 : index
        %c0_219 = arith.constant 0 : index
        %283 = vector.load %arg11[%c144_218, %c0_219] : memref<217x384xbf16, #tpu.memory_space<vmem>>, vector<72x321xbf16>
        tpu.vector_store %arg11[%c144_218, %c0_219], %282 {strides = array<i32>} : memref<217x384xbf16, #tpu.memory_space<vmem>>, vector<72x321xbf16>,
      } else {
      }
      %c0_163 = arith.constant 0 : index
      %c216_164 = arith.constant 216 : index
      %211 = vector.load %arg3[%c0_163, %c216_164] : memref<16x656xbf16, #tpu.memory_space<vmem>>, vector<16x216xbf16>
      %c0_165 = arith.constant 0 : index
      %c0_166 = arith.constant 0 : index
      %212 = vector.load %arg11[%c0_165, %c0_166] : memref<217x384xbf16, #tpu.memory_space<vmem>>, vector<216x384xbf16>
      %cst_167 = arith.constant dense<0.000000e+00> : vector<16x384xf32>
      %213 = tpu.matmul %211, %212, %cst_167 {dimension_numbers = #tpu.dot_dimension_numbers<[1], [0], [0], [1], [0, 0, 1, 1], [], []>} : vector<16x216xbf16>, vector<216x384xbf16>, vector<16x384xf32> -> vector<16x384xf32>
      %214 = vector.extract_strided_slice %88 {offsets = [1, 0], sizes = [1, 384], strides = [1, 1]} : vector<4x384xf32> to vector<1x384xf32>
      %215 = vector.broadcast %214 : vector<1x384xf32> to vector<16x384xf32>
      %216 = arith.mulf %213, %215 : vector<16x384xf32>
      %217 = arith.addf %172, %216 : vector<16x384xf32>
      %c8_i32 = arith.constant 8 : i32
      %218 = arith.cmpi sge, %arg12, %c8_i32 : i32
      %c11_i32_168 = arith.constant 11 : i32
      %219 = arith.cmpi slt, %arg12, %c11_i32_168 : i32
      %220 = arith.andi %218, %219 : i1
      %221 = arith.extui %220 : i1 to i32
      %c0_i32_169 = arith.constant 0 : i32
      %222 = arith.cmpi ne, %221, %c0_i32_169 : i32
      scf.if %222 {
        %c-8_i32 = arith.constant -8 : i32
        %282 = arith.addi %arg12, %c-8_i32 : i32
        %c0_217 = arith.constant 0 : index
        %283 = arith.index_cast %282 : i32 to index
        %c0_218 = arith.constant 0 : index
        %c0_219 = arith.constant 0 : index
        %284 = vector.load %arg1[%c0_217, %283, %c0_218, %c0_219] : memref<1x15x8x961xbf16, #tpu.memory_space<vmem>>, vector<1x1x8x961xbf16>
        %285 = vector.shape_cast %284 : vector<1x1x8x961xbf16> to vector<8x961xbf16>
        %286 = vector.extract_strided_slice %285 {offsets = [0, 0], sizes = [8, 321], strides = [1, 1]} : vector<8x961xbf16> to vector<8x321xbf16>
        %c0_220 = arith.constant 0 : index
        %c0_221 = arith.constant 0 : index
        %287 = vector.load %arg11[%c0_220, %c0_221] : memref<217x384xbf16, #tpu.memory_space<vmem>>, vector<8x321xbf16>
        tpu.vector_store %arg11[%c0_220, %c0_221], %286 {strides = array<i32>} : memref<217x384xbf16, #tpu.memory_space<vmem>>, vector<8x321xbf16>,
        %288 = vector.extract_strided_slice %285 {offsets = [0, 10], sizes = [8, 321], strides = [1, 1]} : vector<8x961xbf16> to vector<8x321xbf16>
        %c8_222 = arith.constant 8 : index
        %c0_223 = arith.constant 0 : index
        %289 = vector.load %arg11[%c8_222, %c0_223] : memref<217x384xbf16, #tpu.memory_space<vmem>>, vector<8x321xbf16>
        tpu.vector_store %arg11[%c8_222, %c0_223], %288 {strides = array<i32>} : memref<217x384xbf16, #tpu.memory_space<vmem>>, vector<8x321xbf16>,
        %290 = vector.extract_strided_slice %285 {offsets = [0, 20], sizes = [8, 321], strides = [1, 1]} : vector<8x961xbf16> to vector<8x321xbf16>
        %c16_224 = arith.constant 16 : index
        %c0_225 = arith.constant 0 : index
        %291 = vector.load %arg11[%c16_224, %c0_225] : memref<217x384xbf16, #tpu.memory_space<vmem>>, vector<8x321xbf16>
        tpu.vector_store %arg11[%c16_224, %c0_225], %290 {strides = array<i32>} : memref<217x384xbf16, #tpu.memory_space<vmem>>, vector<8x321xbf16>,
        %292 = vector.extract_strided_slice %285 {offsets = [0, 310], sizes = [8, 321], strides = [1, 1]} : vector<8x961xbf16> to vector<8x321xbf16>
        %c24_226 = arith.constant 24 : index
        %c0_227 = arith.constant 0 : index
        %293 = vector.load %arg11[%c24_226, %c0_227] : memref<217x384xbf16, #tpu.memory_space<vmem>>, vector<8x321xbf16>
        tpu.vector_store %arg11[%c24_226, %c0_227], %292 {strides = array<i32>} : memref<217x384xbf16, #tpu.memory_space<vmem>>, vector<8x321xbf16>,
        %294 = vector.extract_strided_slice %285 {offsets = [0, 320], sizes = [8, 321], strides = [1, 1]} : vector<8x961xbf16> to vector<8x321xbf16>
        %c32_228 = arith.constant 32 : index
        %c0_229 = arith.constant 0 : index
        %295 = vector.load %arg11[%c32_228, %c0_229] : memref<217x384xbf16, #tpu.memory_space<vmem>>, vector<8x321xbf16>
        tpu.vector_store %arg11[%c32_228, %c0_229], %294 {strides = array<i32>} : memref<217x384xbf16, #tpu.memory_space<vmem>>, vector<8x321xbf16>,
        %296 = vector.extract_strided_slice %285 {offsets = [0, 330], sizes = [8, 321], strides = [1, 1]} : vector<8x961xbf16> to vector<8x321xbf16>
        %c40_230 = arith.constant 40 : index
        %c0_231 = arith.constant 0 : index
        %297 = vector.load %arg11[%c40_230, %c0_231] : memref<217x384xbf16, #tpu.memory_space<vmem>>, vector<8x321xbf16>
        tpu.vector_store %arg11[%c40_230, %c0_231], %296 {strides = array<i32>} : memref<217x384xbf16, #tpu.memory_space<vmem>>, vector<8x321xbf16>,
        %298 = vector.extract_strided_slice %285 {offsets = [0, 620], sizes = [8, 321], strides = [1, 1]} : vector<8x961xbf16> to vector<8x321xbf16>
        %c48_232 = arith.constant 48 : index
        %c0_233 = arith.constant 0 : index
        %299 = vector.load %arg11[%c48_232, %c0_233] : memref<217x384xbf16, #tpu.memory_space<vmem>>, vector<8x321xbf16>
        tpu.vector_store %arg11[%c48_232, %c0_233], %298 {strides = array<i32>} : memref<217x384xbf16, #tpu.memory_space<vmem>>, vector<8x321xbf16>,
        %300 = vector.extract_strided_slice %285 {offsets = [0, 630], sizes = [8, 321], strides = [1, 1]} : vector<8x961xbf16> to vector<8x321xbf16>
        %c56_234 = arith.constant 56 : index
        %c0_235 = arith.constant 0 : index
        %301 = vector.load %arg11[%c56_234, %c0_235] : memref<217x384xbf16, #tpu.memory_space<vmem>>, vector<8x321xbf16>
        tpu.vector_store %arg11[%c56_234, %c0_235], %300 {strides = array<i32>} : memref<217x384xbf16, #tpu.memory_space<vmem>>, vector<8x321xbf16>,
        %302 = vector.extract_strided_slice %285 {offsets = [0, 640], sizes = [8, 321], strides = [1, 1]} : vector<8x961xbf16> to vector<8x321xbf16>
        %c64_236 = arith.constant 64 : index
        %c0_237 = arith.constant 0 : index
        %303 = vector.load %arg11[%c64_236, %c0_237] : memref<217x384xbf16, #tpu.memory_space<vmem>>, vector<8x321xbf16>
        tpu.vector_store %arg11[%c64_236, %c0_237], %302 {strides = array<i32>} : memref<217x384xbf16, #tpu.memory_space<vmem>>, vector<8x321xbf16>,
      } else {
      }
      %true_170 = arith.constant true
      %223 = arith.xori %220, %true_170 : i1
      %224 = arith.extui %223 : i1 to i32
      %c0_i32_171 = arith.constant 0 : i32
      %225 = arith.cmpi ne, %224, %c0_i32_171 : i32
      scf.if %225 {
        %cst_217 = arith.constant 0.000000e+00 : bf16
        %282 = vector.broadcast %cst_217 : bf16 to vector<72x321xbf16>
        %c0_218 = arith.constant 0 : index
        %c0_219 = arith.constant 0 : index
        %283 = vector.load %arg11[%c0_218, %c0_219] : memref<217x384xbf16, #tpu.memory_space<vmem>>, vector<72x321xbf16>
        tpu.vector_store %arg11[%c0_218, %c0_219], %282 {strides = array<i32>} : memref<217x384xbf16, #tpu.memory_space<vmem>>, vector<72x321xbf16>,
      } else {
      }
      %c2_i32_172 = arith.constant 2 : i32
      %226 = arith.addi %arg12, %c2_i32_172 : i32
      %c0_173 = arith.constant 0 : index
      %227 = arith.index_cast %226 : i32 to index
      %c0_174 = arith.constant 0 : index
      %c0_175 = arith.constant 0 : index
      %228 = vector.load %arg1[%c0_173, %227, %c0_174, %c0_175] : memref<1x15x8x961xbf16, #tpu.memory_space<vmem>>, vector<1x1x8x961xbf16>
      %229 = vector.shape_cast %228 : vector<1x1x8x961xbf16> to vector<8x961xbf16>
      %230 = vector.extract_strided_slice %229 {offsets = [0, 0], sizes = [8, 321], strides = [1, 1]} : vector<8x961xbf16> to vector<8x321xbf16>
      %c72_176 = arith.constant 72 : index
      %c0_177 = arith.constant 0 : index
      %231 = vector.load %arg11[%c72_176, %c0_177] : memref<217x384xbf16, #tpu.memory_space<vmem>>, vector<8x321xbf16>
      tpu.vector_store %arg11[%c72_176, %c0_177], %230 {strides = array<i32>} : memref<217x384xbf16, #tpu.memory_space<vmem>>, vector<8x321xbf16>,
      %232 = vector.extract_strided_slice %229 {offsets = [0, 10], sizes = [8, 321], strides = [1, 1]} : vector<8x961xbf16> to vector<8x321xbf16>
      %c80_178 = arith.constant 80 : index
      %c0_179 = arith.constant 0 : index
      %233 = vector.load %arg11[%c80_178, %c0_179] : memref<217x384xbf16, #tpu.memory_space<vmem>>, vector<8x321xbf16>
      tpu.vector_store %arg11[%c80_178, %c0_179], %232 {strides = array<i32>} : memref<217x384xbf16, #tpu.memory_space<vmem>>, vector<8x321xbf16>,
      %234 = vector.extract_strided_slice %229 {offsets = [0, 20], sizes = [8, 321], strides = [1, 1]} : vector<8x961xbf16> to vector<8x321xbf16>
      %c88_180 = arith.constant 88 : index
      %c0_181 = arith.constant 0 : index
      %235 = vector.load %arg11[%c88_180, %c0_181] : memref<217x384xbf16, #tpu.memory_space<vmem>>, vector<8x321xbf16>
      tpu.vector_store %arg11[%c88_180, %c0_181], %234 {strides = array<i32>} : memref<217x384xbf16, #tpu.memory_space<vmem>>, vector<8x321xbf16>,
      %236 = vector.extract_strided_slice %229 {offsets = [0, 310], sizes = [8, 321], strides = [1, 1]} : vector<8x961xbf16> to vector<8x321xbf16>
      %c96_182 = arith.constant 96 : index
      %c0_183 = arith.constant 0 : index
      %237 = vector.load %arg11[%c96_182, %c0_183] : memref<217x384xbf16, #tpu.memory_space<vmem>>, vector<8x321xbf16>
      tpu.vector_store %arg11[%c96_182, %c0_183], %236 {strides = array<i32>} : memref<217x384xbf16, #tpu.memory_space<vmem>>, vector<8x321xbf16>,
      %238 = vector.extract_strided_slice %229 {offsets = [0, 320], sizes = [8, 321], strides = [1, 1]} : vector<8x961xbf16> to vector<8x321xbf16>
      %c104_184 = arith.constant 104 : index
      %c0_185 = arith.constant 0 : index
      %239 = vector.load %arg11[%c104_184, %c0_185] : memref<217x384xbf16, #tpu.memory_space<vmem>>, vector<8x321xbf16>
      tpu.vector_store %arg11[%c104_184, %c0_185], %238 {strides = array<i32>} : memref<217x384xbf16, #tpu.memory_space<vmem>>, vector<8x321xbf16>,
      %240 = vector.extract_strided_slice %229 {offsets = [0, 330], sizes = [8, 321], strides = [1, 1]} : vector<8x961xbf16> to vector<8x321xbf16>
      %c112_186 = arith.constant 112 : index
      %c0_187 = arith.constant 0 : index
      %241 = vector.load %arg11[%c112_186, %c0_187] : memref<217x384xbf16, #tpu.memory_space<vmem>>, vector<8x321xbf16>
      tpu.vector_store %arg11[%c112_186, %c0_187], %240 {strides = array<i32>} : memref<217x384xbf16, #tpu.memory_space<vmem>>, vector<8x321xbf16>,
      %242 = vector.extract_strided_slice %229 {offsets = [0, 620], sizes = [8, 321], strides = [1, 1]} : vector<8x961xbf16> to vector<8x321xbf16>
      %c120_188 = arith.constant 120 : index
      %c0_189 = arith.constant 0 : index
      %243 = vector.load %arg11[%c120_188, %c0_189] : memref<217x384xbf16, #tpu.memory_space<vmem>>, vector<8x321xbf16>
      tpu.vector_store %arg11[%c120_188, %c0_189], %242 {strides = array<i32>} : memref<217x384xbf16, #tpu.memory_space<vmem>>, vector<8x321xbf16>,
      %244 = vector.extract_strided_slice %229 {offsets = [0, 630], sizes = [8, 321], strides = [1, 1]} : vector<8x961xbf16> to vector<8x321xbf16>
      %c128_190 = arith.constant 128 : index
      %c0_191 = arith.constant 0 : index
      %245 = vector.load %arg11[%c128_190, %c0_191] : memref<217x384xbf16, #tpu.memory_space<vmem>>, vector<8x321xbf16>
      tpu.vector_store %arg11[%c128_190, %c0_191], %244 {strides = array<i32>} : memref<217x384xbf16, #tpu.memory_space<vmem>>, vector<8x321xbf16>,
      %246 = vector.extract_strided_slice %229 {offsets = [0, 640], sizes = [8, 321], strides = [1, 1]} : vector<8x961xbf16> to vector<8x321xbf16>
      %c136_192 = arith.constant 136 : index
      %c0_193 = arith.constant 0 : index
      %247 = vector.load %arg11[%c136_192, %c0_193] : memref<217x384xbf16, #tpu.memory_space<vmem>>, vector<8x321xbf16>
      tpu.vector_store %arg11[%c136_192, %c0_193], %246 {strides = array<i32>} : memref<217x384xbf16, #tpu.memory_space<vmem>>, vector<8x321xbf16>,
      %c0_i32_194 = arith.constant 0 : i32
      %248 = arith.cmpi sge, %arg12, %c0_i32_194 : i32
      %c3_i32_195 = arith.constant 3 : i32
      %249 = arith.cmpi slt, %arg12, %c3_i32_195 : i32
      %250 = arith.andi %248, %249 : i1
      %251 = arith.extui %250 : i1 to i32
      %c0_i32_196 = arith.constant 0 : i32
      %252 = arith.cmpi ne, %251, %c0_i32_196 : i32
      scf.if %252 {
        %c12_i32 = arith.constant 12 : i32
        %282 = arith.addi %arg12, %c12_i32 : i32
        %c0_217 = arith.constant 0 : index
        %283 = arith.index_cast %282 : i32 to index
        %c0_218 = arith.constant 0 : index
        %c0_219 = arith.constant 0 : index
        %284 = vector.load %arg1[%c0_217, %283, %c0_218, %c0_219] : memref<1x15x8x961xbf16, #tpu.memory_space<vmem>>, vector<1x1x8x961xbf16>
        %285 = vector.shape_cast %284 : vector<1x1x8x961xbf16> to vector<8x961xbf16>
        %286 = vector.extract_strided_slice %285 {offsets = [0, 0], sizes = [8, 321], strides = [1, 1]} : vector<8x961xbf16> to vector<8x321xbf16>
        %c144_220 = arith.constant 144 : index
        %c0_221 = arith.constant 0 : index
        %287 = vector.load %arg11[%c144_220, %c0_221] : memref<217x384xbf16, #tpu.memory_space<vmem>>, vector<8x321xbf16>
        tpu.vector_store %arg11[%c144_220, %c0_221], %286 {strides = array<i32>} : memref<217x384xbf16, #tpu.memory_space<vmem>>, vector<8x321xbf16>,
        %288 = vector.extract_strided_slice %285 {offsets = [0, 10], sizes = [8, 321], strides = [1, 1]} : vector<8x961xbf16> to vector<8x321xbf16>
        %c152_222 = arith.constant 152 : index
        %c0_223 = arith.constant 0 : index
        %289 = vector.load %arg11[%c152_222, %c0_223] : memref<217x384xbf16, #tpu.memory_space<vmem>>, vector<8x321xbf16>
        tpu.vector_store %arg11[%c152_222, %c0_223], %288 {strides = array<i32>} : memref<217x384xbf16, #tpu.memory_space<vmem>>, vector<8x321xbf16>,
        %290 = vector.extract_strided_slice %285 {offsets = [0, 20], sizes = [8, 321], strides = [1, 1]} : vector<8x961xbf16> to vector<8x321xbf16>
        %c160_224 = arith.constant 160 : index
        %c0_225 = arith.constant 0 : index
        %291 = vector.load %arg11[%c160_224, %c0_225] : memref<217x384xbf16, #tpu.memory_space<vmem>>, vector<8x321xbf16>
        tpu.vector_store %arg11[%c160_224, %c0_225], %290 {strides = array<i32>} : memref<217x384xbf16, #tpu.memory_space<vmem>>, vector<8x321xbf16>,
        %292 = vector.extract_strided_slice %285 {offsets = [0, 310], sizes = [8, 321], strides = [1, 1]} : vector<8x961xbf16> to vector<8x321xbf16>
        %c168_226 = arith.constant 168 : index
        %c0_227 = arith.constant 0 : index
        %293 = vector.load %arg11[%c168_226, %c0_227] : memref<217x384xbf16, #tpu.memory_space<vmem>>, vector<8x321xbf16>
        tpu.vector_store %arg11[%c168_226, %c0_227], %292 {strides = array<i32>} : memref<217x384xbf16, #tpu.memory_space<vmem>>, vector<8x321xbf16>,
        %294 = vector.extract_strided_slice %285 {offsets = [0, 320], sizes = [8, 321], strides = [1, 1]} : vector<8x961xbf16> to vector<8x321xbf16>
        %c176_228 = arith.constant 176 : index
        %c0_229 = arith.constant 0 : index
        %295 = vector.load %arg11[%c176_228, %c0_229] : memref<217x384xbf16, #tpu.memory_space<vmem>>, vector<8x321xbf16>
        tpu.vector_store %arg11[%c176_228, %c0_229], %294 {strides = array<i32>} : memref<217x384xbf16, #tpu.memory_space<vmem>>, vector<8x321xbf16>,
        %296 = vector.extract_strided_slice %285 {offsets = [0, 330], sizes = [8, 321], strides = [1, 1]} : vector<8x961xbf16> to vector<8x321xbf16>
        %c184_230 = arith.constant 184 : index
        %c0_231 = arith.constant 0 : index
        %297 = vector.load %arg11[%c184_230, %c0_231] : memref<217x384xbf16, #tpu.memory_space<vmem>>, vector<8x321xbf16>
        tpu.vector_store %arg11[%c184_230, %c0_231], %296 {strides = array<i32>} : memref<217x384xbf16, #tpu.memory_space<vmem>>, vector<8x321xbf16>,
        %298 = vector.extract_strided_slice %285 {offsets = [0, 620], sizes = [8, 321], strides = [1, 1]} : vector<8x961xbf16> to vector<8x321xbf16>
        %c192_232 = arith.constant 192 : index
        %c0_233 = arith.constant 0 : index
        %299 = vector.load %arg11[%c192_232, %c0_233] : memref<217x384xbf16, #tpu.memory_space<vmem>>, vector<8x321xbf16>
        tpu.vector_store %arg11[%c192_232, %c0_233], %298 {strides = array<i32>} : memref<217x384xbf16, #tpu.memory_space<vmem>>, vector<8x321xbf16>,
        %300 = vector.extract_strided_slice %285 {offsets = [0, 630], sizes = [8, 321], strides = [1, 1]} : vector<8x961xbf16> to vector<8x321xbf16>
        %c200_234 = arith.constant 200 : index
        %c0_235 = arith.constant 0 : index
        %301 = vector.load %arg11[%c200_234, %c0_235] : memref<217x384xbf16, #tpu.memory_space<vmem>>, vector<8x321xbf16>
        tpu.vector_store %arg11[%c200_234, %c0_235], %300 {strides = array<i32>} : memref<217x384xbf16, #tpu.memory_space<vmem>>, vector<8x321xbf16>,
        %302 = vector.extract_strided_slice %285 {offsets = [0, 640], sizes = [8, 321], strides = [1, 1]} : vector<8x961xbf16> to vector<8x321xbf16>
        %c208_236 = arith.constant 208 : index
        %c0_237 = arith.constant 0 : index
        %303 = vector.load %arg11[%c208_236, %c0_237] : memref<217x384xbf16, #tpu.memory_space<vmem>>, vector<8x321xbf16>
        tpu.vector_store %arg11[%c208_236, %c0_237], %302 {strides = array<i32>} : memref<217x384xbf16, #tpu.memory_space<vmem>>, vector<8x321xbf16>,
      } else {
      }
      %true_197 = arith.constant true
      %253 = arith.xori %250, %true_197 : i1
      %254 = arith.extui %253 : i1 to i32
      %c0_i32_198 = arith.constant 0 : i32
      %255 = arith.cmpi ne, %254, %c0_i32_198 : i32
      scf.if %255 {
        %cst_217 = arith.constant 0.000000e+00 : bf16
        %282 = vector.broadcast %cst_217 : bf16 to vector<72x321xbf16>
        %c144_218 = arith.constant 144 : index
        %c0_219 = arith.constant 0 : index
        %283 = vector.load %arg11[%c144_218, %c0_219] : memref<217x384xbf16, #tpu.memory_space<vmem>>, vector<72x321xbf16>
        tpu.vector_store %arg11[%c144_218, %c0_219], %282 {strides = array<i32>} : memref<217x384xbf16, #tpu.memory_space<vmem>>, vector<72x321xbf16>,
      } else {
      }
      %c0_199 = arith.constant 0 : index
      %c432 = arith.constant 432 : index
      %256 = vector.load %arg3[%c0_199, %c432] : memref<16x656xbf16, #tpu.memory_space<vmem>>, vector<16x216xbf16>
      %c0_200 = arith.constant 0 : index
      %c0_201 = arith.constant 0 : index
      %257 = vector.load %arg11[%c0_200, %c0_201] : memref<217x384xbf16, #tpu.memory_space<vmem>>, vector<216x384xbf16>
      %cst_202 = arith.constant dense<0.000000e+00> : vector<16x384xf32>
      %258 = tpu.matmul %256, %257, %cst_202 {dimension_numbers = #tpu.dot_dimension_numbers<[1], [0], [0], [1], [0, 0, 1, 1], [], []>} : vector<16x216xbf16>, vector<216x384xbf16>, vector<16x384xf32> -> vector<16x384xf32>
      %259 = vector.extract_strided_slice %88 {offsets = [2, 0], sizes = [1, 384], strides = [1, 1]} : vector<4x384xf32> to vector<1x384xf32>
      %260 = vector.broadcast %259 : vector<1x384xf32> to vector<16x384xf32>
      %261 = arith.mulf %258, %260 : vector<16x384xf32>
      %262 = arith.addf %217, %261 : vector<16x384xf32>
      %c2_i32_203 = arith.constant 2 : i32
      %263 = arith.addi %arg12, %c2_i32_203 : i32
      %c0_204 = arith.constant 0 : index
      %264 = arith.index_cast %263 : i32 to index
      %c0_205 = arith.constant 0 : index
      %c0_206 = arith.constant 0 : index
      %265 = vector.load %arg1[%c0_204, %264, %c0_205, %c0_206] : memref<1x15x8x961xbf16, #tpu.memory_space<vmem>>, vector<1x1x8x961xbf16>
      %266 = vector.shape_cast %265 : vector<1x1x8x961xbf16> to vector<8x961xbf16>
      %267 = vector.extract_strided_slice %266 {offsets = [0, 320], sizes = [8, 321], strides = [1, 1]} : vector<8x961xbf16> to vector<8x321xbf16>
      %c0_207 = arith.constant 0 : index
      %c0_208 = arith.constant 0 : index
      %268 = vector.load %arg11[%c0_207, %c0_208] : memref<217x384xbf16, #tpu.memory_space<vmem>>, vector<8x321xbf16>
      tpu.vector_store %arg11[%c0_207, %c0_208], %267 {strides = array<i32>} : memref<217x384xbf16, #tpu.memory_space<vmem>>, vector<8x321xbf16>,
      %c0_209 = arith.constant 0 : index
      %c648 = arith.constant 648 : index
      %269 = vector.load %arg3[%c0_209, %c648] : memref<16x656xbf16, #tpu.memory_space<vmem>>, vector<16x8xbf16>
      %c0_210 = arith.constant 0 : index
      %c0_211 = arith.constant 0 : index
      %270 = vector.load %arg11[%c0_210, %c0_211] : memref<217x384xbf16, #tpu.memory_space<vmem>>, vector<8x384xbf16>
      %cst_212 = arith.constant dense<0.000000e+00> : vector<16x384xf32>
      %271 = tpu.matmul %269, %270, %cst_212 {dimension_numbers = #tpu.dot_dimension_numbers<[1], [0], [0], [1], [0, 0, 1, 1], [], []>} : vector<16x8xbf16>, vector<8x384xbf16>, vector<16x384xf32> -> vector<16x384xf32>
      %272 = vector.extract_strided_slice %88 {offsets = [3, 0], sizes = [1, 384], strides = [1, 1]} : vector<4x384xf32> to vector<1x384xf32>
      %273 = vector.broadcast %272 : vector<1x384xf32> to vector<16x384xf32>
      %274 = arith.mulf %271, %273 : vector<16x384xf32>
      %275 = arith.addf %262, %274 : vector<16x384xf32>
      %cst_213 = arith.constant 0.000000e+00 : f32
      %276 = vector.broadcast %cst_213 : f32 to vector<16x384xf32>
      %277 = arith.maximumf %275, %276 : vector<16x384xf32>
      %c0_214 = arith.constant 0 : index
      %278 = arith.index_cast %arg12 : i32 to index
      %c0_215 = arith.constant 0 : index
      %c0_216 = arith.constant 0 : index
      %279 = vector.load %arg10[%c0_214, %278, %c0_215, %c0_216] : memref<1x11x16x384xf32, #tpu.memory_space<vmem>>, vector<1x1x16x384xf32>
      %280 = vector.shape_cast %279 : vector<1x1x16x384xf32> to vector<16x384xf32>
      %281 = vector.shape_cast %277 : vector<16x384xf32> to vector<1x1x16x384xf32>
      tpu.vector_store %arg10[%c0_214, %278, %c0_215, %c0_216], %281 {strides = array<i32>} : memref<1x11x16x384xf32, #tpu.memory_space<vmem>>, vector<1x1x16x384xf32>,
    }
    %c11_i32_0 = arith.constant 11 : i32
    return
  }
  func.func @transform_0(%arg0: i32) -> (i32, i32, i32, i32) {
    %c0_i32 = arith.constant 0 : i32
    %c0_i32_0 = arith.constant 0 : i32
    %c0_i32_1 = arith.constant 0 : i32
    %c0_i32_2 = arith.constant 0 : i32
    return %arg0, %c0_i32, %c0_i32_0, %c0_i32_1 : i32, i32, i32, i32
  }
  func.func @transform_1(%arg0: i32) -> (i32, i32, i32, i32) {
    %c0_i32 = arith.constant 0 : i32
    %c0_i32_0 = arith.constant 0 : i32
    %c0_i32_1 = arith.constant 0 : i32
    %c0_i32_2 = arith.constant 0 : i32
    return %arg0, %c0_i32, %c0_i32_0, %c0_i32_1 : i32, i32, i32, i32
  }
  func.func @transform_2(%arg0: i32) -> (i32, i32) {
    %c0_i32 = arith.constant 0 : i32
    %c0_i32_0 = arith.constant 0 : i32
    %c0_i32_1 = arith.constant 0 : i32
    return %c0_i32, %c0_i32_0 : i32, i32
  }
  func.func @transform_3(%arg0: i32) -> (i32, i32) {
    %c0_i32 = arith.constant 0 : i32
    %c0_i32_0 = arith.constant 0 : i32
    %c0_i32_1 = arith.constant 0 : i32
    return %c0_i32, %c0_i32_0 : i32, i32
  }
  func.func @transform_4(%arg0: i32) -> (i32, i32) {
    %c0_i32 = arith.constant 0 : i32
    %c0_i32_0 = arith.constant 0 : i32
    %c0_i32_1 = arith.constant 0 : i32
    return %c0_i32, %c0_i32_0 : i32, i32
  }
  func.func @transform_5(%arg0: i32) -> (i32, i32) {
    %c0_i32 = arith.constant 0 : i32
    %c0_i32_0 = arith.constant 0 : i32
    %c0_i32_1 = arith.constant 0 : i32
    return %c0_i32, %c0_i32_0 : i32, i32
  }
  func.func @transform_6(%arg0: i32) -> (i32, i32) {
    %c0_i32 = arith.constant 0 : i32
    %c0_i32_0 = arith.constant 0 : i32
    %c0_i32_1 = arith.constant 0 : i32
    return %c0_i32, %c0_i32_0 : i32, i32
  }
  func.func @transform_7(%arg0: i32) -> (i32, i32) {
    %c0_i32 = arith.constant 0 : i32
    %c0_i32_0 = arith.constant 0 : i32
    %c0_i32_1 = arith.constant 0 : i32
    return %c0_i32, %c0_i32_0 : i32, i32
  }
  func.func @transform_8(%arg0: i32) -> (i32, i32) {
    %c0_i32 = arith.constant 0 : i32
    %c0_i32_0 = arith.constant 0 : i32
    %c0_i32_1 = arith.constant 0 : i32
    return %c0_i32, %c0_i32_0 : i32, i32
  }
  func.func @transform_9(%arg0: i32) -> (i32, i32, i32, i32) {
    %c0_i32 = arith.constant 0 : i32
    %c0_i32_0 = arith.constant 0 : i32
    %c0_i32_1 = arith.constant 0 : i32
    %c0_i32_2 = arith.constant 0 : i32
    return %arg0, %c0_i32, %c0_i32_0, %c0_i32_1 : i32, i32, i32, i32
  }
}

</mosaic_0001>

<bundles_post_ra>
// kernel: autofocus_forward.2
= control target key start
LH: loop header
LB: loop body
LE: loop exit
PB: predicated region body
PF: predicated region fallthrough
CT: control target
= control target key end

     0   :  { %s1063_s9 = smov 0   ;;  %s1229_s0 = inlined_call_operand.vmem [shape: bf16[2,19,4,361], index: 0, kind: input, shape index: {}]   ;;  %s1230_s1 = inlined_call_operand.vmem [shape: bf16[8,109], index: 1, kind: input, shape index: {}]   ;;  %s1231_s2 = inlined_call_operand.vmem [shape: bf16[2,15,8,384], index: 2, kind: output, shape index: {}]  }
   0x1 LB: > { %s888_s10 = sadd.s32 4294967295, %s1029_s9   ;;  %p892_p0 = scmp.ge.s32.totalorder %s1029_s9, 1  ;;  %s1029_s9 = sphi %s1063_s9, %s12_s9  }
   0x2   : > { %p112_p1 = scmp.lt.s32.totalorder %s1029_s9, 3 }
   0x4   : > { %p113_p2 = pnand %p892_p0, %p112_p1 }
   0x5   : > { %p134_p3 = scmp.lt.s32.totalorder (!%p113_p2), %s888_s10, 1  ;;  %s1081_s19 = smov (!%p113_p2), 0  }
   0x6   : > { %116 = sbr.rel (%p113_p2) target bundleno = 449 (0x1c1), region = 28 }
   0xb   : > { %vm146_vm0 = vcmask 1042434   ;;  %vm147_vm1 = vsmask.f32 2304  ;;  %vm149_vm2 = vcmask 1046534   ;;  %vm150_vm4 = vsmask.f32 6400 }
   0xc   : > { %vm148_vm3 = vmand %vm146_vm0, %vm147_vm1  ;;  %v153_v0 = vld [vmem:[#allocation2 + $0x9c] sm:$0x44]  ;;  %v156_v1 = vld [vmem:[#allocation2 + $0xa4] sm:$0x4]  ;;  %s1233_s10 = smov (!%p134_p3, %s888_s10), 1 }
   0xd   : > { %vm151_vm5 = vmand %vm149_vm2, %vm150_vm4  ;;  %v157_v2 = vsel %vm148_vm3, 1065369472, %v156_v1  ;;  %s959_s11 = smul.u32 114, %s1233_s10 }
   0xe   : > { %vm152_vm6 = vmor %vm151_vm5, %vm148_vm3  ;;  %158 = vst [vmem:[#allocation2 + $0xa4] sm:$0x4] %v157_v2  ;;  %s960_s12 = smul.u32 180, %s1233_s10 }
   0xf   : > { %v154_v3 = vsel %vm152_vm6, 1065369472, %v153_v0  ;;  %s1074_s15 = scalar_lea.vmem %s1229_s0, %s959_s11 }
  0x10   : > { %155 = vst [vmem:[#allocation2 + $0x9c] sm:$0x44] %v154_v3  ;;  %s1079_s18 = scalar_lea.vmem %s1231_s2, %s960_s12 }
  0x11 LB: >> { %v174_v4 = vlaneseq  ;;  %v1035_v5 = vmov 1983009808   ;;  %s929_s20 = smul.u32 6, %s1033_s19  ;;  %vm211_vm7 = vcmask 199682   ;;  %s1036_s22 = smov 50   ;;  %vm188_vm8 = vcmask 197632   ;;  %s1033_s19 = sphi %s1081_s19, %s164_s19  }
  0x12   : >> { %v172_v6 = vunpack.c.l.s4 %v1035_v5  ;;  %s1037_s23 = smov 52   ;;  %s1038_s24 = smov 48   ;;  %v1039_v24 = vmov 0.0   ;;  %vm1045_vm9 = vmmov 0   ;;  %v1046_v29 = vmov 0  }
  0x13   : >> { %v175_v7 = vshrl.u32 %v174_v4, 7  ;;  %s167_s21 = scalar_lea.vmem %s1074_s15, %s929_s20  ;;  %941 = vmatprep.subr.bf16.mxu1 %v1039_v24  ;;  %s1040_s25 = smov 124   ;;  %955 = vmatprep.mubr.msk.bf16.mxu1 %vm1045_vm9, %v1039_v24  ;;  %vm204_vm10 = vcmask 1043456   ;;  %vm285_vm11 = vcmask 408576   ;;  %vm298_vm12 = vcmask 392192  }
  0x14   : >> { %v173_v8 = vunpack.c.0.s8 %v172_v6  ;;  %v899_v10 = vld [vmem:[%s167_s21 + $0x18] sm:$0x3f]  ;;  %v897_v11 = vld [vmem:[%s167_s21 + $0xc] sm:$0x3f]  ;;  %v168_v15 = vld [vmem:[%s167_s21] sm:$0x3f]  ;;  %749 = vmatprep.mubr.bf16.mxu0 %v1046_v29 }
  0x15   : >> { %900 = vst.sshfl [vmem:[#allocation2 + $0x6c] sm:$0xf pattern:$0x76325410] %v899_v10  ;;  %v458_v12 = vcombine.low %v899_v10, %v899_v10  ;;  %v439_v13 = vcombine.high %v899_v10, %v899_v10  ;;  %v310_v14 = vcombine.low %v897_v11, %v897_v11  ;;  %v170_v18 = vcombine.high %v168_v15, %v168_v15  ;;  %s1041_s26 = smov 90   ;;  %s1042_s27 = smov 88  }
  0x16   : >> { %v1088_v9 = vsub.s32 %v173_v8, %v175_v7  ;;  %896 = vst.sshfl [vmem:[#allocation2] sm:$0xf pattern:$0x76325410] %v168_v15  ;;  %v190_v22 = vcombine.low %v168_v15, %v168_v15  ;;  %v329_v25 = vcombine.high %v897_v11, %v897_v11  ;;  %s1043_s28 = smov 86   ;;  %s1044_s29 = smov 126  }
  0x17   : >> { %898 = vst.sshfl [vmem:[#allocation2 + $0x30] sm:$0xf0 pattern:$0x76325410] %v310_v14  ;;  %vm272_vm13 = vcmask 424960   ;;  %vm704_vm14 = vcmask 1045504  }
  0x18   : >> { %v446_v16 = vrot.slane %v899_v10, %v1088_v9  ;;  %v324_v17 = vrot.slane %v897_v11, %v1088_v9  ;;  %v453_v19 = vrot.slane %v439_v13, %v1088_v9  ;;  %v465_v20 = vrot.slane %v458_v12, %v1088_v9  ;;  %s932_s4 = smul.u32 12, %s1033_s19  ;;  %s164_s19 = sadd.s32 1, %s1033_s19  }
  0x19   : >> { %v184_v21 = vrot.slane %v170_v18, %v1088_v9  ;;  %v197_v23 = vrot.slane %v190_v22, %v1088_v9  ;;  %v336_v26 = vrot.slane %v329_v25, %v1088_v9  ;;  %v317_v27 = vrot.slane %v310_v14, %v1088_v9  ;;  %p161_p4 = scmp.ge.s32.totalorder %s164_s19, 15  }
  0x1a   : >> { %540 = vrot.lane.b32.xlu1 %v446_v16, %s1036_s22  ;;  %526 = vrot.lane.b32.xlu0 %v446_v16, %s1037_s23  ;;  %328 = vst.msk [vmem:[#allocation2 + $0x38] sm:$0xc] %vm211_vm7, %v324_v17  ;;  %v177_v28 = vrot.slane %v168_v15, %v1088_v9  ;;  %vm220_vm15 = vcmask 1014784   ;;  %vm705_vm0 = vcmask 1046528   ;;  %v1047_v52 = vmov 65535   ;;  %s815_s5 = scalar_lea.vmem %s1079_s18, %s932_s4 }
  0x1b   : >> { %457 = vst.msk [vmem:[#allocation2 + $0x74] sm:$0x3] %vm188_vm8, %v453_v19  ;;  %189 = vst.msk [vmem:[#allocation2 + $0x8] sm:$0x3] %vm188_vm8, %v184_v21  ;;  %v706_v53 = vsel %vm704_vm14, 4294967295, %v1047_v52  ;;  %vm233_vm1 = vcmask 736256  }
  0x1c   : >> { %v707_v58 = vsel %vm705_vm0, %v706_v53, 0  ;;  %vm246_vm2 = vcmask 719872   ;;  %vm259_vm3 = vcmask 703488   ;;  %vm206_vm4 = vcmask 1031168  }
  0x1d   : >> { %vm700_vm5 = vcmask 891904  }
  0x1e   : >> { %538 = vrot.lane.b32.xlu1 %v465_v20, %s1036_s22  ;;  %550 = vrot.lane.b32.xlu0 %v446_v16, %s1038_s24 }
  0x22   : >> { %552 = vrot.lane.b32.xlu1 %v453_v19, %s1038_s24  ;;  %528 = vrot.lane.b32.xlu0 %v453_v19, %s1037_s23 }
  0x26   : >> { %480 = vrot.lane.b32.xlu1 %v453_v19, %s1040_s25  ;;  %478 = vrot.lane.b32.xlu0 %v446_v16, %s1040_s25 }
  0x2a   : >> { %492 = vrot.lane.b32.xlu1 %v446_v16, %s1041_s26  ;;  %490 = vrot.lane.b32.xlu0 %v465_v20, %s1041_s26 }
  0x2e   : >> { %504 = vrot.lane.b32.xlu1 %v453_v19, %s1042_s27  ;;  %502 = vrot.lane.b32.xlu0 %v446_v16, %s1042_s27 }
  0x32   : >> { %516 = vrot.lane.b32.xlu1 %v446_v16, %s1043_s28  ;;  %514 = vrot.lane.b32.xlu0 %v465_v20, %s1043_s28 }
  0x36   : >> { %411 = vrot.lane.b32.xlu1 %v336_v26, %s1036_s22  ;;  %409 = vrot.lane.b32.xlu0 %v324_v17, %s1036_s22 }
  0x3a   : >> { %423 = vrot.lane.b32.xlu1 %v324_v17, %s1038_s24  ;;  %421 = vrot.lane.b32.xlu0 %v317_v27, %s1038_s24 }
  0x3e   : >> { %468 = vrot.lane.b32.xlu1 %v446_v16, %s1044_s29  ;;  %466 = vrot.lane.b32.xlu0 %v465_v20, %s1044_s29 }
  0x42   : >> { %363 = vrot.lane.b32.xlu1 %v336_v26, %s1041_s26  ;;  %361 = vrot.lane.b32.xlu0 %v324_v17, %s1041_s26 }
  0x46   : >> { %375 = vrot.lane.b32.xlu1 %v324_v17, %s1042_s27  ;;  %373 = vrot.lane.b32.xlu0 %v317_v27, %s1042_s27 }
  0x4a   : >> { %387 = vrot.lane.b32.xlu1 %v336_v26, %s1043_s28  ;;  %385 = vrot.lane.b32.xlu0 %v324_v17, %s1043_s28 }
  0x4e   : >> { %399 = vrot.lane.b32.xlu1 %v324_v17, %s1037_s23  ;;  %397 = vrot.lane.b32.xlu0 %v317_v27, %s1037_s23 }
  0x52   : >> { %291 = vrot.lane.b32.xlu0 %v177_v28, %s1038_s24  ;;  %293 = vrot.lane.b32.xlu1 %v184_v21, %s1038_s24 }
  0x56   : >> { %337 = vrot.lane.b32.xlu0 %v324_v17, %s1044_s29  ;;  %339 = vrot.lane.b32.xlu1 %v336_v26, %s1044_s29 }
  0x5a   : >> { %349 = vrot.lane.b32.xlu0 %v317_v27, %s1040_s25  ;;  %351 = vrot.lane.b32.xlu1 %v324_v17, %s1040_s25 }
  0x5e   : >> { %239 = vrot.lane.b32.xlu0 %v177_v28, %s1042_s27  ;;  %241 = vrot.lane.b32.xlu1 %v184_v21, %s1042_s27 }
  0x62   : >> { %252 = vrot.lane.b32.xlu0 %v197_v23, %s1043_s28  ;;  %254 = vrot.lane.b32.xlu1 %v177_v28, %s1043_s28 }
  0x66   : >> { %265 = vrot.lane.b32.xlu0 %v177_v28, %s1037_s23  ;;  %267 = vrot.lane.b32.xlu1 %v184_v21, %s1037_s23 }
  0x6a   : >> { %278 = vrot.lane.b32.xlu0 %v197_v23, %s1036_s22  ;;  %280 = vrot.lane.b32.xlu1 %v177_v28, %s1036_s22 }
  0x6e   : >> { %198 = vrot.lane.b32.xlu0 %v197_v23, %s1044_s29  ;;  %200 = vrot.lane.b32.xlu1 %v177_v28, %s1044_s29 }
  0x72   : >> { %213 = vrot.lane.b32.xlu0 %v177_v28, %s1040_s25  ;;  %215 = vrot.lane.b32.xlu1 %v184_v21, %s1040_s25 }
  0x76   : >> { %226 = vrot.lane.b32.xlu0 %v197_v23, %s1041_s26  ;;  %228 = vrot.lane.b32.xlu1 %v177_v28, %s1041_s26 }
  0x8c   : >> { %v541_v30 = vpop.permute.xlu1 %540  ;;  %v527_v31 = vpop.permute.xlu0 %526 }
  0x8d   : >> { %549 = vst.msk [vmem:[#allocation2 + $0x98] sm:$0xc] %vm211_vm7, %v541_v30  ;;  %v543_v34 = vrot.slane %v541_v30, 4  ;;  %v530_v40 = vrot.slane %v527_v31, 4 }
  0x90   : >> { %v539_v32 = vpop.permute.xlu1 %538  ;;  %v551_v33 = vpop.permute.xlu0 %550 }
  0x91   : >> { %v542_v35 = vrot.slane %v539_v32, 4  ;;  %v554_v41 = vrot.slane %v551_v33, 4 }
  0x93   : >> { %v544_v36 = vsel %vm204_vm10, %v542_v35, %v543_v34 }
  0x94   : >> { %v545_v37 = vsel %vm285_vm11, %v539_v32, %v544_v36  ;;  %v553_v38 = vpop.permute.xlu1 %552  ;;  %v529_v39 = vpop.permute.xlu0 %528 }
  0x95   : >> { %548 = vst [vmem:[#allocation2 + $0x90] sm:$0xcc] %v545_v37  ;;  %v555_v42 = vrot.slane %v553_v38, 4  ;;  %561 = vst.msk [vmem:[#allocation2 + $0xa4] sm:$0x3] %vm188_vm8, %v553_v38  ;;  %v531_v43 = vrot.slane %v529_v39, 4 }
  0x96   : >> { %537 = vst.msk [vmem:[#allocation2 + $0x98] sm:$0x3] %vm188_vm8, %v529_v39 }
  0x97   : >> { %v556_v44 = vsel %vm204_vm10, %v554_v41, %v555_v42  ;;  %v532_v45 = vsel %vm204_vm10, %v530_v40, %v531_v43 }
  0x98   : >> { %v557_v46 = vsel %vm298_vm12, %v551_v33, %v556_v44  ;;  %v533_v47 = vsel %vm272_vm13, %v527_v31, %v532_v45  ;;  %v481_v48 = vpop.permute.xlu1 %480  ;;  %v479_v49 = vpop.permute.xlu0 %478 }
  0x99   : >> { %560 = vst [vmem:[#allocation2 + $0x9c] sm:$0x33] %v557_v46  ;;  %536 = vst [vmem:[#allocation2 + $0x90] sm:$0x33] %v533_v47  ;;  %v483_v50 = vrot.slane %v481_v48, 4  ;;  %v482_v51 = vrot.slane %v479_v49, 4 }
  0x9a   : >> { %489 = vst.msk [vmem:[#allocation2 + $0x80] sm:$0x3] %vm188_vm8, %v481_v48 }
  0x9b   : >> { %v484_v54 = vsel %vm204_vm10, %v482_v51, %v483_v50 }
  0x9c   : >> { %v485_v55 = vsel %vm220_vm15, %v479_v49, %v484_v54  ;;  %v493_v56 = vpop.permute.xlu1 %492  ;;  %v491_v57 = vpop.permute.xlu0 %490 }
  0x9d   : >> { %488 = vst [vmem:[#allocation2 + $0x78] sm:$0x33] %v485_v55  ;;  %v495_v59 = vrot.slane %v493_v56, 4  ;;  %501 = vst.msk [vmem:[#allocation2 + $0x80] sm:$0xc] %vm211_vm7, %v493_v56  ;;  %v494_v60 = vrot.slane %v491_v57, 4 }
  0x9e   : >> { %v992_v61 = vld [vmem:[#allocation2 + $0x98] ss:$12 sps:$4 sm:$0x7f]  }
  0x9f   : >> { %v496_v62 = vsel %vm204_vm10, %v494_v60, %v495_v59  ;;  %v715_v63 = vand.u32 %v992_v61, %v707_v58 }
  0xa0   : >> { %v497_v0 = vsel %vm233_vm1, %v491_v57, %v496_v62  ;;  %v505_v1 = vpop.permute.xlu1 %504  ;;  %v503_v2 = vpop.permute.xlu0 %502  ;;  %v993_v3 = vld [vmem:[#allocation2 + $0x94] ss:$12 sps:$4 sm:$0x7f]   ;;  %v995_v6 = vld [vmem:[#allocation2 + $0x90] ss:$12 sps:$4 sm:$0x7f]  }
  0xa1   : >> { %500 = vst [vmem:[#allocation2 + $0x78] sm:$0xcc] %v497_v0  ;;  %v507_v4 = vrot.slane %v505_v1, 4  ;;  %513 = vst.msk [vmem:[#allocation2 + $0x8c] sm:$0x3] %vm188_vm8, %v505_v1  ;;  %v506_v5 = vrot.slane %v503_v2, 4  ;;  %942 = vmatpush3.bf16.msra.mxu1 %v715_v63  ;;  %v712_v7 = vand.u32 %v993_v3, %v707_v58  ;;  %v709_v9 = vand.u32 %v995_v6, %v707_v58 }
  0xa2   : >> { %943 = vmatprep.subr.bf16.mxu1 %v1039_v24 }
  0xa3   : >> { %v508_v8 = vsel %vm204_vm10, %v506_v5, %v507_v4  ;;  %719 = vmatprep.subr.bf16.mxu0 %v712_v7 }
  0xa4   : >> { %v509_v10 = vsel %vm246_vm2, %v503_v2, %v508_v8  ;;  %v517_v11 = vpop.permute.xlu1 %516  ;;  %v515_v12 = vpop.permute.xlu0 %514  ;;  %720 = vmatpush1.bf16.msra.mxu0 %v709_v9 }
  0xa5   : >> { %512 = vst [vmem:[#allocation2 + $0x84] sm:$0x33] %v509_v10  ;;  %v519_v13 = vrot.slane %v517_v11, 4  ;;  %525 = vst.msk [vmem:[#allocation2 + $0x8c] sm:$0xc] %vm211_vm7, %v517_v11  ;;  %v518_v14 = vrot.slane %v515_v12, 4 }
  0xa7   : >> { %v520_v15 = vsel %vm204_vm10, %v518_v14, %v519_v13 }
  0xa8   : >> { %v521_v16 = vsel %vm259_vm3, %v515_v12, %v520_v15  ;;  %v412_v17 = vpop.permute.xlu1 %411  ;;  %v410_v18 = vpop.permute.xlu0 %409 }
  0xa9   : >> { %524 = vst [vmem:[#allocation2 + $0x84] sm:$0xcc] %v521_v16  ;;  %v414_v19 = vrot.slane %v412_v17, 4  ;;  %420 = vst.msk [vmem:[#allocation2 + $0x68] sm:$0x3] %vm188_vm8, %v412_v17  ;;  %v413_v20 = vrot.slane %v410_v18, 4 }
  0xab   : >> { %v415_v21 = vsel %vm204_vm10, %v413_v20, %v414_v19 }
  0xac   : >> { %v416_v22 = vsel %vm285_vm11, %v410_v18, %v415_v21  ;;  %v424_v23 = vpop.permute.xlu1 %423  ;;  %v422_v25 = vpop.permute.xlu0 %421  ;;  %v996_v26 = vld [vmem:[#allocation2 + $0x80] ss:$12 sps:$4 sm:$0xff]  }
  0xad   : >> { %419 = vst [vmem:[#allocation2 + $0x60] sm:$0x33] %v416_v22  ;;  %v426_v27 = vrot.slane %v424_v23, 4  ;;  %432 = vst.msk [vmem:[#allocation2 + $0x68] sm:$0xc] %vm211_vm7, %v424_v23  ;;  %v425_v28 = vrot.slane %v422_v25, 4  ;;  %944 = vmatpush3.bf16.msra.mxu1 %v996_v26 }
  0xae   : >> { %945 = vmatprep.subr.bf16.mxu1 %v1039_v24 }
  0xaf   : >> { %v427_v29 = vsel %vm204_vm10, %v425_v28, %v426_v27 }
  0xb0   : >> { %v428_v30 = vsel %vm298_vm12, %v422_v25, %v427_v29  ;;  %v469_v31 = vpop.permute.xlu1 %468  ;;  %v467_v32 = vpop.permute.xlu0 %466  ;;  %v997_v33 = vld [vmem:[#allocation2 + $0x7c] ss:$12 sps:$4 sm:$0xff]   ;;  %v999_v34 = vld [vmem:[#allocation2 + $0x78] ss:$12 sps:$4 sm:$0xff]  }
  0xb1   : >> { %431 = vst [vmem:[#allocation2 + $0x60] sm:$0xcc] %v428_v30  ;;  %v471_v35 = vrot.slane %v469_v31, 4  ;;  %477 = vst.msk [vmem:[#allocation2 + $0x74] sm:$0xc] %vm211_vm7, %v469_v31  ;;  %v470_v36 = vrot.slane %v467_v32, 4  ;;  %721 = vmatprep.subr.bf16.mxu0 %v997_v33 }
  0xb2   : >> { %722 = vmatpush1.bf16.msra.mxu0 %v999_v34 }
  0xb3   : >> { %v472_v37 = vsel %vm204_vm10, %v470_v36, %v471_v35 }
  0xb4   : >> { %v473_v38 = vsel %vm206_vm4, %v467_v32, %v472_v37  ;;  %v364_v39 = vpop.permute.xlu1 %363  ;;  %v362_v40 = vpop.permute.xlu0 %361 }
  0xb5   : >> { %476 = vst [vmem:[#allocation2 + $0x6c] sm:$0xcc] %v473_v38  ;;  %v366_v41 = vrot.slane %v364_v39, 4  ;;  %372 = vst.msk [vmem:[#allocation2 + $0x50] sm:$0x3] %vm188_vm8, %v364_v39  ;;  %v365_v42 = vrot.slane %v362_v40, 4 }
  0xb7   : >> { %v367_v43 = vsel %vm204_vm10, %v365_v42, %v366_v41 }
  0xb8   : >> { %v368_v44 = vsel %vm233_vm1, %v362_v40, %v367_v43  ;;  %v376_v45 = vpop.permute.xlu1 %375  ;;  %v374_v46 = vpop.permute.xlu0 %373  ;;  %v1000_v47 = vld [vmem:[#allocation2 + $0x68] ss:$12 sps:$4 sm:$0xff]   ;;  %v579_v54 = vld [vmem:[#allocation2 + $0x60] sm:$0xff] }
  0xb9   : >> { %371 = vst [vmem:[#allocation2 + $0x48] sm:$0x33] %v368_v44  ;;  %v378_v48 = vrot.slane %v376_v45, 4  ;;  %384 = vst.msk [vmem:[#allocation2 + $0x50] sm:$0xc] %vm211_vm7, %v376_v45  ;;  %v377_v49 = vrot.slane %v374_v46, 4  ;;  %946 = vmatpush3.bf16.msra.mxu1 %v1000_v47 }
  0xba   : >> { %947 = vmatprep.subr.bf16.mxu1 %v1039_v24 }
  0xbb   : >> { %v379_v50 = vsel %vm204_vm10, %v377_v49, %v378_v48 }
  0xbc   : >> { %v380_v51 = vsel %vm246_vm2, %v374_v46, %v379_v50  ;;  %v388_v52 = vpop.permute.xlu1 %387  ;;  %v386_v53 = vpop.permute.xlu0 %385  ;;  %v581_v55 = vld [vmem:[#allocation2 + $0x6c] sm:$0xff] }
  0xbd   : >> { %v1001_v56 = vld [vmem:[#allocation2 + $0x64] ss:$12 sps:$4 sm:$0xff]   ;;  %383 = vst [vmem:[#allocation2 + $0x48] sm:$0xcc] %v380_v51  ;;  %v390_v57 = vrot.slane %v388_v52, 4  ;;  %v389_v58 = vrot.slane %v386_v53, 4  ;;  %v913_v59 = vcombine.low %v579_v54, %v581_v55 }
  0xbe   : >> { %396 = vst.msk [vmem:[#allocation2 + $0x5c] sm:$0x3] %vm188_vm8, %v388_v52  ;;  %723 = vmatprep.subr.bf16.mxu0 %v1001_v56 }
  0xbf   : >> { %v391_v60 = vsel %vm204_vm10, %v389_v58, %v390_v57  ;;  %724 = vmatpush1.bf16.msra.mxu0 %v913_v59 }
  0xc0   : >> { %v392_v61 = vsel %vm259_vm3, %v386_v53, %v391_v60  ;;  %v400_v62 = vpop.permute.xlu1 %399  ;;  %v398_v63 = vpop.permute.xlu0 %397 }
  0xc1   : >> { %395 = vst [vmem:[#allocation2 + $0x54] sm:$0x33] %v392_v61  ;;  %v402_v0 = vrot.slane %v400_v62, 4  ;;  %408 = vst.msk [vmem:[#allocation2 + $0x5c] sm:$0xc] %vm211_vm7, %v400_v62  ;;  %v401_v1 = vrot.slane %v398_v63, 4 }
  0xc3   : >> { %v403_v2 = vsel %vm204_vm10, %v401_v1, %v402_v0 }
  0xc4   : >> { %v404_v3 = vsel %vm272_vm13, %v398_v63, %v403_v2  ;;  %v292_v4 = vpop.permute.xlu0 %291  ;;  %v294_v5 = vpop.permute.xlu1 %293 }
  0xc5   : >> { %407 = vst [vmem:[#allocation2 + $0x54] sm:$0xcc] %v404_v3  ;;  %v295_v6 = vrot.slane %v292_v4, 4  ;;  %v296_v7 = vrot.slane %v294_v5, 4  ;;  %303 = vst.msk [vmem:[#allocation2 + $0x38] sm:$0x3] %vm188_vm8, %v294_v5 }
  0xc7   : >> { %v297_v8 = vsel %vm204_vm10, %v295_v6, %v296_v7 }
  0xc8   : >> { %v299_v9 = vsel %vm298_vm12, %v292_v4, %v297_v8  ;;  %v338_v10 = vpop.permute.xlu0 %337  ;;  %v340_v11 = vpop.permute.xlu1 %339  ;;  %v1003_v12 = vld [vmem:[#allocation2 + $0x50] ss:$12 sps:$4 sm:$0xff]  }
  0xc9   : >> { %302 = vst [vmem:[#allocation2 + $0x30] sm:$0x33] %v299_v9  ;;  %v341_v13 = vrot.slane %v338_v10, 4  ;;  %v342_v14 = vrot.slane %v340_v11, 4  ;;  %348 = vst.msk [vmem:[#allocation2 + $0x44] sm:$0x3] %vm188_vm8, %v340_v11  ;;  %948 = vmatpush3.bf16.msra.mxu1 %v1003_v12 }
  0xca   : >> { %949 = vmatprep.subr.bf16.mxu1 %v1039_v24 }
  0xcb   : >> { %v343_v15 = vsel %vm204_vm10, %v341_v13, %v342_v14 }
  0xcc   : >> { %v344_v16 = vsel %vm206_vm4, %v338_v10, %v343_v15  ;;  %v350_v17 = vpop.permute.xlu0 %349  ;;  %v352_v18 = vpop.permute.xlu1 %351  ;;  %v1004_v19 = vld [vmem:[#allocation2 + $0x4c] ss:$12 sps:$4 sm:$0xff]   ;;  %v1006_v20 = vld [vmem:[#allocation2 + $0x48] ss:$12 sps:$4 sm:$0xff]   ;;  %v562_v10 = vld [vmem:[%s1230_s1] sm:$0xf] }
  0xcd   : >> { %347 = vst [vmem:[#allocation2 + $0x3c] sm:$0x33] %v344_v16  ;;  %v353_v21 = vrot.slane %v350_v17, 4  ;;  %v354_v22 = vrot.slane %v352_v18, 4  ;;  %360 = vst.msk [vmem:[#allocation2 + $0x44] sm:$0xc] %vm211_vm7, %v352_v18  ;;  %725 = vmatprep.subr.bf16.mxu0 %v1004_v19 }
  0xce   : >> { %726 = vmatpush1.bf16.msra.mxu0 %v1006_v20 }
  0xcf   : >> { %v355_v23 = vsel %vm204_vm10, %v353_v21, %v354_v22 }
  0xd0   : >> { %v356_v25 = vsel %vm220_vm15, %v350_v17, %v355_v23  ;;  %v240_v26 = vpop.permute.xlu0 %239  ;;  %v242_v27 = vpop.permute.xlu1 %241 }
  0xd1   : >> { %359 = vst [vmem:[#allocation2 + $0x3c] sm:$0xcc] %v356_v25  ;;  %v243_v28 = vrot.slane %v240_v26, 4  ;;  %v244_v29 = vrot.slane %v242_v27, 4  ;;  %251 = vst.msk [vmem:[#allocation2 + $0x20] sm:$0x3] %vm188_vm8, %v242_v27 }
  0xd3   : >> { %v245_v30 = vsel %vm204_vm10, %v243_v28, %v244_v29 }
  0xd4   : >> { %v247_v31 = vsel %vm246_vm2, %v240_v26, %v245_v30  ;;  %v253_v32 = vpop.permute.xlu0 %252  ;;  %v255_v33 = vpop.permute.xlu1 %254  ;;  %v1007_v34 = vld [vmem:[#allocation2 + $0x38] ss:$12 sps:$4 sm:$0xff]  }
  0xd5   : >> { %250 = vst [vmem:[#allocation2 + $0x18] sm:$0x33] %v247_v31  ;;  %v256_v35 = vrot.slane %v253_v32, 4  ;;  %v257_v36 = vrot.slane %v255_v33, 4  ;;  %264 = vst.msk [vmem:[#allocation2 + $0x20] sm:$0xc] %vm211_vm7, %v255_v33  ;;  %950 = vmatpush3.bf16.msra.mxu1 %v1007_v34 }
  0xd6   : >> { %951 = vmatprep.subr.bf16.mxu1 %v1039_v24 }
  0xd7   : >> { %v258_v37 = vsel %vm204_vm10, %v256_v35, %v257_v36 }
  0xd8   : >> { %v260_v38 = vsel %vm259_vm3, %v253_v32, %v258_v37  ;;  %v266_v39 = vpop.permute.xlu0 %265  ;;  %v268_v40 = vpop.permute.xlu1 %267  ;;  %v1008_v41 = vld [vmem:[#allocation2 + $0x34] ss:$12 sps:$4 sm:$0xff]   ;;  %v1010_v42 = vld [vmem:[#allocation2 + $0x30] ss:$12 sps:$4 sm:$0xff]  }
  0xd9   : >> { %263 = vst [vmem:[#allocation2 + $0x18] sm:$0xcc] %v260_v38  ;;  %v269_v43 = vrot.slane %v266_v39, 4  ;;  %v270_v44 = vrot.slane %v268_v40, 4  ;;  %277 = vst.msk [vmem:[#allocation2 + $0x2c] sm:$0x3] %vm188_vm8, %v268_v40  ;;  %727 = vmatprep.subr.bf16.mxu0 %v1008_v41 }
  0xda   : >> { %728 = vmatpush1.bf16.msra.mxu0 %v1010_v42 }
  0xdb   : >> { %v271_v45 = vsel %vm204_vm10, %v269_v43, %v270_v44 }
  0xdc   : >> { %v273_v46 = vsel %vm272_vm13, %v266_v39, %v271_v45  ;;  %v279_v47 = vpop.permute.xlu0 %278  ;;  %v281_v48 = vpop.permute.xlu1 %280 }
  0xdd   : >> { %276 = vst [vmem:[#allocation2 + $0x24] sm:$0x33] %v273_v46  ;;  %v282_v49 = vrot.slane %v279_v47, 4  ;;  %v283_v50 = vrot.slane %v281_v48, 4  ;;  %290 = vst.msk [vmem:[#allocation2 + $0x2c] sm:$0xc] %vm211_vm7, %v281_v48 }
  0xdf   : >> { %v284_v51 = vsel %vm204_vm10, %v282_v49, %v283_v50 }
  0xe0   : >> { %v286_v52 = vsel %vm285_vm11, %v279_v47, %v284_v51  ;;  %v199_v53 = vpop.permute.xlu0 %198  ;;  %v201_v54 = vpop.permute.xlu1 %200 }
  0xe1   : >> { %289 = vst [vmem:[#allocation2 + $0x24] sm:$0xcc] %v286_v52  ;;  %v202_v55 = vrot.slane %v199_v53, 4  ;;  %v203_v56 = vrot.slane %v201_v54, 4  ;;  %212 = vst.msk [vmem:[#allocation2 + $0x8] sm:$0xc] %vm211_vm7, %v201_v54 }
  0xe3   : >> { %v205_v57 = vsel %vm204_vm10, %v202_v55, %v203_v56 }
  0xe4   : >> { %v207_v58 = vsel %vm206_vm4, %v199_v53, %v205_v57  ;;  %v214_v59 = vpop.permute.xlu0 %213  ;;  %v216_v60 = vpop.permute.xlu1 %215  ;;  %v1011_v61 = vld [vmem:[#allocation2 + $0x20] ss:$12 sps:$4 sm:$0xff]  }
  0xe5   : >> { %210 = vst [vmem:[#allocation2] sm:$0xcc] %v207_v58  ;;  %v217_v62 = vrot.slane %v214_v59, 4  ;;  %v218_v63 = vrot.slane %v216_v60, 4  ;;  %225 = vst.msk [vmem:[#allocation2 + $0x14] sm:$0x3] %vm188_vm8, %v216_v60  ;;  %952 = vmatpush3.bf16.msra.mxu1 %v1011_v61 }
  0xe6   : >> { %953 = vmatprep.subr.bf16.mxu1 %v1039_v24 }
  0xe7   : >> { %v219_v0 = vsel %vm204_vm10, %v217_v62, %v218_v63 }
  0xe8   : >> { %v221_v1 = vsel %vm220_vm15, %v214_v59, %v219_v0  ;;  %v227_v2 = vpop.permute.xlu0 %226  ;;  %v229_v3 = vpop.permute.xlu1 %228  ;;  %v1012_v4 = vld [vmem:[#allocation2 + $0x1c] ss:$12 sps:$4 sm:$0xff]   ;;  %v1014_v5 = vld [vmem:[#allocation2 + $0x18] ss:$12 sps:$4 sm:$0xff]  }
  0xe9   : >> { %224 = vst [vmem:[#allocation2 + $0xc] sm:$0x33] %v221_v1  ;;  %v230_v6 = vrot.slane %v227_v2, 4  ;;  %v231_v7 = vrot.slane %v229_v3, 4  ;;  %238 = vst.msk [vmem:[#allocation2 + $0x14] sm:$0xc] %vm211_vm7, %v229_v3  ;;  %729 = vmatprep.subr.bf16.mxu0 %v1012_v4 }
  0xea   : >> { %730 = vmatpush1.bf16.msra.mxu0 %v1014_v5 }
  0xeb   : >> { %v232_v8 = vsel %vm204_vm10, %v230_v6, %v231_v7 }
  0xec   : >> { %v234_v9 = vsel %vm233_vm1, %v227_v2, %v232_v8 }
  0xed   : >> { %237 = vst [vmem:[#allocation2 + $0xc] sm:$0xcc] %v234_v9 }
  0xf0   : >> { %v1015_v24 = vld [vmem:[#allocation2 + $0x8] ss:$12 sps:$4 sm:$0xff]  }
  0xf1   : >> { %954 = vmatpush3.bf16.msra.mxu1 %v1015_v24 }
  0xf4   : >> { %v1016_v11 = vld [vmem:[#allocation2 + $0x4] ss:$12 sps:$4 sm:$0xff]   ;;  %v1018_v12 = vld [vmem:[#allocation2] ss:$12 sps:$4 sm:$0xff]   ;;  %956 = vmatmul.mubr.msk.bf16.vlgmr.msra.gmra.mxu1 %vm700_vm5, %v562_v10 }
  0xf5   : >> { %731 = vmatprep.subr.bf16.mxu0 %v1016_v11 }
  0xf6   : >> { %732 = vmatpush1.bf16.msra.mxu0 %v1018_v12 }
  0xf9   : >> { %922 = vmatmul.mubr.msk.bf16.vlgmr.msra.gmra.mxu0 %vm700_vm5, %v562_v10 }
 0x1b4   : >> { %v792_v13 = vpop.f32.mrf.mxu1 }
 0x1b5   : >> { %v800_v14 = vmax.f32 %v792_v13, 0.0 }
 0x1b6   : >> { %v957_v15 = vpop.f32.mrf.mxu1 }
 0x1b7   : >> { %v931_v16 = vpack.c.bf16 %v800_v14, %v800_v14 }
 0x1b8   : >> { %v795_v17 = vpop.f32.mrf.mxu1 }
 0x1b9   : >> { %817 = vst [vmem:[%s815_s5 + $0x8] sm:$0xf] %v931_v16  ;;  %v751_v18 = vpop.f32.mrf.mxu0 }
 0x1ba   : >> { %v958_v19 = vpop.f32.mrf.mxu1  ;;  %v798_v21 = vmax.f32 %v751_v18, 0.0 }
 0x1bb   : >> { %v753_v20 = vpop.f32.mrf.mxu0 }
 0x1bc   : >> { %v799_v22 = vmax.f32 %v753_v20, 0.0  ;;  %163 = sbr.rel (!%p161_p4) target bundleno = 17 (0x11), region = 69 }
 0x1bd   : >> { %v755_v23 = vpop.f32.mrf.mxu0 }
 0x1be   : >> { %v930_v25 = vpack.c.bf16 %v799_v22, %v798_v21 }
 0x1bf   : >> { %v756_v26 = vpop.f32.mrf.mxu0 }
 0x1c0   : >> { %816 = vst [vmem:[%s815_s5] sm:$0xff] %v930_v25 }
 0x1c1 PF: > { %s12_s9 = sadd.s32 1, %s1029_s9  }
 0x1c2   : > { %p9_p5 = scmp.ge.s32.totalorder %s12_s9, 4  }
 0x1c4   :  { %11 = sbr.rel (!%p9_p5) target bundleno = 1 (0x1), region = 80 }

// kernel: autofocus_forward.3
= control target key start
LH: loop header
LB: loop body
LE: loop exit
PB: predicated region body
PF: predicated region fallthrough
CT: control target
= control target key end

     0   :  { %s5023_s30 = smov 0   ;;  %s6156_s0 = inlined_call_operand.vmem [shape: bf16[2,15,8,961], index: 0, kind: input, shape index: {}]   ;;  %s6157_s1 = inlined_call_operand.vmem [shape: f32[2,11,4,384], index: 1, kind: input, shape index: {}]   ;;  %s6158_s2 = inlined_call_operand.vmem [shape: bf16[16,656], index: 2, kind: input, shape index: {}]   ;;  %s6159_s3 = inlined_call_operand.vmem [shape: f32[16,4], index: 3, kind: input, shape index: {}]   ;;  %s6160_s4 = inlined_call_operand.vmem [shape: bf16[4,217], index: 4, kind: input, shape index: {}]   ;;  %s6161_s5 = inlined_call_operand.vmem [shape: f32[4,4], index: 5, kind: input, shape index: {}]   ;;  %s6162_s6 = inlined_call_operand.vmem [shape: f32[4,1], index: 6, kind: input, shape index: {}]   ;;  %s6163_s7 = inlined_call_operand.vmem [shape: f32[16,4], index: 7, kind: input, shape index: {}]   ;;  %s6164_s8 = inlined_call_operand.vmem [shape: f32[16,1], index: 8, kind: input, shape index: {}]   ;;  %s6165_s9 = inlined_call_operand.vmem [shape: f32[2,11,16,384], index: 9, kind: output, shape index: {}]  }
   0x1 LB: > { %s4330_s10 = sadd.s32 4294967295, %s4901_s30   ;;  %p4334_p0 = scmp.ge.s32.totalorder %s4901_s30, 1  ;;  %s4901_s30 = sphi %s5023_s30, %s19_s30  }
   0x2   : > { %p297_p1 = scmp.lt.s32.totalorder %s4901_s30, 3 }
   0x4   : > { %p298_p2 = pnand %p4334_p0, %p297_p1 }
   0x5   : > { %p338_p3 = scmp.lt.s32.totalorder (!%p298_p2), %s4330_s10, 1  ;;  %s5046_s23 = smov (!%p298_p2), 0  }
   0x6   : > { %301 = sbr.rel (%p298_p2) target bundleno = 2545 (0x9f1), region = 56 }
   0xb   : > { %vm355_vm0 = vcmask 1040384   ;;  %vm356_vm1 = vsmask.f32 256  ;;  %vm358_vm2 = vcmask 1044484   ;;  %vm359_vm4 = vsmask.f32 4352 }
   0xc   : > { %vm357_vm3 = vmand %vm355_vm0, %vm356_vm1  ;;  %v362_v0 = vld [vmem:[#allocation2 + $0x144] sm:$0x11]  ;;  %v365_v1 = vld [vmem:[#allocation2 + $0x14c] sm:$0x1]  ;;  %s6177_s10 = smov (!%p338_p3, %s4330_s10), 1 }
   0xd   : > { %vm360_vm5 = vmand %vm358_vm2, %vm359_vm4  ;;  %v366_v2 = vsel %vm357_vm3, 1065369472, %v365_v1  ;;  %s4636_s11 = smul.u32 480, %s6177_s10 }
   0xe   : > { %vm361_vm6 = vmor %vm360_vm5, %vm357_vm3  ;;  %367 = vst [vmem:[#allocation2 + $0x14c] sm:$0x1] %v366_v2  ;;  %s4637_s12 = smul.u32 132, %s6177_s10 }
   0xf   : > { %v363_v3 = vsel %vm361_vm6, 1065369472, %v362_v0  ;;  %s5034_s15 = scalar_lea.vmem %s6156_s0, %s4636_s11  ;;  %s4638_s16 = smul.u32 528, %s6177_s10 }
  0x10   : > { %364 = vst [vmem:[#allocation2 + $0x144] sm:$0x11] %v363_v3  ;;  %s5039_s19 = scalar_lea.vmem %s6157_s1, %s4637_s12 }
  0x11   : > { %s5044_s22 = scalar_lea.vmem %s6165_s9, %s4638_s16 }
  0x12 LB: >> { %s4338_s24 = sshll.u32 %s4905_s23, 5  ;;  %p2434_p4 = scmp.ge.s32.totalorder %s4905_s23, 4  ;;  %v4909_v6 = vmov 0   ;;  %vm388_vm7 = vcmask 1043456   ;;  %vm1036_vm8 = vcmask 728064   ;;  %vm395_vm9 = vcmask 527360   ;;  %s4905_s23 = sphi %s5046_s23, %s373_s23  }
  0x13   : >> { %s5054_s25 = scalar_lea.vmem %s5034_s15, %s4338_s24  ;;  %p2435_p5 = scmp.lt.s32.totalorder %s4905_s23, 11  ;;  %1094 = vmatprep.subr.bf16.mxu1 %v4909_v6  ;;  %4721 = vset.pattern.permute.xlu0 %v4909_v6  ;;  %v5173_v24 = vld.sshfl [vmem:[%s6160_s4] sm:$0x33 pattern:$0x76325410]  ;;  %vm471_vm10 = vcmask 277504  }
  0x14   : >> { %v5058_v4 = vld [vmem:[%s5054_s25 + $0x48] sm:$0xff]  ;;  %s4907_s27 = smov 34   ;;  %s4908_s28 = smov 63   ;;  %v5072_v5 = vld [vmem:[%s5054_s25 + $0x50] sm:$0xff]  ;;  %4722 = vset.pattern.permute.xlu1 %v4909_v6  ;;  %v813_v25 = vcombine.high %v5173_v24, %v5173_v24  ;;  %v1138_v26 = vld [vmem:[%s6162_s6] sm:$0xf] }
  0x15   : >> { %p5062_p6 = pnand %p2435_p5, %p2434_p4  ;;  %588 = vrot.lane.b32.xlu1 %v5058_v4, %s4907_s27  ;;  %575 = vrot.lane.b32.xlu0 %v5058_v4, %s4908_s28  ;;  %1828 = vst [vmem:[#allocation2 + $0x6c] sm:$0xff] %v5058_v4  ;;  %s4910_s29 = smov 65   ;;  %v5090_v7 = vld [vmem:[%s5054_s25 + $0x8] sm:$0xff]  ;;  %v5093_v8 = vld [vmem:[%s5054_s25 + $0x10] sm:$0xff]  ;;  %v1920_v21 = vrot.slane %v5058_v4, 4  ;;  %v1921_v22 = vrot.slane %v5072_v5, 4 }
  0x16   : >> { %s4911_s10 = smov 64   ;;  %v1819_v9 = vrot.slane %v5090_v7, 4  ;;  %v1820_v10 = vrot.slane %v5093_v8, 4  ;;  %1721 = vst [vmem:[#allocation2] sm:$0xff] %v5090_v7  ;;  %s4912_s11 = smov 95   ;;  %v4340_v12 = vld [vmem:[%s5054_s25 + $0x30] sm:$0xff]  ;;  %4391 = vmatprep.mubr.msk.bf16.mxu1 %vm1036_vm8, %v813_v25  ;;  %4390 = vmatprep.mubr.msk.bf16.mxu0 %vm1036_vm8, %v813_v25 }
  0x17   : >> { %s4913_s12 = smov 94   ;;  %v4339_v13 = vld [vmem:[%s5054_s25 + $0x28] sm:$0xff]  ;;  %s4914_s13 = smov 32   ;;  %v5134_v14 = vld [vmem:[%s5054_s25 + $0x90] sm:$0xff]  ;;  %v1922_v23 = vsel %vm388_vm7, %v1920_v21, %v1921_v22  ;;  %vm457_vm11 = vcmask 515072   ;;  %vm443_vm12 = vcmask 523264  }
  0x18   : >> { %v1821_v11 = vsel %vm388_vm7, %v1819_v9, %v1820_v10  ;;  %s4915_s14 = smov 96   ;;  %s4916_s16 = smov 33   ;;  %v4346_v15 = vld [vmem:[%s5054_s25 + $0x70] sm:$0xff]  ;;  %v4345_v16 = vld [vmem:[%s5054_s25 + $0x68] sm:$0xff]  ;;  %v2026_v17 = vrot.slane %v5134_v14, 4  ;;  %1925 = vst [vmem:[#allocation2 + $0xcc] sm:$0xff] %v1922_v23 }
  0x19   : >> { %590 = vrot.lane.b32.xlu1 %v5072_v5, %s4907_s27  ;;  %577 = vrot.lane.b32.xlu0 %v5072_v5, %s4908_s28  ;;  %1824 = vst [vmem:[#allocation2 + $0x60] sm:$0xff] %v1821_v11  ;;  %v5140_v18 = vld [vmem:[%s5054_s25 + $0x88] sm:$0xff]  ;;  %vm430_vm13 = vcmask 531456   ;;  %vm404_vm14 = vcmask 777216   ;;  %vm417_vm15 = vcmask 769024   ;;  %vm499_vm0 = vcmask 261120  }
  0x1a   : >> { %v2025_v19 = vrot.slane %v5140_v18, 4  ;;  %1933 = vst [vmem:[#allocation2 + $0xd8] sm:$0xff] %v5140_v18  ;;  %vm390_vm1 = vcmask 785408   ;;  %vm485_vm2 = vcmask 269312   ;;  %vm1041_vm3 = vcmask 1044480   ;;  %s4918_s24 = smov 4  }
  0x1b   : >> { %vm4921_vm4 = vmmov 0   ;;  %vm1144_vm5 = vcmask 31744   ;;  %vm1784_vm6 = vcmask 506880   ;;  %vm1758_vm8 = vcmask 539648   ;;  %s4602_s18 = smul.u32 12, %s4905_s23 }
  0x1c   : >> { %v2027_v20 = vsel %vm388_vm7, %v2025_v19, %v2026_v17 }
  0x1d   : >> { %552 = vrot.lane.b32.xlu1 %v5072_v5, %s4910_s29  ;;  %550 = vrot.lane.b32.xlu0 %v5058_v4, %s4910_s29  ;;  %2030 = vst [vmem:[#allocation2 + $0x138] sm:$0xff] %v2027_v20 }
  0x21   : >> { %564 = vrot.lane.b32.xlu1 %v5072_v5, %s4911_s10  ;;  %562 = vrot.lane.b32.xlu0 %v5058_v4, %s4911_s10 }
  0x25   : >> { %528 = vrot.lane.b32.xlu1 %v5072_v5, %s4912_s11  ;;  %526 = vrot.lane.b32.xlu0 %v5058_v4, %s4912_s11 }
  0x29   : >> { %540 = vrot.lane.b32.xlu1 %v5072_v5, %s4913_s12  ;;  %538 = vrot.lane.b32.xlu0 %v5058_v4, %s4913_s12 }
  0x2d   : >> { %494 = vrot.lane.b32.xlu1 %v4340_v12, %s4914_s13  ;;  %492 = vrot.lane.b32.xlu0 %v4339_v13, %s4914_s13 }
  0x31   : >> { %516 = vrot.lane.b32.xlu1 %v5072_v5, %s4915_s14  ;;  %514 = vrot.lane.b32.xlu0 %v5058_v4, %s4915_s14 }
  0x35   : >> { %466 = vrot.lane.b32.xlu1 %v4340_v12, %s4907_s27  ;;  %464 = vrot.lane.b32.xlu0 %v4339_v13, %s4907_s27 }
  0x39   : >> { %480 = vrot.lane.b32.xlu1 %v4340_v12, %s4916_s16  ;;  %478 = vrot.lane.b32.xlu0 %v4339_v13, %s4916_s16 }
  0x3d   : >> { %438 = vrot.lane.b32.xlu1 %v4340_v12, %s4911_s10  ;;  %436 = vrot.lane.b32.xlu0 %v4339_v13, %s4911_s10 }
  0x41   : >> { %452 = vrot.lane.b32.xlu1 %v4340_v12, %s4908_s28  ;;  %450 = vrot.lane.b32.xlu0 %v4339_v13, %s4908_s28 }
  0x45   : >> { %412 = vrot.lane.b32.xlu1 %v4340_v12, %s4913_s12  ;;  %410 = vrot.lane.b32.xlu0 %v4339_v13, %s4913_s12 }
  0x49   : >> { %425 = vrot.lane.b32.xlu1 %v4340_v12, %s4910_s29  ;;  %423 = vrot.lane.b32.xlu0 %v4339_v13, %s4910_s29 }
  0x4d   : >> { %384 = vrot.lane.b32.xlu1 %v4340_v12, %s4915_s14  ;;  %382 = vrot.lane.b32.xlu0 %v4339_v13, %s4915_s14 }
  0x51   : >> { %399 = vrot.lane.b32.xlu1 %v4340_v12, %s4912_s11  ;;  %397 = vrot.lane.b32.xlu0 %v4339_v13, %s4912_s11 }
  0x55   : >> { %737 = vrot.lane.b32.xlu1 %v4346_v15, %s4914_s13  ;;  %735 = vrot.lane.b32.xlu0 %v4345_v16, %s4914_s13 }
  0x59   : >> { %711 = vrot.lane.b32.xlu1 %v4346_v15, %s4907_s27  ;;  %709 = vrot.lane.b32.xlu0 %v4345_v16, %s4907_s27  ;;  %s4919_s27 = smov 66  }
  0x5d   : >> { %724 = vrot.lane.b32.xlu1 %v4346_v15, %s4916_s16  ;;  %722 = vrot.lane.b32.xlu0 %v4345_v16, %s4916_s16 }
  0x61   : >> { %685 = vrot.lane.b32.xlu1 %v4346_v15, %s4911_s10  ;;  %683 = vrot.lane.b32.xlu0 %v4345_v16, %s4911_s10 }
  0x65   : >> { %698 = vrot.lane.b32.xlu1 %v4346_v15, %s4908_s28  ;;  %696 = vrot.lane.b32.xlu0 %v4345_v16, %s4908_s28  ;;  %s4922_s28 = smov 126  }
  0x69   : >> { %661 = vrot.lane.b32.xlu1 %v4346_v15, %s4913_s12  ;;  %659 = vrot.lane.b32.xlu0 %v4345_v16, %s4913_s12  ;;  %s4925_s12 = smov 2  }
  0x6d   : >> { %673 = vrot.lane.b32.xlu1 %v4346_v15, %s4910_s29  ;;  %671 = vrot.lane.b32.xlu0 %v4345_v16, %s4910_s29  ;;  %s4923_s29 = smov 62  }
  0x71   : >> { %637 = vrot.lane.b32.xlu1 %v4346_v15, %s4915_s14  ;;  %635 = vrot.lane.b32.xlu0 %v4345_v16, %s4915_s14 }
  0x75   : >> { %649 = vrot.lane.b32.xlu1 %v4346_v15, %s4912_s11  ;;  %647 = vrot.lane.b32.xlu0 %v4345_v16, %s4912_s11  ;;  %s4924_s11 = smov 124  }
  0x79   : >> { %603 = vrot.lane.b32.xlu1 %v5072_v5, %s4916_s16  ;;  %601 = vrot.lane.b32.xlu0 %v5058_v4, %s4916_s16 }
  0x7d   : >> { %616 = vrot.lane.b32.xlu1 %v5072_v5, %s4914_s13  ;;  %614 = vrot.lane.b32.xlu0 %v5058_v4, %s4914_s13  ;;  %s4932_s13 = smov (!%p5062_p6), 6  }
  0x81   : >> { %1141 = vperm.xlu0 %4721, %v1138_v26   ;;  %1881 = vrot.lane.b32.xlu1 %v5058_v4, %s4923_s29 }
  0x85   : >> { %1894 = vrot.lane.b32.xlu0 %v5058_v4, %s4918_s24  ;;  %1883 = vrot.lane.b32.xlu1 %v5072_v5, %s4923_s29 }
  0x87   : >> { %v589_v27 = vpop.permute.xlu1 %588  ;;  %v576_v28 = vpop.permute.xlu0 %575 }
  0x88   : >> { %v592_v31 = vrot.slane %v589_v27, 4  ;;  %v579_v32 = vrot.slane %v576_v28, 4 }
  0x89   : >> { %1856 = vrot.lane.b32.xlu0 %v5058_v4, %s4919_s27  ;;  %1896 = vrot.lane.b32.xlu1 %v5072_v5, %s4918_s24 }
  0x8b   : >> { %v591_v29 = vpop.permute.xlu1 %590  ;;  %v578_v30 = vpop.permute.xlu0 %577 }
  0x8c   : >> { %v593_v33 = vrot.slane %v591_v29, 4  ;;  %v580_v34 = vrot.slane %v578_v30, 4 }
  0x8d   : >> { %1868 = vrot.lane.b32.xlu0 %v5058_v4, %s4911_s10  ;;  %1858 = vrot.lane.b32.xlu1 %v5072_v5, %s4919_s27 }
  0x8e   : >> { %v594_v35 = vsel %vm388_vm7, %v592_v31, %v593_v33  ;;  %v596_v36 = vsel %vm471_vm10, %v591_v29, %v593_v33  ;;  %v581_v37 = vsel %vm388_vm7, %v579_v32, %v580_v34  ;;  %v583_v38 = vsel %vm457_vm11, %v578_v30, %v580_v34 }
  0x8f   : >> { %v595_v39 = vsel %vm471_vm10, %v589_v27, %v594_v35  ;;  %600 = vst.msk [vmem:[#allocation2 + $0xbc] sm:$0xf] %vm395_vm9, %v596_v36  ;;  %v582_v40 = vsel %vm457_vm11, %v576_v28, %v581_v37  ;;  %587 = vst.msk [vmem:[#allocation2 + $0xb0] sm:$0xf] %vm395_vm9, %v583_v38  ;;  %v553_v41 = vpop.permute.xlu1 %552  ;;  %v551_v42 = vpop.permute.xlu0 %550 }
  0x90   : >> { %v555_v43 = vrot.slane %v553_v41, 4  ;;  %561 = vst.msk [vmem:[#allocation2 + $0x98] sm:$0xf] %vm395_vm9, %v553_v41  ;;  %v554_v44 = vrot.slane %v551_v42, 4  ;;  %v4370_v45 = vcombine.high %v582_v40, %v595_v39  ;;  %v4369_v46 = vcombine.low %v582_v40, %v595_v39 }
  0x91   : >> { %1832 = vrot.lane.b32.xlu0 %v5058_v4, %s4922_s28  ;;  %1870 = vrot.lane.b32.xlu1 %v5072_v5, %s4911_s10 }
  0x92   : >> { %1053 = vmatprep.subr.bf16.mxu0 %v4370_v45  ;;  %v556_v49 = vsel %vm388_vm7, %v554_v44, %v555_v43 }
  0x93   : >> { %v565_v47 = vpop.permute.xlu1 %564  ;;  %v563_v48 = vpop.permute.xlu0 %562  ;;  %1054 = vmatpush1.bf16.msra.mxu0 %v4369_v46  ;;  %v557_v55 = vsel %vm430_vm13, %v551_v42, %v556_v49 }
  0x94   : >> { %v567_v50 = vrot.slane %v565_v47, 4  ;;  %v566_v51 = vrot.slane %v563_v48, 4 }
  0x95   : >> { %1844 = vrot.lane.b32.xlu0 %v5058_v4, %s4924_s11  ;;  %1834 = vrot.lane.b32.xlu1 %v5072_v5, %s4922_s28 }
  0x96   : >> { %v570_v52 = vsel %vm443_vm12, %v565_v47, %v567_v50  ;;  %v568_v53 = vsel %vm388_vm7, %v566_v51, %v567_v50  ;;  %v4723_v54 = vld [vmem:[#allocation2 + $0xb0] ss:$12 sps:$4 sm:$0xff]  }
  0x97   : >> { %574 = vst.msk [vmem:[#allocation2 + $0xa4] sm:$0xf] %vm395_vm9, %v570_v52  ;;  %v569_v56 = vsel %vm443_vm12, %v563_v48, %v568_v53  ;;  %v529_v57 = vpop.permute.xlu1 %528  ;;  %v527_v58 = vpop.permute.xlu0 %526  ;;  %1095 = vmatpush1.bf16.msra.mxu1 %v4723_v54 }
  0x98   : >> { %v531_v59 = vrot.slane %v529_v57, 4  ;;  %537 = vst.msk [vmem:[#allocation2 + $0x80] sm:$0xf] %vm395_vm9, %v529_v57  ;;  %v530_v60 = vrot.slane %v527_v58, 4  ;;  %v4367_v61 = vcombine.high %v557_v55, %v569_v56  ;;  %v4366_v62 = vcombine.low %v557_v55, %v569_v56  ;;  %1096 = vmatprep.subr.bf16.mxu1 %v4909_v6 }
  0x99   : >> { %1791 = vrot.lane.b32.xlu0 %v5090_v7, %s4918_s24  ;;  %1846 = vrot.lane.b32.xlu1 %v5072_v5, %s4924_s11 }
  0x9a   : >> { %1055 = vmatprep.subr.bf16.mxu0 %v4367_v61  ;;  %v532_v1 = vsel %vm388_vm7, %v530_v60, %v531_v59 }
  0x9b   : >> { %v541_v63 = vpop.permute.xlu1 %540  ;;  %v539_v0 = vpop.permute.xlu0 %538  ;;  %1056 = vmatpush1.bf16.msra.mxu0 %v4366_v62  ;;  %v533_v12 = vsel %vm404_vm14, %v527_v58, %v532_v1 }
  0x9c   : >> { %v543_v2 = vrot.slane %v541_v63, 4  ;;  %549 = vst.msk [vmem:[#allocation2 + $0x8c] sm:$0xf] %vm395_vm9, %v541_v63  ;;  %v542_v3 = vrot.slane %v539_v0, 4 }
  0x9d   : >> { %1805 = vrot.lane.b32.xlu0 %v5090_v7, %s4925_s12  ;;  %1793 = vrot.lane.b32.xlu1 %v5093_v8, %s4918_s24 }
  0x9e   : >> { %v544_v9 = vsel %vm388_vm7, %v542_v3, %v543_v2  ;;  %v4724_v11 = vld [vmem:[#allocation2 + $0x98] ss:$12 sps:$4 sm:$0xff]  }
  0x9f   : >> { %v545_v13 = vsel %vm417_vm15, %v539_v0, %v544_v9  ;;  %v495_v15 = vpop.permute.xlu1 %494  ;;  %v493_v16 = vpop.permute.xlu0 %492  ;;  %1097 = vmatpush1.bf16.msra.mxu1 %v4724_v11 }
  0xa0   : >> { %v497_v19 = vrot.slane %v495_v15, 4  ;;  %v496_v20 = vrot.slane %v493_v16, 4  ;;  %v4364_v21 = vcombine.high %v533_v12, %v545_v13  ;;  %v4363_v23 = vcombine.low %v533_v12, %v545_v13  ;;  %1098 = vmatprep.subr.bf16.mxu1 %v4909_v6 }
  0xa1   : >> { %1764 = vrot.lane.b32.xlu0 %v5090_v7, %s4911_s10  ;;  %1807 = vrot.lane.b32.xlu1 %v5093_v8, %s4925_s12 }
  0xa2   : >> { %v501_v25 = vsel %vm499_vm0, %v495_v15, %v497_v19  ;;  %1057 = vmatprep.subr.bf16.mxu0 %v4364_v21  ;;  %v498_v29 = vsel %vm388_vm7, %v496_v20, %v497_v19 }
  0xa3   : >> { %505 = vst.msk [vmem:[#allocation2 + $0x68] sm:$0xf] %vm395_vm9, %v501_v25  ;;  %v517_v26 = vpop.permute.xlu1 %516  ;;  %v515_v27 = vpop.permute.xlu0 %514  ;;  %v4725_v28 = vld [vmem:[#allocation2 + $0x80] ss:$12 sps:$4 sm:$0xff]   ;;  %1058 = vmatpush1.bf16.msra.mxu0 %v4363_v23  ;;  %v500_v33 = vsel %vm499_vm0, %v493_v16, %v498_v29 }
  0xa4   : >> { %v519_v30 = vrot.slane %v517_v26, 4  ;;  %525 = vst.msk [vmem:[#allocation2 + $0x74] sm:$0xf] %vm395_vm9, %v517_v26  ;;  %v518_v31 = vrot.slane %v515_v27, 4  ;;  %1099 = vmatpush1.bf16.msra.mxu1 %v4725_v28 }
  0xa5   : >> { %1100 = vmatprep.subr.bf16.mxu1 %v4909_v6  ;;  %1777 = vrot.lane.b32.xlu0 %v5090_v7, %s4923_s29 }
  0xa6   : >> { %v520_v32 = vsel %vm388_vm7, %v518_v31, %v519_v30  ;;  %1766 = vrot.lane.b32.xlu1 %v5093_v8, %s4911_s10 }
  0xa7   : >> { %v521_v34 = vsel %vm390_vm1, %v515_v27, %v520_v32  ;;  %v467_v35 = vpop.permute.xlu1 %466  ;;  %v465_v36 = vpop.permute.xlu0 %464 }
  0xa8   : >> { %v469_v37 = vrot.slane %v467_v35, 4  ;;  %v468_v38 = vrot.slane %v465_v36, 4  ;;  %v4361_v39 = vcombine.high %v500_v33, %v521_v34  ;;  %v4360_v40 = vcombine.low %v500_v33, %v521_v34 }
  0xa9   : >> { %1738 = vrot.lane.b32.xlu0 %v5090_v7, %s4924_s11 }
  0xaa   : >> { %v473_v41 = vsel %vm471_vm10, %v467_v35, %v469_v37  ;;  %1059 = vmatprep.subr.bf16.mxu0 %v4361_v39  ;;  %v470_v45 = vsel %vm388_vm7, %v468_v38, %v469_v37  ;;  %1779 = vrot.lane.b32.xlu1 %v5093_v8, %s4923_s29 }
  0xab   : >> { %477 = vst.msk [vmem:[#allocation2 + $0x50] sm:$0xf] %vm395_vm9, %v473_v41  ;;  %v481_v42 = vpop.permute.xlu1 %480  ;;  %v479_v43 = vpop.permute.xlu0 %478  ;;  %v4726_v44 = vld [vmem:[#allocation2 + $0x68] ss:$12 sps:$4 sm:$0xff]   ;;  %1060 = vmatpush1.bf16.msra.mxu0 %v4360_v40  ;;  %v472_v50 = vsel %vm471_vm10, %v465_v36, %v470_v45 }
  0xac   : >> { %v483_v46 = vrot.slane %v481_v42, 4  ;;  %v482_v47 = vrot.slane %v479_v43, 4  ;;  %1825 = vst.msk [vmem:[#allocation2 + $0x68] sm:$0xf] %vm395_vm9, %v1820_v10  ;;  %1829 = vst.msk [vmem:[#allocation2 + $0x74] sm:$0xf] %vm395_vm9, %v5072_v5  ;;  %1101 = vmatpush1.bf16.msra.mxu1 %v4726_v44 }
  0xad   : >> { %1102 = vmatprep.subr.bf16.mxu1 %v4909_v6  ;;  %1751 = vrot.lane.b32.xlu0 %v5090_v7, %s4919_s27 }
  0xae   : >> { %v487_v48 = vsel %vm485_vm2, %v481_v42, %v483_v46  ;;  %v484_v49 = vsel %vm388_vm7, %v482_v47, %v483_v46  ;;  %v4917_v47 = vmov 65535   ;;  %1740 = vrot.lane.b32.xlu1 %v5093_v8, %s4924_s11 }
  0xaf   : >> { %491 = vst.msk [vmem:[#allocation2 + $0x5c] sm:$0xf] %vm395_vm9, %v487_v48  ;;  %v486_v51 = vsel %vm485_vm2, %v479_v43, %v484_v49  ;;  %v439_v52 = vpop.permute.xlu1 %438  ;;  %v437_v53 = vpop.permute.xlu0 %436  ;;  %v1042_v48 = vsel %vm388_vm7, 4294967295, %v4917_v47 }
  0xb0   : >> { %v441_v54 = vrot.slane %v439_v52, 4  ;;  %v440_v10 = vrot.slane %v437_v53, 4  ;;  %v4358_v55 = vcombine.high %v472_v50, %v486_v51  ;;  %v4357_v56 = vcombine.low %v472_v50, %v486_v51 }
  0xb1   : >> { %1725 = vrot.lane.b32.xlu0 %v5090_v7, %s4922_s28  ;;  %v1698_v7 = vld [vmem:[%s6164_s8] sm:$0xff] }
  0xb2   : >> { %v445_v57 = vsel %vm443_vm12, %v439_v52, %v441_v54  ;;  %1061 = vmatprep.subr.bf16.mxu0 %v4358_v55  ;;  %v442_v60 = vsel %vm388_vm7, %v440_v10, %v441_v54  ;;  %1753 = vrot.lane.b32.xlu1 %v5093_v8, %s4919_s27 }
  0xb3   : >> { %449 = vst.msk [vmem:[#allocation2 + $0x38] sm:$0xf] %vm395_vm9, %v445_v57  ;;  %v453_v58 = vpop.permute.xlu1 %452  ;;  %v451_v59 = vpop.permute.xlu0 %450  ;;  %1062 = vmatpush1.bf16.msra.mxu0 %v4357_v56  ;;  %v444_v2 = vsel %vm443_vm12, %v437_v53, %v442_v60  ;;  %v803_v53 = vld [vmem:[#allocation2 + $0x144] sm:$0x11] }
  0xb4   : >> { %v455_v61 = vrot.slane %v453_v58, 4  ;;  %v454_v62 = vrot.slane %v451_v59, 4 }
  0xb5   : >> { %1999 = vrot.lane.b32.xlu0 %v5140_v18, %s4918_s24 }
  0xb6   : >> { %v459_v63 = vsel %vm457_vm11, %v453_v58, %v455_v61  ;;  %v456_v0 = vsel %vm388_vm7, %v454_v62, %v455_v61  ;;  %v4727_v1 = vld [vmem:[#allocation2 + $0x50] ss:$12 sps:$4 sm:$0xff]   ;;  %1727 = vrot.lane.b32.xlu1 %v5093_v8, %s4922_s28 }
  0xb7   : >> { %463 = vst.msk [vmem:[#allocation2 + $0x44] sm:$0xf] %vm395_vm9, %v459_v63  ;;  %v458_v3 = vsel %vm457_vm11, %v451_v59, %v456_v0  ;;  %v413_v9 = vpop.permute.xlu1 %412  ;;  %v411_v11 = vpop.permute.xlu0 %410  ;;  %1103 = vmatpush1.bf16.msra.mxu1 %v4727_v1  ;;  %v1043_v59 = vsel %vm1041_vm3, %v1042_v48, 0 }
  0xb8   : >> { %v415_v12 = vrot.slane %v413_v9, 4  ;;  %422 = vst.msk [vmem:[#allocation2 + $0x20] sm:$0xf] %vm395_vm9, %v413_v9  ;;  %v414_v13 = vrot.slane %v411_v11, 4  ;;  %v4355_v15 = vcombine.high %v444_v2, %v458_v3  ;;  %v4354_v16 = vcombine.low %v444_v2, %v458_v3  ;;  %1104 = vmatprep.subr.bf16.mxu1 %v4909_v6 }
  0xb9   : >> { %2012 = vrot.lane.b32.xlu0 %v5140_v18, %s4925_s12 }
  0xba   : >> { %1063 = vmatprep.subr.bf16.mxu0 %v4355_v15  ;;  %v416_v21 = vsel %vm388_vm7, %v414_v13, %v415_v12  ;;  %v804_v15 = vld [vmem:[#allocation2 + $0x14c] sm:$0x1]  ;;  %2001 = vrot.lane.b32.xlu1 %v5134_v14, %s4918_s24  ;;  %s1361_s24 = scalar_lea.vmem %s5039_s19, %s4602_s18 }
  0xbb   : >> { %v426_v19 = vpop.permute.xlu1 %425  ;;  %v424_v20 = vpop.permute.xlu0 %423  ;;  %1064 = vmatpush1.bf16.msra.mxu0 %v4354_v16  ;;  %v418_v28 = vsel %vm417_vm15, %v411_v11, %v416_v21 }
  0xbc   : >> { %v428_v23 = vrot.slane %v426_v19, 4  ;;  %435 = vst.msk [vmem:[#allocation2 + $0x2c] sm:$0xf] %vm395_vm9, %v426_v19  ;;  %v427_v25 = vrot.slane %v424_v20, 4 }
  0xbd   : >> { %1973 = vrot.lane.b32.xlu0 %v5140_v18, %s4911_s10 }
  0xbe   : >> { %v429_v26 = vsel %vm388_vm7, %v427_v25, %v428_v23  ;;  %v4728_v27 = vld [vmem:[#allocation2 + $0x38] ss:$12 sps:$4 sm:$0xff]   ;;  %2014 = vrot.lane.b32.xlu1 %v5134_v14, %s4925_s12 }
  0xbf   : >> { %v431_v29 = vsel %vm430_vm13, %v424_v20, %v429_v26  ;;  %v385_v30 = vpop.permute.xlu1 %384  ;;  %v383_v31 = vpop.permute.xlu0 %382  ;;  %1105 = vmatpush1.bf16.msra.mxu1 %v4728_v27 }
  0xc0   : >> { %v387_v32 = vrot.slane %v385_v30, 4  ;;  %396 = vst.msk [vmem:[#allocation2 + $0x8] sm:$0xf] %vm395_vm9, %v385_v30  ;;  %v386_v33 = vrot.slane %v383_v31, 4  ;;  %v4352_v34 = vcombine.high %v418_v28, %v431_v29  ;;  %v4351_v35 = vcombine.low %v418_v28, %v431_v29  ;;  %1106 = vmatprep.subr.bf16.mxu1 %v4909_v6 }
  0xc1   : >> { %1986 = vrot.lane.b32.xlu0 %v5140_v18, %s4923_s29 }
  0xc2   : >> { %1065 = vmatprep.subr.bf16.mxu0 %v4352_v34  ;;  %v389_v39 = vsel %vm388_vm7, %v386_v33, %v387_v32  ;;  %1975 = vrot.lane.b32.xlu1 %v5134_v14, %s4911_s10 }
  0xc3   : >> { %v400_v36 = vpop.permute.xlu1 %399  ;;  %v398_v37 = vpop.permute.xlu0 %397  ;;  %v4729_v38 = vld [vmem:[#allocation2 + $0x20] ss:$12 sps:$4 sm:$0xff]   ;;  %1066 = vmatpush1.bf16.msra.mxu0 %v4351_v35  ;;  %v391_v43 = vsel %vm390_vm1, %v383_v31, %v389_v39 }
  0xc4   : >> { %v402_v40 = vrot.slane %v400_v36, 4  ;;  %409 = vst.msk [vmem:[#allocation2 + $0x14] sm:$0xf] %vm395_vm9, %v400_v36  ;;  %v401_v41 = vrot.slane %v398_v37, 4  ;;  %1107 = vmatpush1.bf16.msra.mxu1 %v4729_v38 }
  0xc5   : >> { %1108 = vmatprep.subr.bf16.mxu1 %v4909_v6  ;;  %1949 = vrot.lane.b32.xlu0 %v5140_v18, %s4924_s11 }
  0xc6   : >> { %v403_v42 = vsel %vm388_vm7, %v401_v41, %v402_v40  ;;  %1988 = vrot.lane.b32.xlu1 %v5134_v14, %s4923_s29  ;;  %s4929_s29 = smov (!%p5062_p6), 64  }
  0xc7   : >> { %v405_v44 = vsel %vm404_vm14, %v398_v37, %v403_v42  ;;  %v738_v45 = vpop.permute.xlu1 %737  ;;  %v736_v46 = vpop.permute.xlu0 %735 }
  0xc8   : >> { %v740_v49 = vrot.slane %v738_v45, 4  ;;  %v739_v50 = vrot.slane %v736_v46, 4  ;;  %v4349_v51 = vcombine.high %v391_v43, %v405_v44  ;;  %v4348_v52 = vcombine.low %v391_v43, %v405_v44 }
  0xc9   : >> { %1961 = vrot.lane.b32.xlu0 %v5140_v18, %s4919_s27 }
  0xca   : >> { %v743_v54 = vsel %vm499_vm0, %v738_v45, %v740_v49  ;;  %v741_v10 = vsel %vm388_vm7, %v739_v50, %v740_v49  ;;  %1067 = vmatprep.subr.bf16.mxu0 %v4349_v51  ;;  %1951 = vrot.lane.b32.xlu1 %v5134_v14, %s4924_s11  ;;  %s4930_s11 = smov (!%p5062_p6), 58  }
  0xcb   : >> { %747 = vst.msk [vmem:[#allocation2 + $0x140] sm:$0xf] %vm395_vm9, %v743_v54  ;;  %v742_v55 = vsel %vm499_vm0, %v736_v46, %v741_v10  ;;  %v712_v56 = vpop.permute.xlu1 %711  ;;  %v710_v57 = vpop.permute.xlu0 %709  ;;  %v4730_v58 = vld [vmem:[#allocation2 + $0x8] ss:$12 sps:$4 sm:$0xff]   ;;  %1068 = vmatpush1.bf16.msra.mxu0 %v4348_v52 }
  0xcc   : >> { %v714_v60 = vrot.slane %v712_v56, 4  ;;  %v713_v61 = vrot.slane %v710_v57, 4  ;;  %1722 = vst.msk [vmem:[#allocation2 + $0x8] sm:$0xf] %vm395_vm9, %v5093_v8  ;;  %v4388_v62 = vcombine.high %v742_v55, %v803_v53  ;;  %v4387_v63 = vcombine.low %v742_v55, %v803_v53  ;;  %1109 = vmatpush1.bf16.msra.mxu1 %v4730_v58 }
  0xcd   : >> { %1114 = vmatprep.subr.bf16.mxu1 %v4909_v6  ;;  %1937 = vrot.lane.b32.xlu0 %v5140_v18, %s4922_s28 }
  0xce   : >> { %v717_v0 = vsel %vm471_vm10, %v712_v56, %v714_v60  ;;  %v1048_v1 = vand.u32 %v4388_v62, %v1043_v59  ;;  %v1045_v2 = vand.u32 %v4387_v63, %v1043_v59  ;;  %v715_v11 = vsel %vm388_vm7, %v713_v61, %v714_v60  ;;  %1963 = vrot.lane.b32.xlu1 %v5134_v14, %s4919_s27  ;;  %s4927_s27 = smov (!%p5062_p6), 122  }
  0xcf   : >> { %721 = vst.msk [vmem:[#allocation2 + $0x128] sm:$0xf] %vm395_vm9, %v717_v0  ;;  %v725_v3 = vpop.permute.xlu1 %724  ;;  %v723_v9 = vpop.permute.xlu0 %722  ;;  %v716_v21 = vsel %vm471_vm10, %v710_v57, %v715_v11  ;;  %vm1732_vm10 = vcmask 1031168  }
  0xd0   : >> { %v727_v12 = vrot.slane %v725_v3, 4  ;;  %v726_v13 = vrot.slane %v723_v9, 4  ;;  %1073 = vmatprep.subr.bf16.mxu0 %v1048_v1 }
  0xd1   : >> { %1074 = vmatpush2.bf16.msra.mxu0 %v1045_v2  ;;  %1907 = vrot.lane.b32.xlu0 %v5058_v4, %s4925_s12 }
  0xd2   : >> { %v802_v16 = vld [vmem:[#allocation2 + $0x140] sm:$0xf]  ;;  %v730_v19 = vsel %vm485_vm2, %v725_v3, %v727_v12  ;;  %v728_v20 = vsel %vm388_vm7, %v726_v13, %v727_v12  ;;  %1939 = vrot.lane.b32.xlu1 %v5134_v14, %s4922_s28  ;;  %s4928_s28 = smov (!%p5062_p6), 70  }
  0xd3   : >> { %2031 = vst.msk [vmem:[#allocation2 + $0x140] sm:$0xf] %vm395_vm9, %v2026_v17  ;;  %734 = vst.msk [vmem:[#allocation2 + $0x134] sm:$0xf] %vm395_vm9, %v730_v19  ;;  %v729_v23 = vsel %vm485_vm2, %v723_v9, %v728_v20  ;;  %v686_v25 = vpop.permute.xlu1 %685  ;;  %v684_v26 = vpop.permute.xlu0 %683  ;;  %v4389_v27 = vcombine.low %v802_v16, %v804_v15 }
  0xd4   : >> { %v688_v28 = vrot.slane %v686_v25, 4  ;;  %v687_v29 = vrot.slane %v684_v26, 4  ;;  %v4385_v30 = vcombine.high %v716_v21, %v729_v23  ;;  %v4384_v31 = vcombine.low %v716_v21, %v729_v23 }
  0xd5   : >> { %v1051_v32 = vand.u32 %v4389_v27, %v1043_v59  ;;  %1702 = vperm.xlu0 %4721, %v1698_v7  }
  0xd6   : >> { %v691_v33 = vsel %vm443_vm12, %v686_v25, %v688_v28  ;;  %1075 = vmatprep.subr.bf16.mxu0 %v4385_v30  ;;  %v689_v35 = vsel %vm388_vm7, %v687_v29, %v688_v28  ;;  %1909 = vrot.lane.b32.xlu1 %v5072_v5, %s4925_s12  ;;  %s4931_s12 = smov (!%p5062_p6), 12  }
  0xd7   : >> { %695 = vst.msk [vmem:[#allocation2 + $0x110] sm:$0xf] %vm395_vm9, %v691_v33  ;;  %1115 = vmatpush2.bf16.msra.mxu1 %v1051_v32  ;;  %v699_v17 = vpop.permute.xlu1 %698  ;;  %v697_v34 = vpop.permute.xlu0 %696  ;;  %1076 = vmatpush2.bf16.msra.mxu0 %v4384_v31  ;;  %v690_v41 = vsel %vm443_vm12, %v684_v26, %v689_v35 }
  0xd8   : >> { %v701_v36 = vrot.slane %v699_v17, 4  ;;  %v700_v37 = vrot.slane %v697_v34, 4  ;;  %1116 = vmatprep.subr.bf16.mxu1 %v4909_v6 }
  0xda   : >> { %v704_v38 = vsel %vm457_vm11, %v699_v17, %v701_v36  ;;  %v702_v39 = vsel %vm388_vm7, %v700_v37, %v701_v36  ;;  %v4731_v40 = vld [vmem:[#allocation2 + $0x128] ss:$12 sps:$4 sm:$0xff]  }
  0xdb   : >> { %708 = vst.msk [vmem:[#allocation2 + $0x11c] sm:$0xf] %vm395_vm9, %v704_v38  ;;  %v703_v42 = vsel %vm457_vm11, %v697_v34, %v702_v39  ;;  %v662_v43 = vpop.permute.xlu1 %661  ;;  %v660_v44 = vpop.permute.xlu0 %659  ;;  %1117 = vmatpush2.bf16.msra.mxu1 %v4731_v40  ;;  %v4920_v38 = vmov 0.0   ;;  %vm1745_vm11 = vcmask 1014784  }
  0xdc   : >> { %v664_v45 = vrot.slane %v662_v43, 4  ;;  %670 = vst.msk [vmem:[#allocation2 + $0xf8] sm:$0xf] %vm395_vm9, %v662_v43  ;;  %v663_v46 = vrot.slane %v660_v44, 4  ;;  %v4382_v47 = vcombine.high %v690_v41, %v703_v42  ;;  %v4381_v48 = vcombine.low %v690_v41, %v703_v42  ;;  %1118 = vmatprep.subr.bf16.mxu1 %v4909_v6 }
  0xde   : >> { %1077 = vmatprep.subr.bf16.mxu0 %v4382_v47  ;;  %v665_v51 = vsel %vm388_vm7, %v663_v46, %v664_v45 }
  0xdf   : >> { %v674_v49 = vpop.permute.xlu1 %673  ;;  %v672_v50 = vpop.permute.xlu0 %671  ;;  %1078 = vmatpush2.bf16.msra.mxu0 %v4381_v48  ;;  %v666_v55 = vsel %vm417_vm15, %v660_v44, %v665_v51 }
  0xe0   : >> { %v676_v52 = vrot.slane %v674_v49, 4  ;;  %682 = vst.msk [vmem:[#allocation2 + $0x104] sm:$0xf] %vm395_vm9, %v674_v49  ;;  %v675_v53 = vrot.slane %v672_v50, 4 }
  0xe2   : >> { %v677_v54 = vsel %vm388_vm7, %v675_v53, %v676_v52  ;;  %v4732_v10 = vld [vmem:[#allocation2 + $0x110] ss:$12 sps:$4 sm:$0xff]  }
  0xe3   : >> { %v678_v56 = vsel %vm430_vm13, %v672_v50, %v677_v54  ;;  %v638_v57 = vpop.permute.xlu1 %637  ;;  %v636_v58 = vpop.permute.xlu0 %635  ;;  %1119 = vmatpush2.bf16.msra.mxu1 %v4732_v10  ;;  %vm1812_vm13 = vcmask 15360  }
  0xe4   : >> { %v640_v59 = vrot.slane %v638_v57, 4  ;;  %646 = vst.msk [vmem:[#allocation2 + $0xe0] sm:$0xf] %vm395_vm9, %v638_v57  ;;  %v639_v60 = vrot.slane %v636_v58, 4  ;;  %v4379_v61 = vcombine.high %v666_v55, %v678_v56  ;;  %v4378_v62 = vcombine.low %v666_v55, %v678_v56  ;;  %1120 = vmatprep.subr.bf16.mxu1 %v4909_v6 }
  0xe6   : >> { %1079 = vmatprep.subr.bf16.mxu0 %v4379_v61  ;;  %v641_v2 = vsel %vm388_vm7, %v639_v60, %v640_v59 }
  0xe7   : >> { %v650_v63 = vpop.permute.xlu1 %649  ;;  %v648_v0 = vpop.permute.xlu0 %647  ;;  %v4733_v1 = vld [vmem:[#allocation2 + $0xf8] ss:$12 sps:$4 sm:$0xff]   ;;  %1080 = vmatpush2.bf16.msra.mxu0 %v4378_v62  ;;  %v642_v12 = vsel %vm390_vm1, %v636_v58, %v641_v2 }
  0xe8   : >> { %v652_v3 = vrot.slane %v650_v63, 4  ;;  %658 = vst.msk [vmem:[#allocation2 + $0xec] sm:$0xf] %vm395_vm9, %v650_v63  ;;  %v651_v9 = vrot.slane %v648_v0, 4  ;;  %1121 = vmatpush2.bf16.msra.mxu1 %v4733_v1 }
  0xe9   : >> { %1122 = vmatprep.subr.bf16.mxu1 %v4909_v6 }
  0xea   : >> { %v653_v11 = vsel %vm388_vm7, %v651_v9, %v652_v3 }
  0xeb   : >> { %v654_v13 = vsel %vm404_vm14, %v648_v0, %v653_v11  ;;  %v604_v15 = vpop.permute.xlu1 %603  ;;  %v602_v16 = vpop.permute.xlu0 %601  ;;  %vm2313_vm14 = vcmask 719872  }
  0xec   : >> { %v606_v19 = vrot.slane %v604_v15, 4  ;;  %v605_v20 = vrot.slane %v602_v16, 4  ;;  %v4376_v21 = vcombine.high %v642_v12, %v654_v13  ;;  %v4375_v23 = vcombine.low %v642_v12, %v654_v13 }
  0xee   : >> { %v609_v25 = vsel %vm485_vm2, %v604_v15, %v606_v19  ;;  %1081 = vmatprep.subr.bf16.mxu0 %v4376_v21  ;;  %v607_v29 = vsel %vm388_vm7, %v605_v20, %v606_v19 }
  0xef   : >> { %613 = vst.msk [vmem:[#allocation2 + $0xc8] sm:$0xf] %vm395_vm9, %v609_v25  ;;  %v617_v26 = vpop.permute.xlu1 %616  ;;  %v615_v27 = vpop.permute.xlu0 %614  ;;  %v4734_v28 = vld [vmem:[#allocation2 + $0xe0] ss:$12 sps:$4 sm:$0xff]   ;;  %1082 = vmatpush2.bf16.msra.mxu0 %v4375_v23  ;;  %v608_v17 = vsel %vm485_vm2, %v602_v16, %v607_v29 }
  0xf0   : >> { %v619_v30 = vrot.slane %v617_v26, 4  ;;  %v618_v31 = vrot.slane %v615_v27, 4  ;;  %1934 = vst.msk [vmem:[#allocation2 + $0xe0] sm:$0xf] %vm395_vm9, %v5134_v14  ;;  %1123 = vmatpush2.bf16.msra.mxu1 %v4734_v28 }
  0xf1   : >> { %1124 = vmatprep.subr.bf16.mxu1 %v4909_v6 }
  0xf2   : >> { %v622_v32 = vsel %vm499_vm0, %v617_v26, %v619_v30  ;;  %v620_v33 = vsel %vm388_vm7, %v618_v31, %v619_v30 }
  0xf3   : >> { %626 = vst.msk [vmem:[#allocation2 + $0xd4] sm:$0xf] %vm395_vm9, %v622_v32  ;;  %v621_v34 = vsel %vm499_vm0, %v615_v27, %v620_v33  ;;  %v1882_v50 = vpop.permute.xlu1 %1881 }
  0xf4   : >> { %v4373_v35 = vcombine.high %v608_v17, %v621_v34  ;;  %v4372_v36 = vcombine.low %v608_v17, %v621_v34  ;;  %v1885_v55 = vrot.slane %v1882_v50, 4  ;;  %v1357_v34 = vld [vmem:[%s6163_s7] sm:$0xff] }
  0xf6   : >> { %1083 = vmatprep.subr.bf16.mxu0 %v4373_v35 }
  0xf7   : >> { %1084 = vmatpush2.bf16.msra.mxu0 %v4372_v36  ;;  %v1884_v52 = vpop.permute.xlu1 %1883 }
  0xf8   : >> { %v1886_v56 = vrot.slane %v1884_v52, 4 }
  0xfa   : >> { %v4735_v37 = vld [vmem:[#allocation2 + $0xc8] ss:$12 sps:$4 sm:$0xff]   ;;  %1086 = vmatmul.mubr.bf16.vlgmr.msra.gmra.mxu0 %v5173_v24  ;;  %v1887_v58 = vsel %vm388_vm7, %v1885_v55, %v1886_v56  ;;  %v1889_v1 = vsel %vm1784_vm6, %v1884_v52, %v1886_v56 }
  0xfb   : >> { %1926 = vst.msk [vmem:[#allocation2 + $0xd4] sm:$0xf] %vm395_vm9, %v1921_v22  ;;  %1125 = vmatpush2.bf16.msra.mxu1 %v4735_v37  ;;  %1221 = vmatprep.mubr.f32.mxu0 %v4920_v38  ;;  %v1897_v54 = vpop.permute.xlu1 %1896  ;;  %v5429_v60 = vsel %vm1784_vm6, %v1882_v50, %v1887_v58  ;;  %1893 = vst.msk [vmem:[#allocation2 + $0xb0] sm:$0xf] %vm395_vm9, %v1889_v1 }
  0xfc   : >> { %4615 = vmatprep.subr.mxu1 %v4920_v38  ;;  %v5416_v44 = vpop.permute.xlu0 %1141  ;;  %v1899_v57 = vrot.slane %v1897_v54, 4  ;;  %1892 = vst [vmem:[#allocation2 + $0xa8] sm:$0xff] %v5429_v60 }
  0xfe   : >> { %1127 = vmatmul.mubr.bf16.vlgmr.msra.gmra.mxu1 %v5173_v24  ;;  %v1137_v24 = vld [vmem:[%s6161_s5] sm:$0xf]  ;;  %v1902_v2 = vsel %vm1144_vm5, %v1897_v54, %v1899_v57 }
  0xff   : >> { %4617 = vmatprep.mubr.msk.f32.mxu1 %vm4921_vm4, %v4920_v38  ;;  %v1859_v3 = vpop.permute.xlu1 %1858  ;;  %1906 = vst.msk [vmem:[#allocation2 + $0xbc] sm:$0xf] %vm395_vm9, %v1902_v2 }
 0x100   : >> { %v1895_v45 = vpop.permute.xlu0 %1894  ;;  %1867 = vst.msk [vmem:[#allocation2 + $0x98] sm:$0xf] %vm395_vm9, %v1859_v3  ;;  %v1861_v19 = vrot.slane %v1859_v3, 4 }
 0x101   : >> { %v1898_v53 = vrot.slane %v1895_v45, 4 }
 0x103   : >> { %v1900_v59 = vsel %vm388_vm7, %v1898_v53, %v1899_v57  ;;  %v1871_v9 = vpop.permute.xlu1 %1870 }
 0x104   : >> { %v1857_v46 = vpop.permute.xlu0 %1856  ;;  %v5432_v61 = vsel %vm1144_vm5, %v1895_v45, %v1900_v59  ;;  %v1873_v12 = vrot.slane %v1871_v9, 4 }
 0x105   : >> { %1905 = vst [vmem:[#allocation2 + $0xb4] sm:$0xff] %v5432_v61  ;;  %v4442_v62 = vcombine.low %v5429_v60, %v5432_v61  ;;  %v4443_v63 = vcombine.high %v5429_v60, %v5432_v61  ;;  %v1860_v13 = vrot.slane %v1857_v46, 4  ;;  %v4740_v60 = vld [vmem:[#allocation2 + $0x68] ss:$12 sps:$4 sm:$0xff]   ;;  %v4744_v61 = vld [vmem:[#allocation2 + $0x64] ss:$12 sps:$4 sm:$0xff]  }
 0x106   : >> { %v1876_v16 = vsel %vm443_vm12, %v1871_v9, %v1873_v12 }
 0x107   : >> { %1880 = vst.msk [vmem:[#allocation2 + $0xa4] sm:$0xf] %vm395_vm9, %v1876_v16  ;;  %v1835_v20 = vpop.permute.xlu1 %1834  ;;  %v1862_v21 = vsel %vm388_vm7, %v1860_v13, %v1861_v19 }
 0x108   : >> { %v1869_v47 = vpop.permute.xlu0 %1868  ;;  %1843 = vst.msk [vmem:[#allocation2 + $0x80] sm:$0xf] %vm395_vm9, %v1835_v20  ;;  %v5457_v26 = vsel %vm1758_vm8, %v1857_v46, %v1862_v21  ;;  %v1837_v17 = vrot.slane %v1835_v20, 4  ;;  %v5552_v21 = vld [vmem:[%s6159_s3] sm:$0xff] }
 0x109   : >> { %v1872_v15 = vrot.slane %v1869_v47, 4  ;;  %1866 = vst [vmem:[#allocation2 + $0x90] sm:$0xff] %v5457_v26 }
 0x10b   : >> { %v1874_v23 = vsel %vm388_vm7, %v1872_v15, %v1873_v12  ;;  %v1847_v28 = vpop.permute.xlu1 %1846 }
 0x10c   : >> { %v5418_v48 = vpop.permute.xlu0 %1832  ;;  %v5460_v27 = vsel %vm443_vm12, %v1869_v47, %v1874_v23  ;;  %1855 = vst.msk [vmem:[#allocation2 + $0x8c] sm:$0xf] %vm395_vm9, %v1847_v28  ;;  %v1849_v36 = vrot.slane %v1847_v28, 4 }
 0x10d   : >> { %1879 = vst [vmem:[#allocation2 + $0x9c] sm:$0xff] %v5460_v27  ;;  %v1836_v29 = vrot.slane %v5418_v48, 4  ;;  %v4439_v30 = vcombine.low %v5457_v26, %v5460_v27  ;;  %v4440_v31 = vcombine.high %v5457_v26, %v5460_v27 }
 0x10f   : >> { %v1794_v37 = vpop.permute.xlu1 %1793  ;;  %v1838_v7 = vsel %vm388_vm7, %v1836_v29, %v1837_v17 }
 0x110   : >> { %v5420_v49 = vpop.permute.xlu0 %1844 }
 0x111   : >> { %v1848_v32 = vrot.slane %v5420_v49, 4 }
 0x113   : >> { %v1808_v45 = vpop.permute.xlu1 %1807 }
 0x114   : >> { %v5422_v51 = vpop.permute.xlu0 %1791  ;;  %v1810_v46 = vrot.slane %v1808_v45, 4 }
 0x115   : >> { %v1795_v33 = vrot.slane %v5422_v51, 4 }
 0x116   : >> { %v1814_v52 = vsel %vm1812_vm13, %v1808_v45, %v1810_v46 }
 0x117   : >> { %1818 = vst.msk [vmem:[#allocation2 + $0x5c] sm:$0xf] %vm395_vm9, %v1814_v52 }
 0x118   : >> { %v5424_v10 = vpop.permute.xlu0 %1805  ;;  %v1767_v54 = vpop.permute.xlu1 %1766 }
 0x119   : >> { %v1769_v55 = vrot.slane %v1767_v54, 4 }
 0x11b   : >> { %v1772_v58 = vsel %vm443_vm12, %v1767_v54, %v1769_v55 }
 0x11c   : >> { %v5440_v0 = vpop.permute.xlu0 %1764  ;;  %1776 = vst.msk [vmem:[#allocation2 + $0x38] sm:$0xf] %vm395_vm9, %v1772_v58  ;;  %v1780_v1 = vpop.permute.xlu1 %1779 }
 0x11d   : >> { %v1768_v50 = vrot.slane %v5440_v0, 4  ;;  %v1782_v2 = vrot.slane %v1780_v1, 4 }
 0x11f   : >> { %v1770_v57 = vsel %vm388_vm7, %v1768_v50, %v1769_v55  ;;  %v1786_v15 = vsel %vm1784_vm6, %v1780_v1, %v1782_v2 }
 0x120   : >> { %v5447_v11 = vpop.permute.xlu0 %1777  ;;  %1790 = vst.msk [vmem:[#allocation2 + $0x44] sm:$0xf] %vm395_vm9, %v1786_v15  ;;  %v1741_v16 = vpop.permute.xlu1 %1740 }
 0x121   : >> { %v1781_v56 = vrot.slane %v5447_v11, 4  ;;  %v1743_v19 = vrot.slane %v1741_v16, 4  ;;  %1750 = vst.msk [vmem:[#allocation2 + $0x20] sm:$0xf] %vm395_vm9, %v1741_v16 }
 0x123   : >> { %v1783_v13 = vsel %vm388_vm7, %v1781_v56, %v1782_v2 }
 0x124   : >> { %v5454_v25 = vpop.permute.xlu0 %1738  ;;  %v1754_v29 = vpop.permute.xlu1 %1753 }
 0x125   : >> { %v1742_v12 = vrot.slane %v5454_v25, 4  ;;  %1763 = vst.msk [vmem:[#allocation2 + $0x2c] sm:$0xf] %vm395_vm9, %v1754_v29 }
 0x127   : >> { %v1744_v28 = vsel %vm388_vm7, %v1742_v12, %v1743_v19  ;;  %v4745_v26 = vld [vmem:[#allocation2 + $0x38] ss:$12 sps:$4 sm:$0xff]  }
 0x128   : >> { %v5476_v35 = vpop.permute.xlu0 %1751 }
 0x129   : >> { %v1755_v23 = vrot.slane %v5476_v35, 4 }
 0x12c   : >> { %v4746_v27 = vld [vmem:[#allocation2 + $0x20] ss:$12 sps:$4 sm:$0xff]  }
 0x1ba   : >> { %v1087_v4 = vpop.f32.mrf.mxu0 }
 0x1bb   : >> { %v1134_v22 = vmax.f32 %v1087_v4, 0.0  ;;  %v1796_v4 = vrot.slane %v1794_v37, 4 }
 0x1bc   : >> { %v1089_v8 = vpop.f32.mrf.mxu0 }
 0x1bd   : >> { %v1135_v18 = vmax.f32 %v1089_v8, 0.0  ;;  %v1809_v8 = vrot.slane %v5424_v10, 4 }
 0x1be   : >> { %v1091_v39 = vpop.f32.mrf.mxu0  ;;  %v1128_v40 = vpop.f32.mrf.mxu1 }
 0x1bf   : >> { %4392 = vmatprep.subr.msk.mxu0 %vm388_vm7, %v1135_v18  ;;  %v1136_v41 = vmax.f32 %v1128_v40, 0.0  ;;  %v5484_v18 = vsel %vm1732_vm10, %v5418_v48, %v1838_v7  ;;  %v1358_v39 = vld [vmem:[%s6163_s7 + $0x8] sm:$0xff]  ;;  %v1728_v7 = vpop.permute.xlu1 %1727 }
 0x1c0   : >> { %v1092_v42 = vpop.f32.mrf.mxu0  ;;  %4393 = vmatpush1.msk.msra.mxu0 %vm388_vm7, %v1134_v22  ;;  %v1130_v14 = vpop.f32.mrf.mxu1  ;;  %v1850_v22 = vsel %vm388_vm7, %v1848_v32, %v1849_v36  ;;  %v1363_v40 = vld [vmem:[%s1361_s24 + $0x8] sm:$0xf]  ;;  %1842 = vst [vmem:[#allocation2 + $0x78] sm:$0xff] %v5484_v18  ;;  %v1756_v32 = vrot.slane %v1754_v29, 4  ;;  %1737 = vst.msk [vmem:[#allocation2 + $0x14] sm:$0xf] %vm395_vm9, %v1728_v7 }
 0x1c1   : >> { %4394 = vmatmul.mubr.msk.f32.vlgmr.msra.gmra.mxu0 %vm1144_vm5, %v1137_v24  ;;  %4616 = vmatpush3.msk.msra.mxu1 %vm388_vm7, %v1136_v41  ;;  %v5493_v41 = vsel %vm1745_vm11, %v5420_v49, %v1850_v22  ;;  %v1797_v42 = vsel %vm388_vm7, %v1795_v33, %v1796_v4  ;;  %v1800_v14 = vsel %vm1144_vm5, %v1794_v37, %v1796_v4  ;;  %v1726_v49 = vpop.permute.xlu0 %1725  ;;  %v1730_v4 = vrot.slane %v1728_v7, 4 }
 0x1c2   : >> { %1443 = vmatprep.mubr.f32.mxu0 %v4920_v38  ;;  %4618 = vmatmul.mubr.msk.f32.vlgmr.msra.gmra.mxu1 %vm1144_vm5, %v1137_v24  ;;  %v1131_v5 = vpop.f32.mrf.mxu1  ;;  %v1362_v24 = vld [vmem:[%s1361_s24] sm:$0xff]  ;;  %1854 = vst [vmem:[#allocation2 + $0x84] sm:$0xff] %v5493_v41  ;;  %1804 = vst.msk [vmem:[#allocation2 + $0x50] sm:$0xf] %vm395_vm9, %v1800_v14  ;;  %v4436_v47 = vcombine.low %v5484_v18, %v5493_v41  ;;  %v4437_v48 = vcombine.high %v5484_v18, %v5493_v41  ;;  %v2086_v18 = vld [vmem:[#allocation2 + $0x138] sm:$0xff]  ;;  %s4926_s24 = smov (!%p5062_p6), 116  }
 0x1c3   : >> { %4622 = vmatprep.mubr.msk.f32.mxu1 %vm1144_vm5, %v1357_v34  ;;  %v1366_v5 = vcombine.high %v1362_v24, %v1362_v24  ;;  %4620 = vmatprep.subr.msk.mxu1 %vm388_vm7, %v1363_v40  ;;  %v1757_v36 = vsel %vm388_vm7, %v1755_v23, %v1756_v32 }
 0x1c4   : >> { %v1132_v43 = vpop.f32.mrf.mxu1  ;;  %4621 = vmatpush3.msk.msra.mxu1 %vm388_vm7, %v1363_v40 }
 0x1c5   : >> { %v5501_v43 = vsel %vm1144_vm5, %v5422_v51, %v1797_v42  ;;  %4398 = vmatprep.subr.msk.mxu0 %vm388_vm7, %v1366_v5  ;;  %v1811_v51 = vsel %vm388_vm7, %v1809_v8, %v1810_v46  ;;  %v2000_v59 = vpop.permute.xlu0 %1999 }
 0x1c6   : >> { %1803 = vst [vmem:[#allocation2 + $0x48] sm:$0xff] %v5501_v43  ;;  %4623 = vmatmul.mubr.msk.f32.vlgmr.msra.gmra.mxu1 %vm1144_vm5, %v1358_v39  ;;  %4399 = vmatpush1.msk.msra.mxu0 %vm388_vm7, %v1362_v24  ;;  %v5520_v53 = vsel %vm1812_vm13, %v5424_v10, %v1811_v51  ;;  %v5531_v10 = vsel %vm443_vm12, %v5440_v0, %v1770_v57  ;;  %v2003_v8 = vrot.slane %v2000_v59, 4 }
 0x1c7   : >> { %1610 = vmatprep.mubr.f32.mxu1 %v4920_v38  ;;  %4400 = vmatmul.mubr.msk.f32.vlgmr.msra.gmra.mxu0 %vm1144_vm5, %v1357_v34  ;;  %1817 = vst [vmem:[#allocation2 + $0x54] sm:$0xff] %v5520_v53  ;;  %1775 = vst [vmem:[#allocation2 + $0x30] sm:$0xff] %v5531_v10  ;;  %v4430_v3 = vcombine.low %v5501_v43, %v5520_v53  ;;  %v4431_v9 = vcombine.high %v5501_v43, %v5520_v53  ;;  %v1729_v34 = vrot.slane %v1726_v49, 4  ;;  %v4747_v41 = vld [vmem:[#allocation2 + $0x8] ss:$12 sps:$4 sm:$0xff]  }
 0x1c8   : >> { %1449 = vmatprep.mubr.f32.mxu0 %v4920_v38  ;;  %v5544_v0 = vsel %vm1784_vm6, %v5447_v11, %v1783_v13  ;;  %v5560_v11 = vsel %vm1745_vm11, %v5454_v25, %v1744_v28  ;;  %v5571_v25 = vsel %vm1758_vm8, %v5476_v35, %v1757_v36 }
 0x1c9   : >> { %1789 = vst [vmem:[#allocation2 + $0x3c] sm:$0xff] %v5544_v0  ;;  %v2013_v20 = vpop.permute.xlu0 %2012  ;;  %1749 = vst [vmem:[#allocation2 + $0x18] sm:$0xff] %v5560_v11  ;;  %v4427_v33 = vcombine.low %v5531_v10, %v5544_v0  ;;  %v4428_v17 = vcombine.high %v5531_v10, %v5544_v0  ;;  %v1731_v22 = vsel %vm388_vm7, %v1729_v34, %v1730_v4 }
 0x1ca   : >> { %1762 = vst [vmem:[#allocation2 + $0x24] sm:$0xff] %v5571_v25  ;;  %v5577_v24 = vsel %vm1732_vm10, %v1726_v49, %v1731_v22  ;;  %v4424_v35 = vcombine.low %v5560_v11, %v5571_v25  ;;  %v4425_v42 = vcombine.high %v5560_v11, %v5571_v25  ;;  %v2016_v5 = vrot.slane %v2013_v20, 4  ;;  %v2070_v25 = vld [vmem:[#allocation2 + $0xd8] sm:$0xff] }
 0x1cb   : >> { %4401 = vmatmul.mubr.msk.f32.gmra.mxu0 %vm1144_vm5, %v1358_v39  ;;  %v2002_v39 = vpop.permute.xlu1 %2001  ;;  %1736 = vst [vmem:[#allocation2 + $0xc] sm:$0xff] %v5577_v24 }
 0x1cc   : >> { %4627 = vmatprep.mubr.msk.f32.mxu0 %vm1144_vm5, %v5552_v21  ;;  %v2004_v40 = vrot.slane %v2002_v39, 4 }
 0x1cd   : >> { %v1974_v37 = vpop.permute.xlu0 %1973 }
 0x1ce   : >> { %v2005_v45 = vsel %vm388_vm7, %v2003_v8, %v2004_v40  ;;  %v2007_v46 = vsel %vm1144_vm5, %v2002_v39, %v2004_v40  ;;  %v1977_v52 = vrot.slane %v1974_v37, 4 }
 0x1cf   : >> { %v5587_v50 = vsel %vm1144_vm5, %v2000_v59, %v2005_v45  ;;  %2011 = vst.msk [vmem:[#allocation2 + $0x128] sm:$0xf] %vm395_vm9, %v2007_v46  ;;  %v2015_v49 = vpop.permute.xlu1 %2014 }
 0x1d0   : >> { %2010 = vst [vmem:[#allocation2 + $0x120] sm:$0xff] %v5587_v50  ;;  %v2017_v51 = vrot.slane %v2015_v49, 4 }
 0x1d1   : >> { %v1987_v14 = vpop.permute.xlu0 %1986 }
 0x1d2   : >> { %v2018_v54 = vsel %vm388_vm7, %v2016_v5, %v2017_v51  ;;  %v2020_v55 = vsel %vm1812_vm13, %v2015_v49, %v2017_v51  ;;  %v1990_v1 = vrot.slane %v1987_v14, 4 }
 0x1d3   : >> { %v5594_v57 = vsel %vm1812_vm13, %v2013_v20, %v2018_v54  ;;  %2024 = vst.msk [vmem:[#allocation2 + $0x134] sm:$0xf] %vm395_vm9, %v2020_v55  ;;  %v1976_v58 = vpop.permute.xlu1 %1975 }
 0x1d4   : >> { %2023 = vst [vmem:[#allocation2 + $0x12c] sm:$0xff] %v5594_v57  ;;  %v1978_v59 = vrot.slane %v1976_v58, 4  ;;  %v6167_v0 = vcombine.high %v5587_v50, %v5594_v57 }
 0x1d5   : >> { %v1950_v56 = vpop.permute.xlu0 %1949 }
 0x1d6   : >> { %v1979_v2 = vsel %vm388_vm7, %v1977_v52, %v1978_v59  ;;  %v1981_v12 = vsel %vm443_vm12, %v1976_v58, %v1978_v59  ;;  %v1953_v28 = vrot.slane %v1950_v56, 4 }
 0x1d7   : >> { %v5601_v13 = vsel %vm443_vm12, %v1974_v37, %v1979_v2  ;;  %1985 = vst.msk [vmem:[#allocation2 + $0x110] sm:$0xf] %vm395_vm9, %v1981_v12  ;;  %v1989_v15 = vpop.permute.xlu1 %1988 }
 0x1d8   : >> { %1984 = vst [vmem:[#allocation2 + $0x108] sm:$0xff] %v5601_v13  ;;  %v1991_v16 = vrot.slane %v1989_v15, 4 }
 0x1d9   : >> { %v1962_v23 = vpop.permute.xlu0 %1961 }
 0x1da   : >> { %v1992_v29 = vsel %vm388_vm7, %v1990_v1, %v1991_v16  ;;  %v1994_v32 = vsel %vm1784_vm6, %v1989_v15, %v1991_v16  ;;  %v1965_v7 = vrot.slane %v1962_v23, 4 }
 0x1db   : >> { %v5612_v34 = vsel %vm1784_vm6, %v1987_v14, %v1992_v29  ;;  %1998 = vst.msk [vmem:[#allocation2 + $0x11c] sm:$0xf] %vm395_vm9, %v1994_v32  ;;  %v1952_v36 = vpop.permute.xlu1 %1951 }
 0x1dc   : >> { %1997 = vst [vmem:[#allocation2 + $0x114] sm:$0xff] %v5612_v34  ;;  %v1954_v37 = vrot.slane %v1952_v36, 4  ;;  %1960 = vst.msk [vmem:[#allocation2 + $0xf8] sm:$0xf] %vm395_vm9, %v1952_v36 }
 0x1dd   : >> { %v1938_v8 = vpop.permute.xlu0 %1937 }
 0x1de   : >> { %v1955_v4 = vsel %vm388_vm7, %v1953_v28, %v1954_v37  ;;  %v1941_v45 = vrot.slane %v1938_v8, 4  ;;  %v1699_v28 = vld [vmem:[%s6164_s8 + $0x8] sm:$0xff] }
 0x1df   : >> { %v5619_v22 = vsel %vm1745_vm11, %v1950_v56, %v1955_v4  ;;  %v1964_v39 = vpop.permute.xlu1 %1963  ;;  %1707 = vperm.xlu1 %4722, %v1699_v28  }
 0x1e0   : >> { %1959 = vst [vmem:[#allocation2 + $0xf0] sm:$0xff] %v5619_v22  ;;  %v1966_v40 = vrot.slane %v1964_v39, 4  ;;  %1972 = vst.msk [vmem:[#allocation2 + $0x104] sm:$0xf] %vm395_vm9, %v1964_v39 }
 0x1e1   : >> { %v1908_v54 = vpop.permute.xlu0 %1907 }
 0x1e2   : >> { %v1967_v46 = vsel %vm388_vm7, %v1965_v7, %v1966_v40  ;;  %v1911_v55 = vrot.slane %v1908_v54, 4  ;;  %v4752_v11 = vld [vmem:[#allocation2 + $0x110] ss:$12 sps:$4 sm:$0xff]  }
 0x1e3   : >> { %v5629_v49 = vsel %vm1758_vm8, %v1962_v23, %v1967_v46  ;;  %v1940_v51 = vpop.permute.xlu1 %1939 }
 0x1e4   : >> { %1971 = vst [vmem:[#allocation2 + $0xfc] sm:$0xff] %v5629_v49  ;;  %v1942_v52 = vrot.slane %v1940_v51, 4  ;;  %1948 = vst.msk [vmem:[#allocation2 + $0xec] sm:$0xf] %vm395_vm9, %v1940_v51 }
 0x1e6   : >> { %v1943_v56 = vsel %vm388_vm7, %v1941_v45, %v1942_v52 }
 0x1e7   : >> { %v5635_v58 = vsel %vm1732_vm10, %v1938_v8, %v1943_v56  ;;  %v1910_v59 = vpop.permute.xlu1 %1909 }
 0x1e8   : >> { %1947 = vst [vmem:[#allocation2 + $0xe4] sm:$0xff] %v5635_v58  ;;  %v1912_v1 = vrot.slane %v1910_v59, 4 }
 0x1ea   : >> { %v1913_v15 = vsel %vm388_vm7, %v1911_v55, %v1912_v1  ;;  %v1915_v16 = vsel %vm1812_vm13, %v1910_v59, %v1912_v1 }
 0x1eb   : >> { %v5645_v23 = vsel %vm1812_vm13, %v1908_v54, %v1913_v15  ;;  %1919 = vst.msk [vmem:[#allocation2 + $0xc8] sm:$0xf] %vm395_vm9, %v1915_v16 }
 0x1ec   : >> { %1918 = vst [vmem:[#allocation2 + $0xc0] sm:$0xff] %v5645_v23 }
 0x281   : >> { %v1223_v29 = vpop.f32.mrf.mxu0 }
 0x282   : >> { %v1224_v32 = vadd.f32 %v1223_v29, %v5416_v44  ;;  %v1294_v36 = vpop.f32.mrf.mxu1 }
 0x283   : >> { %v1225_v37 = vpop.f32.mrf.mxu0  ;;  %v1295_v7 = vadd.f32 %v1294_v36, %v5416_v44 }
 0x284   : >> { %v1298_v4 = vsel %vm388_vm7, %v1224_v32, -inf  ;;  %v1226_v8 = vadd.f32 %v1225_v37, %v5416_v44  ;;  %v4619_v40 = vpop.f32.mrf.mxu1 }
 0x285   : >> { %v1299_v39 = vrot.slane %v1298_v4, 4  ;;  %v1312_v45 = vsel %vm388_vm7, %v1295_v7, -inf }
 0x286   : >> { %v1305_v46 = vsel %vm388_vm7, %v1226_v8, -inf  ;;  %v1313_v51 = vrot.slane %v1312_v45, 4 }
 0x287   : >> { %v1300_v52 = vmax.f32 %v1298_v4, %v1299_v39  ;;  %v1306_v54 = vrot.slane %v1305_v46, 4 }
 0x288   : >> { %v1314_v55 = vmax.f32 %v1312_v45, %v1313_v51 }
 0x289   : >> { %v1301_v56 = vrot.slane %v1300_v52, 2  ;;  %v1307_v59 = vmax.f32 %v1305_v46, %v1306_v54 }
 0x28a   : >> { %v1315_v1 = vrot.slane %v1314_v55, 2 }
 0x28b   : >> { %v1302_v15 = vmax.f32 %v1300_v52, %v1301_v56  ;;  %v1308_v16 = vrot.slane %v1307_v59, 2 }
 0x28c   : >> { %v1316_v28 = vmax.f32 %v1314_v55, %v1315_v1 }
 0x28d   : >> { %v1303_v29 = vrot.slane %v1302_v15, 1  ;;  %v1309_v36 = vmax.f32 %v1307_v59, %v1308_v16 }
 0x28e   : >> { %v1317_v2 = vrot.slane %v1316_v28, 1 }
 0x28f   : >> { %v1304_v44 = vmax.f32 %v1302_v15, %v1303_v29  ;;  %v1310_v37 = vrot.slane %v1309_v36, 1 }
 0x290   : >> { %v1318_v40 = vmax.f32 %v1316_v28, %v1317_v2 }
 0x291   : >> { %v1319_v12 = vsub.f32 %v1224_v32, %v1304_v44  ;;  %v1311_v14 = vmax.f32 %v1309_v36, %v1310_v37 }
 0x292   : >> { %v1321_v5 = vsub.f32 %v1295_v7, %v1318_v40 }
 0x293   : >> { %v1322_v19 = vmul.f32 1.442695, %v1319_v12  ;;  %v1320_v20 = vsub.f32 %v1226_v8, %v1311_v14 }
 0x294   : >> { %v1326_v4 = vmul.f32 1.442695, %v1321_v5 }
 0x295   : >> { %4759 = vpow2.f32 %v1322_v19  ;;  %v1324_v39 = vmul.f32 1.442695, %v1320_v20 }
 0x296   : >> { %4761 = vpow2.f32 %v1326_v4 }
 0x297   : >> { %4763 = vpow2.f32 %v1324_v39 }
 0x2a2   : >> { %v4760_v45 = vpop.eup %4759 }
 0x2a3   : >> { %v1328_v46 = vsel %vm388_vm7, %v4760_v45, 0.0  ;;  %v4762_v51 = vpop.eup %4761 }
 0x2a4   : >> { %v1329_v52 = vrot.slane %v1328_v46, 4  ;;  %v4764_v54 = vpop.eup %4763  ;;  %v1342_v55 = vsel %vm388_vm7, %v4762_v51, 0.0 }
 0x2a5   : >> { %v1343_v56 = vrot.slane %v1342_v55, 4  ;;  %v1335_v32 = vsel %vm388_vm7, %v4764_v54, 0.0 }
 0x2a6   : >> { %v1330_v2 = vadd.f32 %v1329_v52, %v1328_v46  ;;  %v1336_v7 = vrot.slane %v1335_v32, 4  ;;  %v1356_v46 = vld [vmem:[%s6159_s3 + $0x8] sm:$0xff] }
 0x2a7   : >> { %v1344_v12 = vadd.f32 %v1343_v56, %v1342_v55  ;;  %v4737_v55 = vld [vmem:[#allocation2 + $0xb0] ss:$12 sps:$4 sm:$0xff]  }
 0x2a8   : >> { %v1331_v14 = vrot.slane %v1330_v2, 2  ;;  %v1337_v5 = vadd.f32 %v1336_v7, %v1335_v32  ;;  %v4755_v32 = vld [vmem:[#allocation2 + $0xc8] ss:$12 sps:$4 sm:$0xff]   ;;  %v4758_v7 = vld [vmem:[%s6158_s2] ss:$24 sps:$4 sm:$0xff]  }
 0x2a9   : >> { %v1345_v19 = vrot.slane %v1344_v12, 2 }
 0x2aa   : >> { %v1332_v20 = vadd.f32 %v1331_v14, %v1330_v2  ;;  %v1338_v8 = vrot.slane %v1337_v5, 2  ;;  %v6172_v2 = vcombine.low %v5619_v22, %v5629_v49  ;;  %v4624_v14 = vpop.f32.mrf.mxu1 }
 0x2ab   : >> { %v1346_v59 = vadd.f32 %v1345_v19, %v1344_v12 }
 0x2ac   : >> { %v1333_v1 = vrot.slane %v1332_v20, 1  ;;  %v1339_v15 = vadd.f32 %v1338_v8, %v1337_v5  ;;  %v1522_v19 = vpop.f32.mrf.mxu1 }
 0x2ad   : >> { %v1347_v16 = vrot.slane %v1346_v59, 1 }
 0x2ae   : >> { %v1334_v28 = vadd.f32 %v1333_v1, %v1332_v20  ;;  %v1340_v29 = vrot.slane %v1339_v15, 1 }
 0x2af   : >> { %v1348_v36 = vadd.f32 %v1347_v16, %v1346_v59 }
 0x2b0   : >> { %4765 = vrcp.f32 %v1334_v28  ;;  %v1341_v44 = vadd.f32 %v1340_v29, %v1339_v15 }
 0x2b1   : >> { %4767 = vrcp.f32 %v1348_v36 }
 0x2b2   : >> { %4769 = vrcp.f32 %v1341_v44  ;;  %v1703_v44 = vpop.permute.xlu0 %1702 }
 0x2bd   : >> { %v4766_v37 = vpop.eup %4765 }
 0x2be   : >> { %v4768_v40 = vpop.eup %4767  ;;  %v5674_v56 = vmul.f32 %v4766_v37, %v4760_v45  ;;  %v4738_v45 = vld [vmem:[#allocation2 + $0x98] ss:$12 sps:$4 sm:$0xff]  }
 0x2bf   : >> { %v4770_v4 = vpop.eup %4769  ;;  %v5661_v39 = vmul.f32 %v4768_v40, %v4762_v51  ;;  %v4756_v51 = vld [vmem:[%s6158_s2 + $0x4] ss:$24 sps:$4 sm:$0xff]  }
 0x2c0   : >> { %v5666_v52 = vmul.f32 %v4770_v4, %v4764_v54  ;;  %v6171_v54 = vcombine.high %v5619_v22, %v5629_v49  ;;  %v1445_v22 = vpop.f32.mrf.mxu0 }
 0x2c1   : >> { %4625 = vmatprep.subr.msk.mxu0 %vm388_vm7, %v5661_v39 }
 0x2c2   : >> { %4626 = vmatpush3.msk.msra.mxu0 %vm388_vm7, %v5661_v39  ;;  %4405 = vmatprep.subr.msk.mxu1 %vm388_vm7, %v5666_v52  ;;  %v1447_v49 = vpop.f32.mrf.mxu0 }
 0x2c3   : >> { %4628 = vmatmul.mubr.msk.f32.vlgmr.msra.gmra.mxu0 %vm1144_vm5, %v1356_v46  ;;  %2369 = vmatprep.subr.bf16.mxu0 %v4909_v6 }
 0x2c4   : >> { %2370 = vmatpush1.bf16.msra.mxu0 %v4737_v55  ;;  %4406 = vmatpush1.msk.msra.mxu1 %vm388_vm7, %v5674_v56  ;;  %v1451_v5 = vpop.f32.mrf.mxu0 }
 0x2c5   : >> { %2371 = vmatprep.subr.bf16.mxu0 %v4909_v6  ;;  %4407 = vmatmul.mubr.msk.f32.vlgmr.msra.gmra.mxu1 %vm1144_vm5, %v5552_v21  ;;  %v4739_v21 = vld [vmem:[#allocation2 + $0x80] ss:$12 sps:$4 sm:$0xff]  }
 0x2c6   : >> { %2326 = vmatprep.subr.bf16.mxu1 %v4443_v63  ;;  %1616 = vmatprep.mubr.f32.mxu1 %v4920_v38  ;;  %v4741_v63 = vld [vmem:[#allocation2 + $0x50] ss:$12 sps:$4 sm:$0xff]   ;;  %v1453_v20 = vpop.f32.mrf.mxu0 }
 0x2c7   : >> { %2327 = vmatpush1.bf16.msra.mxu1 %v4442_v62  ;;  %4465 = vmatprep.mubr.msk.bf16.mxu0 %vm2313_vm14, %v4756_v51  ;;  %v4742_v62 = vld [vmem:[#allocation2 + $0x60] ss:$12 sps:$4 sm:$0xff]  }
 0x2c8   : >> { %2372 = vmatpush1.bf16.msra.mxu0 %v4738_v45  ;;  %2328 = vmatprep.subr.bf16.mxu1 %v4440_v31  ;;  %v4748_v31 = vld [vmem:[#allocation2 + $0x140] ss:$0 sps:$4 sm:$0xff]  }
 0x2c9   : >> { %2373 = vmatprep.subr.bf16.mxu0 %v4909_v6  ;;  %4408 = vmatmul.mubr.msk.f32.gmra.mxu1 %vm1144_vm5, %v1356_v46  ;;  %v2324_v10 = vsel %vm388_vm7, %v4748_v31, 0 }
 0x2ca   : >> { %4464 = vmatprep.mubr.msk.bf16.mxu1 %vm2313_vm14, %v4756_v51 }
 0x2cb   : >> { %2329 = vmatpush1.bf16.msra.mxu1 %v4439_v30  ;;  %v2034_v30 = vld [vmem:[#allocation2] sm:$0xff] }
 0x2cc   : >> { %2374 = vmatpush1.bf16.msra.mxu0 %v4739_v21  ;;  %2330 = vmatprep.subr.bf16.mxu1 %v4437_v48  ;;  %v4422_v43 = vcombine.high %v2034_v30, %v5577_v24  ;;  %v4460_v48 = vcombine.low %v2086_v18, %v2086_v18  ;;  %v4421_v53 = vcombine.low %v2034_v30, %v5577_v24  ;;  %v4753_v24 = vld [vmem:[#allocation2 + $0xf8] ss:$12 sps:$4 sm:$0xff]   ;;  %v1708_v21 = vpop.permute.xlu1 %1707 }
 0x2cd   : >> { %2375 = vmatprep.subr.bf16.mxu0 %v4909_v6 }
 0x2cf   : >> { %2331 = vmatpush1.bf16.msra.mxu1 %v4436_v47  ;;  %v4461_v47 = vcombine.high %v2086_v18, %v2086_v18 }
 0x2d0   : >> { %2376 = vmatpush1.bf16.msra.mxu0 %v4740_v60  ;;  %2332 = vmatprep.subr.bf16.mxu1 %v4744_v61 }
 0x2d1   : >> { %2377 = vmatprep.subr.bf16.mxu0 %v4909_v6 }
 0x2d3   : >> { %2333 = vmatpush1.bf16.msra.mxu1 %v4742_v62 }
 0x2d4   : >> { %2378 = vmatpush1.bf16.msra.mxu0 %v4741_v63  ;;  %2334 = vmatprep.subr.bf16.mxu1 %v4431_v9  ;;  %v4749_v9 = vld [vmem:[#allocation2 + $0x128] ss:$12 sps:$4 sm:$0xff]  }
 0x2d5   : >> { %2379 = vmatprep.subr.bf16.mxu0 %v4909_v6 }
 0x2d7   : >> { %2335 = vmatpush1.bf16.msra.mxu1 %v4430_v3  ;;  %v2318_v3 = vsel %vm388_vm7, %v4460_v48, 0 }
 0x2d8   : >> { %2380 = vmatpush1.bf16.msra.mxu0 %v4745_v26  ;;  %2336 = vmatprep.subr.bf16.mxu1 %v4428_v17  ;;  %v6169_v17 = vcombine.high %v5601_v13, %v5612_v34 }
 0x2d9   : >> { %2381 = vmatprep.subr.bf16.mxu0 %v4909_v6 }
 0x2db   : >> { %2337 = vmatpush1.bf16.msra.mxu1 %v4427_v33  ;;  %v6168_v33 = vcombine.low %v5587_v50, %v5594_v57  ;;  %v4449_v50 = vcombine.high %v2070_v25, %v5635_v58  ;;  %v2068_v57 = vld [vmem:[#allocation2 + $0xcc] sm:$0xff] }
 0x2dc   : >> { %2382 = vmatpush1.bf16.msra.mxu0 %v4746_v27  ;;  %2338 = vmatprep.subr.bf16.mxu1 %v4425_v42  ;;  %v4754_v42 = vld [vmem:[#allocation2 + $0xe0] ss:$12 sps:$4 sm:$0xff]   ;;  %v4445_v12 = vcombine.low %v5645_v23, %v2068_v57 }
 0x2dd   : >> { %2383 = vmatprep.subr.bf16.mxu0 %v4909_v6 }
 0x2df   : >> { %2339 = vmatpush1.bf16.msra.mxu1 %v4424_v35  ;;  %v6170_v35 = vcombine.low %v5601_v13, %v5612_v34  ;;  %v4446_v13 = vcombine.high %v5645_v23, %v2068_v57  ;;  %v4448_v34 = vcombine.low %v2070_v25, %v5635_v58  ;;  %v2410_v58 = vlaneseq }
 0x2e0   : >> { %2384 = vmatpush1.bf16.msra.mxu0 %v4747_v41  ;;  %2340 = vmatprep.subr.bf16.mxu1 %v4422_v43 }
 0x2e1   : >> { %2389 = vmatprep.subr.bf16.mxu0 %v4909_v6  ;;  %v5768_v15 = vshrl.u32 %v2410_v58, 7 }
 0x2e3   : >> { %2341 = vmatpush1.bf16.msra.mxu1 %v4421_v53  ;;  %v2412_v23 = vsub.s32 0, %v5768_v15 }
 0x2e4   : >> { %2390 = vmatpush2.bf16.msra.mxu0 %v2324_v10  ;;  %4463 = vmatprep.subr.msk.bf16.mxu1 %vm388_vm7, %v4461_v47 }
 0x2e5   : >> { %2391 = vmatprep.subr.bf16.mxu0 %v4909_v6  ;;  %v2421_v36 = vrot.slane %v5661_v39, %v2412_v23  ;;  %v2413_v61 = vrot.slane %v5674_v56, %v2412_v23  ;;  %v2417_v18 = vrot.slane %v5666_v52, %v2412_v23 }
 0x2e7   : >> { %2347 = vmatpush2.bf16.msra.mxu1 %v2318_v3 }
 0x2e8   : >> { %2392 = vmatpush2.bf16.msra.mxu0 %v4749_v9  ;;  %2348 = vmatprep.subr.bf16.mxu1 %v6167_v0 }
 0x2e9   : >> { %2393 = vmatprep.subr.bf16.mxu0 %v4909_v6 }
 0x2eb   : >> { %2349 = vmatpush2.bf16.msra.mxu1 %v6168_v33 }
 0x2ec   : >> { %2394 = vmatpush2.bf16.msra.mxu0 %v4752_v11  ;;  %2350 = vmatprep.subr.bf16.mxu1 %v6169_v17 }
 0x2ed   : >> { %2395 = vmatprep.subr.bf16.mxu0 %v4909_v6 }
 0x2ef   : >> { %2351 = vmatpush2.bf16.msra.mxu1 %v6170_v35 }
 0x2f0   : >> { %2396 = vmatpush2.bf16.msra.mxu0 %v4753_v24  ;;  %2352 = vmatprep.subr.bf16.mxu1 %v6171_v54 }
 0x2f1   : >> { %2397 = vmatprep.subr.bf16.mxu0 %v4909_v6 }
 0x2f3   : >> { %2353 = vmatpush2.bf16.msra.mxu1 %v6172_v2 }
 0x2f4   : >> { %2398 = vmatpush2.bf16.msra.mxu0 %v4754_v42  ;;  %2354 = vmatprep.subr.bf16.mxu1 %v4449_v50 }
 0x2f5   : >> { %2399 = vmatprep.subr.bf16.mxu0 %v4909_v6 }
 0x2f7   : >> { %2355 = vmatpush2.bf16.msra.mxu1 %v4448_v34 }
 0x2f8   : >> { %2400 = vmatpush2.bf16.msra.mxu0 %v4755_v32  ;;  %2356 = vmatprep.subr.bf16.mxu1 %v4446_v13 }
 0x2fb   : >> { %2402 = vmatmul.mubr.bf16.vlgmr.msra.gmra.mxu0 %v4758_v7  ;;  %2357 = vmatpush2.bf16.msra.mxu1 %v4445_v12 }
 0x2fe   : >> { %2359 = vmatmul.mubr.bf16.vlgmr.msra.gmra.mxu1 %v4758_v7 }
 0x383   : >> { %v4629_v59 = vpop.f32.mrf.mxu0 }
 0x384   : >> { %v1695_v4 = vadd.f32 %v4629_v59, %v4624_v14 }
 0x385   : >> { %v1612_v8 = vpop.f32.mrf.mxu1  ;;  %v1689_v16 = vpop.f32.mrf.mxu0 }
 0x386   : >> { %v1690_v28 = vadd.f32 %v1689_v16, %v1522_v19  ;;  %v1613_v37 = vadd.f32 %v1612_v8, %v1445_v22  ;;  %v1715_v41 = vadd.f32 %v1708_v21, %v1695_v4 }
 0x387   : >> { %v1614_v1 = vpop.f32.mrf.mxu1 }
 0x388   : >> { %v1712_v46 = vadd.f32 %v1703_v44, %v1690_v28  ;;  %v1615_v45 = vadd.f32 %v1614_v1, %v1447_v49  ;;  %v1710_v26 = vadd.f32 %v1703_v44, %v1613_v37 }
 0x389   : >> { %v1618_v29 = vpop.f32.mrf.mxu1 }
 0x38a   : >> { %v1619_v27 = vadd.f32 %v1618_v29, %v1451_v5  ;;  %v1711_v48 = vadd.f32 %v1703_v44, %v1615_v45 }
 0x38b   : >> { %v1620_v55 = vpop.f32.mrf.mxu1 }
 0x38c   : >> { %v1621_v53 = vadd.f32 %v1620_v55, %v1453_v20  ;;  %v1713_v33 = vadd.f32 %v1708_v21, %v1619_v27 }
 0x38e   : >> { %v1714_v35 = vadd.f32 %v1708_v21, %v1621_v53 }
 0x3bb   : >> { %v2403_v40 = vpop.f32.mrf.mxu0 }
 0x3bc   : >> { %v2424_v51 = vmul.f32 %v2421_v36, %v2403_v40 }
 0x3bd   : >> { %v2405_v60 = vpop.f32.mrf.mxu0 }
 0x3be   : >> { %v5773_v62 = vadd.f32 %v2424_v51, %v1712_v46  ;;  %v2360_v63 = vpop.f32.mrf.mxu1 }
 0x3bf   : >> { %v2406_v30 = vpop.f32.mrf.mxu0  ;;  %v2422_v31 = vmul.f32 %v2413_v61, %v2360_v63 }
 0x3c0   : >> { %v2427_v43 = vmul.f32 %v2421_v36, %v2406_v30  ;;  %v2362_v47 = vpop.f32.mrf.mxu1 }
 0x3c1   : >> { %v5776_v10 = vadd.f32 %v2422_v31, %v1710_v26  ;;  %v2423_v3 = vmul.f32 %v2417_v18, %v2362_v47  ;;  %v2408_v9 = vpop.f32.mrf.mxu0 }
 0x3c2   : >> { %v5778_v0 = vadd.f32 %v2427_v43, %v1715_v41  ;;  %v2364_v11 = vpop.f32.mrf.mxu1 }
 0x3c3   : >> { %v5780_v17 = vadd.f32 %v2423_v3, %v1711_v48  ;;  %v2425_v25 = vmul.f32 %v2413_v61, %v2364_v11  ;;  %2439 = sbr.rel (%p5062_p6) target bundleno = 1114 (0x45a), region = 67 }
 0x3c4   : >> { %v2366_v24 = vpop.f32.mrf.mxu1 }
 0x3c5   : >> { %v5782_v42 = vadd.f32 %v2425_v25, %v1713_v33  ;;  %v2426_v54 = vmul.f32 %v2417_v18, %v2366_v24 }
 0x3c7   : >> { %v5784_v50 = vadd.f32 %v2426_v54, %v1714_v35 }
 0x3c8   : >> { %v4467_v57 = vld [vmem:[%s5054_s25 - $0x80] sm:$0xff]  ;;  %v4468_v2 = vld [vmem:[%s5054_s25 - $0x78] sm:$0xff]  ;;  %v4469_v32 = vld [vmem:[%s5054_s25 - $0x70] sm:$0xff]  ;;  %vm2477_vm15 = vcmask 949248   ;;  %vm2464_vm0 = vcmask 998400   ;;  %vm2491_vm1 = vcmask 572416  }
 0x3c9   : >> { %v2451_v13 = vrot.slane %v4468_v2, 4  ;;  %2470 = vrot.lane.b32.xlu1 %v4467_v57, %s4926_s24  ;;  %v2450_v34 = vrot.slane %v4467_v57, 4  ;;  %2457 = vrot.lane.b32.xlu0 %v4467_v57, %s4927_s27  ;;  %2557 = vst [vmem:[#allocation2 + $0x60] sm:$0xff] %v4469_v32  ;;  %v4470_v7 = vld [vmem:[%s5054_s25 - $0x68] sm:$0xff]  ;;  %vm2517_vm2 = vcmask 474112   ;;  %vm2534_vm3 = vcmask 97280  }
 0x3ca   : >> { %2558 = vst.msk [vmem:[#allocation2 + $0x68] sm:$0xf] %vm395_vm9, %v4470_v7  ;;  %vm2550_vm5 = vcmask 48128  }
 0x3cb   : >> { %2456 = vst.msk [vmem:[#allocation2 + $0x8] sm:$0xf] %vm395_vm9, %v2451_v13  ;;  %v2452_v12 = vsel %vm388_vm7, %v2450_v34, %v2451_v13 }
 0x3cc   : >> { %2455 = vst [vmem:[#allocation2] sm:$0xff] %v2452_v12 }
 0x3cd   : >> { %2472 = vrot.lane.b32.xlu1 %v4468_v2, %s4926_s24  ;;  %2459 = vrot.lane.b32.xlu0 %v4468_v2, %s4927_s27 }
 0x3d1   : >> { %2486 = vrot.lane.b32.xlu1 %v4469_v32, %s4928_s28  ;;  %2484 = vrot.lane.b32.xlu0 %v4468_v2, %s4928_s28 }
 0x3d5   : >> { %2499 = vrot.lane.b32.xlu1 %v4469_v32, %s4929_s29  ;;  %2497 = vrot.lane.b32.xlu0 %v4468_v2, %s4929_s29 }
 0x3d9   : >> { %2512 = vrot.lane.b32.xlu1 %v4469_v32, %s4930_s11  ;;  %2510 = vrot.lane.b32.xlu0 %v4468_v2, %s4930_s11 }
 0x3dd   : >> { %2527 = vrot.lane.b32.xlu1 %v4469_v32, %s4931_s12  ;;  %2525 = vrot.lane.b32.xlu0 %v4468_v2, %s4931_s12 }
 0x3e1   : >> { %2543 = vrot.lane.b32.xlu1 %v4469_v32, %s4932_s13  ;;  %2541 = vrot.lane.b32.xlu0 %v4468_v2, %s4932_s13 }
 0x3e5   : >> { %2545 = vrot.lane.b32.xlu1 %v4470_v7, %s4932_s13  ;;  %2529 = vrot.lane.b32.xlu0 %v4470_v7, %s4931_s12 }
 0x43b   : >> { %v2471_v22 = vpop.permute.xlu1 %2470  ;;  %v2458_v49 = vpop.permute.xlu0 %2457 }
 0x43c   : >> { %v2474_v19 = vrot.slane %v2471_v22, 4  ;;  %v2461_v20 = vrot.slane %v2458_v49, 4 }
 0x43f   : >> { %v2473_v14 = vpop.permute.xlu1 %2472  ;;  %v2460_v5 = vpop.permute.xlu0 %2459 }
 0x440   : >> { %v2475_v8 = vrot.slane %v2473_v14, 4  ;;  %v2462_v58 = vrot.slane %v2460_v5, 4 }
 0x442   : >> { %v2476_v59 = vsel %vm388_vm7, %v2474_v19, %v2475_v8  ;;  %2482 = vst.msk [vmem:[#allocation2 + $0x20] sm:$0xf] %vm395_vm9, %v2475_v8  ;;  %v2463_v1 = vsel %vm388_vm7, %v2461_v20, %v2462_v58  ;;  %2469 = vst.msk [vmem:[#allocation2 + $0x14] sm:$0xf] %vm395_vm9, %v2462_v58 }
 0x443   : >> { %v2478_v16 = vsel %vm2477_vm15, %v2476_v59, %v2473_v14  ;;  %v2465_v28 = vsel %vm2464_vm0, %v2463_v1, %v2460_v5  ;;  %v2487_v29 = vpop.permute.xlu1 %2486  ;;  %v2485_v23 = vpop.permute.xlu0 %2484 }
 0x444   : >> { %2481 = vst [vmem:[#allocation2 + $0x18] sm:$0xff] %v2478_v16  ;;  %2468 = vst [vmem:[#allocation2 + $0xc] sm:$0xff] %v2465_v28  ;;  %v2489_v36 = vrot.slane %v2487_v29, 4  ;;  %v2488_v44 = vrot.slane %v2485_v23, 4 }
 0x445   : >> { %2496 = vst.msk [vmem:[#allocation2 + $0x2c] sm:$0xf] %vm395_vm9, %v2487_v29 }
 0x446   : >> { %v2490_v37 = vsel %vm388_vm7, %v2488_v44, %v2489_v36 }
 0x447   : >> { %v2492_v40 = vsel %vm2491_vm1, %v2485_v23, %v2490_v37  ;;  %v2500_v4 = vpop.permute.xlu1 %2499  ;;  %v2498_v46 = vpop.permute.xlu0 %2497 }
 0x448   : >> { %2495 = vst [vmem:[#allocation2 + $0x24] sm:$0xff] %v2492_v40  ;;  %v2502_v55 = vrot.slane %v2500_v4, 4  ;;  %v2501_v51 = vrot.slane %v2498_v46, 4 }
 0x44a   : >> { %v2505_v45 = vsel %vm443_vm12, %v2500_v4, %v2502_v55  ;;  %v2503_v21 = vsel %vm388_vm7, %v2501_v51, %v2502_v55 }
 0x44b   : >> { %2509 = vst.msk [vmem:[#allocation2 + $0x38] sm:$0xf] %vm395_vm9, %v2505_v45  ;;  %v2504_v60 = vsel %vm443_vm12, %v2498_v46, %v2503_v21  ;;  %v2513_v61 = vpop.permute.xlu1 %2512  ;;  %v2511_v63 = vpop.permute.xlu0 %2510 }
 0x44c   : >> { %2508 = vst [vmem:[#allocation2 + $0x30] sm:$0xff] %v2504_v60  ;;  %v2515_v26 = vrot.slane %v2513_v61, 4  ;;  %v2514_v27 = vrot.slane %v2511_v63, 4 }
 0x44e   : >> { %v2519_v30 = vsel %vm2517_vm2, %v2513_v61, %v2515_v26  ;;  %v2516_v31 = vsel %vm388_vm7, %v2514_v27, %v2515_v26 }
 0x44f   : >> { %2523 = vst.msk [vmem:[#allocation2 + $0x44] sm:$0xf] %vm395_vm9, %v2519_v30  ;;  %v2518_v18 = vsel %vm2517_vm2, %v2511_v63, %v2516_v31  ;;  %v2528_v41 = vpop.permute.xlu1 %2527  ;;  %v2526_v43 = vpop.permute.xlu0 %2525 }
 0x450   : >> { %2522 = vst [vmem:[#allocation2 + $0x3c] sm:$0xff] %v2518_v18  ;;  %v2532_v47 = vrot.slane %v2528_v41, 4  ;;  %v2531_v48 = vrot.slane %v2526_v43, 4 }
 0x452   : >> { %v2533_v53 = vsel %vm388_vm7, %v2531_v48, %v2532_v47 }
 0x453   : >> { %v2544_v3 = vpop.permute.xlu1 %2543  ;;  %v2542_v9 = vpop.permute.xlu0 %2541  ;;  %v2535_v11 = vsel %vm2534_vm3, %v2533_v53, %v2528_v41 }
 0x454   : >> { %v2548_v33 = vrot.slane %v2544_v3, 4  ;;  %v2547_v25 = vrot.slane %v2542_v9, 4  ;;  %2539 = vst [vmem:[#allocation2 + $0x48] sm:$0xff] %v2535_v11 }
 0x456   : >> { %v2549_v24 = vsel %vm388_vm7, %v2547_v25, %v2548_v33 }
 0x457   : >> { %v2546_v35 = vpop.permute.xlu1 %2545  ;;  %v2551_v54 = vsel %vm2550_vm5, %v2549_v24, %v2544_v3  ;;  %v2530_v57 = vpop.permute.xlu0 %2529 }
 0x458   : >> { %v2552_v2 = vsel %vm2550_vm5, %v2548_v33, %v2546_v35  ;;  %2555 = vst [vmem:[#allocation2 + $0x54] sm:$0xff] %v2551_v54  ;;  %v2536_v32 = vsel %vm2534_vm3, %v2532_v47, %v2530_v57 }
 0x459   : >> { %2556 = vst.msk [vmem:[#allocation2 + $0x5c] sm:$0xf] %vm395_vm9, %v2552_v2  ;;  %2540 = vst.msk [vmem:[#allocation2 + $0x50] sm:$0xf] %vm395_vm9, %v2536_v32 }
 0x45a PF: >> { %2561 = sbr.rel (!%p5062_p6) target bundleno = 1124 (0x464), region = 71  ;;  %v4933_v13 = vmov (%p5062_p6), 0  }
 0x45b   : >> { %2562 = vst [vmem:[#allocation2] sm:$0xff] (%p5062_p6), %v4933_v13  ;;  %2563 = vst.msk [vmem:[#allocation2 + $0x8] sm:$0xf] (%p5062_p6), %vm395_vm9, %v4933_v13 }
 0x45c   : >> { %2564 = vst [vmem:[#allocation2 + $0xc] sm:$0xff] (%p5062_p6), %v4933_v13  ;;  %2565 = vst.msk [vmem:[#allocation2 + $0x14] sm:$0xf] (%p5062_p6), %vm395_vm9, %v4933_v13 }
 0x45d   : >> { %2566 = vst [vmem:[#allocation2 + $0x18] sm:$0xff] (%p5062_p6), %v4933_v13  ;;  %2567 = vst.msk [vmem:[#allocation2 + $0x20] sm:$0xf] (%p5062_p6), %vm395_vm9, %v4933_v13 }
 0x45e   : >> { %2568 = vst [vmem:[#allocation2 + $0x24] sm:$0xff] (%p5062_p6), %v4933_v13  ;;  %2569 = vst.msk [vmem:[#allocation2 + $0x2c] sm:$0xf] (%p5062_p6), %vm395_vm9, %v4933_v13 }
 0x45f   : >> { %2570 = vst [vmem:[#allocation2 + $0x30] sm:$0xff] %v4933_v13  ;;  %2571 = vst.msk [vmem:[#allocation2 + $0x38] sm:$0xf] %vm395_vm9, %v4933_v13 }
 0x460   : >> { %2572 = vst [vmem:[#allocation2 + $0x3c] sm:$0xff] %v4933_v13  ;;  %2573 = vst.msk [vmem:[#allocation2 + $0x44] sm:$0xf] %vm395_vm9, %v4933_v13 }
 0x461   : >> { %2574 = vst [vmem:[#allocation2 + $0x48] sm:$0xff] %v4933_v13  ;;  %2575 = vst.msk [vmem:[#allocation2 + $0x50] sm:$0xf] %vm395_vm9, %v4933_v13 }
 0x462   : >> { %2576 = vst [vmem:[#allocation2 + $0x54] sm:$0xff] %v4933_v13  ;;  %2577 = vst.msk [vmem:[#allocation2 + $0x5c] sm:$0xf] %vm395_vm9, %v4933_v13 }
 0x463   : >> { %2578 = vst [vmem:[#allocation2 + $0x60] sm:$0xff] %v4933_v13  ;;  %2579 = vst.msk [vmem:[#allocation2 + $0x68] sm:$0xf] %vm395_vm9, %v4933_v13 }
 0x464 PF: >> { %v4471_v34 = vld [vmem:[%s5054_s25 + $0x40] sm:$0xff]  ;;  %v4472_v7 = vld [vmem:[%s5054_s25 + $0x48] sm:$0xff]  ;;  %v4473_v12 = vld [vmem:[%s5054_s25 + $0x50] sm:$0xff]  ;;  %s4934_s26 = smov 116   ;;  %s4935_s14 = smov 122   ;;  %vm2613_vm6 = vcmask 949248  }
 0x465   : >> { %v2587_v22 = vrot.slane %v4472_v7, 4  ;;  %2606 = vrot.lane.b32.xlu1 %v4471_v34, %s4934_s26  ;;  %v2586_v49 = vrot.slane %v4471_v34, 4  ;;  %2593 = vrot.lane.b32.xlu0 %v4471_v34, %s4935_s14  ;;  %2693 = vst [vmem:[#allocation2 + $0xcc] sm:$0xff] %v4473_v12  ;;  %v4474_v14 = vld [vmem:[%s5054_s25 + $0x58] sm:$0xff]  ;;  %s4936_s16 = smov 70   ;;  %p2695_p7 = scmp.ge.s32.totalorder %s4905_s23, 0 }
 0x466   : >> { %2694 = vst.msk [vmem:[#allocation2 + $0xd4] sm:$0xf] %vm395_vm9, %v4474_v14  ;;  %p2696_p8 = scmp.lt.s32.totalorder %s4905_s23, 7  ;;  %s4937_s17 = smov 58   ;;  %vm2600_vm8 = vcmask 998400   ;;  %vm2627_vm10 = vcmask 572416  }
 0x467   : >> { %2592 = vst.msk [vmem:[#allocation2 + $0x74] sm:$0xf] %vm395_vm9, %v2587_v22  ;;  %v2588_v5 = vsel %vm388_vm7, %v2586_v49, %v2587_v22  ;;  %s4938_s20 = smov 12   ;;  %s4939_s21 = smov 6   ;;  %vm2653_vm11 = vcmask 474112   ;;  %vm2670_vm13 = vcmask 97280  }
 0x468   : >> { %2591 = vst [vmem:[#allocation2 + $0x6c] sm:$0xff] %v2588_v5  ;;  %p5835_p9 = pnand %p2696_p8, %p2695_p7  ;;  %vm2686_vm15 = vcmask 48128  }
 0x469   : >> { %2608 = vrot.lane.b32.xlu1 %v4472_v7, %s4934_s26  ;;  %2595 = vrot.lane.b32.xlu0 %v4472_v7, %s4935_s14  ;;  %s4940_s24 = smov (!%p5835_p9), 116   ;;  %s4941_s27 = smov (!%p5835_p9), 122  }
 0x46a   : >> { %s4942_s28 = smov (!%p5835_p9), 70   ;;  %s4943_s29 = smov (!%p5835_p9), 64  }
 0x46b   : >> { %s4944_s11 = smov (!%p5835_p9), 58   ;;  %s4945_s12 = smov (!%p5835_p9), 12  }
 0x46c   : >> { %s4946_s13 = smov (!%p5835_p9), 6  }
 0x46d   : >> { %2622 = vrot.lane.b32.xlu1 %v4473_v12, %s4936_s16  ;;  %2620 = vrot.lane.b32.xlu0 %v4472_v7, %s4936_s16 }
 0x471   : >> { %2635 = vrot.lane.b32.xlu1 %v4473_v12, %s4911_s10  ;;  %2633 = vrot.lane.b32.xlu0 %v4472_v7, %s4911_s10 }
 0x475   : >> { %2648 = vrot.lane.b32.xlu1 %v4473_v12, %s4937_s17  ;;  %2646 = vrot.lane.b32.xlu0 %v4472_v7, %s4937_s17 }
 0x479   : >> { %2663 = vrot.lane.b32.xlu1 %v4473_v12, %s4938_s20  ;;  %2661 = vrot.lane.b32.xlu0 %v4472_v7, %s4938_s20 }
 0x47d   : >> { %2679 = vrot.lane.b32.xlu1 %v4473_v12, %s4939_s21  ;;  %2677 = vrot.lane.b32.xlu0 %v4472_v7, %s4939_s21 }
 0x481   : >> { %2681 = vrot.lane.b32.xlu1 %v4474_v14, %s4939_s21  ;;  %2665 = vrot.lane.b32.xlu0 %v4474_v14, %s4938_s20 }
 0x4d7   : >> { %v2607_v19 = vpop.permute.xlu1 %2606  ;;  %v2594_v20 = vpop.permute.xlu0 %2593 }
 0x4d8   : >> { %v2610_v59 = vrot.slane %v2607_v19, 4  ;;  %v2597_v1 = vrot.slane %v2594_v20, 4 }
 0x4db   : >> { %v2609_v8 = vpop.permute.xlu1 %2608  ;;  %v2596_v58 = vpop.permute.xlu0 %2595 }
 0x4dc   : >> { %v2611_v16 = vrot.slane %v2609_v8, 4  ;;  %v2598_v28 = vrot.slane %v2596_v58, 4 }
 0x4de   : >> { %v2612_v29 = vsel %vm388_vm7, %v2610_v59, %v2611_v16  ;;  %2618 = vst.msk [vmem:[#allocation2 + $0x8c] sm:$0xf] %vm395_vm9, %v2611_v16  ;;  %v2599_v23 = vsel %vm388_vm7, %v2597_v1, %v2598_v28  ;;  %2605 = vst.msk [vmem:[#allocation2 + $0x80] sm:$0xf] %vm395_vm9, %v2598_v28 }
 0x4df   : >> { %v2614_v36 = vsel %vm2613_vm6, %v2612_v29, %v2609_v8  ;;  %v2601_v44 = vsel %vm2600_vm8, %v2599_v23, %v2596_v58  ;;  %v2623_v37 = vpop.permute.xlu1 %2622  ;;  %v2621_v40 = vpop.permute.xlu0 %2620 }
 0x4e0   : >> { %2617 = vst [vmem:[#allocation2 + $0x84] sm:$0xff] %v2614_v36  ;;  %2604 = vst [vmem:[#allocation2 + $0x78] sm:$0xff] %v2601_v44  ;;  %v2625_v4 = vrot.slane %v2623_v37, 4  ;;  %v2624_v46 = vrot.slane %v2621_v40, 4 }
 0x4e1   : >> { %2632 = vst.msk [vmem:[#allocation2 + $0x98] sm:$0xf] %vm395_vm9, %v2623_v37 }
 0x4e2   : >> { %v2626_v55 = vsel %vm388_vm7, %v2624_v46, %v2625_v4 }
 0x4e3   : >> { %v2628_v51 = vsel %vm2627_vm10, %v2621_v40, %v2626_v55  ;;  %v2636_v45 = vpop.permute.xlu1 %2635  ;;  %v2634_v21 = vpop.permute.xlu0 %2633 }
 0x4e4   : >> { %2631 = vst [vmem:[#allocation2 + $0x90] sm:$0xff] %v2628_v51  ;;  %v2638_v60 = vrot.slane %v2636_v45, 4  ;;  %v2637_v61 = vrot.slane %v2634_v21, 4 }
 0x4e6   : >> { %v2641_v63 = vsel %vm443_vm12, %v2636_v45, %v2638_v60  ;;  %v2639_v26 = vsel %vm388_vm7, %v2637_v61, %v2638_v60 }
 0x4e7   : >> { %2645 = vst.msk [vmem:[#allocation2 + $0xa4] sm:$0xf] %vm395_vm9, %v2641_v63  ;;  %v2640_v27 = vsel %vm443_vm12, %v2634_v21, %v2639_v26  ;;  %v2649_v30 = vpop.permute.xlu1 %2648  ;;  %v2647_v31 = vpop.permute.xlu0 %2646 }
 0x4e8   : >> { %2644 = vst [vmem:[#allocation2 + $0x9c] sm:$0xff] %v2640_v27  ;;  %v2651_v18 = vrot.slane %v2649_v30, 4  ;;  %v2650_v41 = vrot.slane %v2647_v31, 4 }
 0x4ea   : >> { %v2655_v43 = vsel %vm2653_vm11, %v2649_v30, %v2651_v18  ;;  %v2652_v47 = vsel %vm388_vm7, %v2650_v41, %v2651_v18 }
 0x4eb   : >> { %2659 = vst.msk [vmem:[#allocation2 + $0xb0] sm:$0xf] %vm395_vm9, %v2655_v43  ;;  %v2654_v48 = vsel %vm2653_vm11, %v2647_v31, %v2652_v47  ;;  %v2664_v53 = vpop.permute.xlu1 %2663  ;;  %v2662_v3 = vpop.permute.xlu0 %2661 }
 0x4ec   : >> { %2658 = vst [vmem:[#allocation2 + $0xa8] sm:$0xff] %v2654_v48  ;;  %v2668_v9 = vrot.slane %v2664_v53, 4  ;;  %v2667_v11 = vrot.slane %v2662_v3, 4 }
 0x4ee   : >> { %v2669_v33 = vsel %vm388_vm7, %v2667_v11, %v2668_v9 }
 0x4ef   : >> { %v2680_v25 = vpop.permute.xlu1 %2679  ;;  %v2678_v24 = vpop.permute.xlu0 %2677  ;;  %v2671_v35 = vsel %vm2670_vm13, %v2669_v33, %v2664_v53 }
 0x4f0   : >> { %v2684_v54 = vrot.slane %v2680_v25, 4  ;;  %v2683_v57 = vrot.slane %v2678_v24, 4  ;;  %2675 = vst [vmem:[#allocation2 + $0xb4] sm:$0xff] %v2671_v35 }
 0x4f1   : >> { %2700 = sbr.rel (%p5835_p9) target bundleno = 1416 (0x588), region = 75 }
 0x4f2   : >> { %v2685_v2 = vsel %vm388_vm7, %v2683_v57, %v2684_v54 }
 0x4f3   : >> { %v2682_v32 = vpop.permute.xlu1 %2681  ;;  %v2687_v13 = vsel %vm2686_vm15, %v2685_v2, %v2680_v25  ;;  %v2666_v34 = vpop.permute.xlu0 %2665 }
 0x4f4   : >> { %v2688_v7 = vsel %vm2686_vm15, %v2684_v54, %v2682_v32  ;;  %2691 = vst [vmem:[#allocation2 + $0xc0] sm:$0xff] %v2687_v13  ;;  %v2672_v12 = vsel %vm2670_vm13, %v2668_v9, %v2666_v34 }
 0x4f5   : >> { %2692 = vst.msk [vmem:[#allocation2 + $0xc8] sm:$0xf] %vm395_vm9, %v2688_v7  ;;  %2676 = vst.msk [vmem:[#allocation2 + $0xbc] sm:$0xf] %vm395_vm9, %v2672_v12 }
 0x4f6   : >> { %v4476_v22 = vld [vmem:[%s5054_s25 + $0x100] sm:$0xff]  ;;  %v4477_v49 = vld [vmem:[%s5054_s25 + $0x108] sm:$0xff]  ;;  %v4478_v14 = vld [vmem:[%s5054_s25 + $0x110] sm:$0xff] }
 0x4f7   : >> { %v2712_v5 = vrot.slane %v4477_v49, 4  ;;  %2730 = vrot.lane.b32.xlu1 %v4476_v22, %s4940_s24  ;;  %v2711_v19 = vrot.slane %v4476_v22, 4  ;;  %2718 = vrot.lane.b32.xlu0 %v4476_v22, %s4941_s27  ;;  %2812 = vst [vmem:[#allocation2 + $0x138] sm:$0xff] %v4478_v14  ;;  %v4479_v20 = vld [vmem:[%s5054_s25 + $0x118] sm:$0xff] }
 0x4f8   : >> { %2813 = vst.msk [vmem:[#allocation2 + $0x140] sm:$0xf] %vm395_vm9, %v4479_v20 }
 0x4f9   : >> { %2717 = vst.msk [vmem:[#allocation2 + $0xe0] sm:$0xf] %vm395_vm9, %v2712_v5  ;;  %v2713_v8 = vsel %vm388_vm7, %v2711_v19, %v2712_v5 }
 0x4fa   : >> { %2716 = vst [vmem:[#allocation2 + $0xd8] sm:$0xff] %v2713_v8 }
 0x4fb   : >> { %2732 = vrot.lane.b32.xlu1 %v4477_v49, %s4940_s24  ;;  %2720 = vrot.lane.b32.xlu0 %v4477_v49, %s4941_s27 }
 0x4ff   : >> { %2745 = vrot.lane.b32.xlu1 %v4478_v14, %s4942_s28  ;;  %2743 = vrot.lane.b32.xlu0 %v4477_v49, %s4942_s28 }
 0x503   : >> { %2757 = vrot.lane.b32.xlu1 %v4478_v14, %s4943_s29  ;;  %2755 = vrot.lane.b32.xlu0 %v4477_v49, %s4943_s29 }
 0x507   : >> { %2770 = vrot.lane.b32.xlu1 %v4478_v14, %s4944_s11  ;;  %2768 = vrot.lane.b32.xlu0 %v4477_v49, %s4944_s11 }
 0x50b   : >> { %2784 = vrot.lane.b32.xlu1 %v4478_v14, %s4945_s12  ;;  %2782 = vrot.lane.b32.xlu0 %v4477_v49, %s4945_s12 }
 0x50f   : >> { %2799 = vrot.lane.b32.xlu1 %v4478_v14, %s4946_s13  ;;  %2797 = vrot.lane.b32.xlu0 %v4477_v49, %s4946_s13 }
 0x513   : >> { %2801 = vrot.lane.b32.xlu1 %v4479_v20, %s4946_s13  ;;  %2786 = vrot.lane.b32.xlu0 %v4479_v20, %s4945_s12 }
 0x569   : >> { %v2731_v58 = vpop.permute.xlu1 %2730  ;;  %v2719_v59 = vpop.permute.xlu0 %2718 }
 0x56a   : >> { %v2734_v28 = vrot.slane %v2731_v58, 4  ;;  %v2722_v29 = vrot.slane %v2719_v59, 4 }
 0x56d   : >> { %v2733_v1 = vpop.permute.xlu1 %2732  ;;  %v2721_v16 = vpop.permute.xlu0 %2720 }
 0x56e   : >> { %v2735_v23 = vrot.slane %v2733_v1, 4  ;;  %v2723_v36 = vrot.slane %v2721_v16, 4 }
 0x570   : >> { %v2736_v44 = vsel %vm388_vm7, %v2734_v28, %v2735_v23  ;;  %2741 = vst.msk [vmem:[#allocation2 + $0xf8] sm:$0xf] %vm395_vm9, %v2735_v23  ;;  %v2724_v37 = vsel %vm388_vm7, %v2722_v29, %v2723_v36  ;;  %2729 = vst.msk [vmem:[#allocation2 + $0xec] sm:$0xf] %vm395_vm9, %v2723_v36 }
 0x571   : >> { %v2737_v40 = vsel %vm2613_vm6, %v2736_v44, %v2733_v1  ;;  %v2725_v4 = vsel %vm2600_vm8, %v2724_v37, %v2721_v16  ;;  %v2746_v46 = vpop.permute.xlu1 %2745  ;;  %v2744_v55 = vpop.permute.xlu0 %2743 }
 0x572   : >> { %2740 = vst [vmem:[#allocation2 + $0xf0] sm:$0xff] %v2737_v40  ;;  %2728 = vst [vmem:[#allocation2 + $0xe4] sm:$0xff] %v2725_v4  ;;  %v2748_v51 = vrot.slane %v2746_v46, 4  ;;  %v2747_v45 = vrot.slane %v2744_v55, 4 }
 0x573   : >> { %2754 = vst.msk [vmem:[#allocation2 + $0x104] sm:$0xf] %vm395_vm9, %v2746_v46 }
 0x574   : >> { %v2749_v21 = vsel %vm388_vm7, %v2747_v45, %v2748_v51 }
 0x575   : >> { %v2750_v60 = vsel %vm2627_vm10, %v2744_v55, %v2749_v21  ;;  %v2758_v61 = vpop.permute.xlu1 %2757  ;;  %v2756_v63 = vpop.permute.xlu0 %2755 }
 0x576   : >> { %2753 = vst [vmem:[#allocation2 + $0xfc] sm:$0xff] %v2750_v60  ;;  %v2760_v26 = vrot.slane %v2758_v61, 4  ;;  %v2759_v27 = vrot.slane %v2756_v63, 4 }
 0x578   : >> { %v2763_v30 = vsel %vm443_vm12, %v2758_v61, %v2760_v26  ;;  %v2761_v31 = vsel %vm388_vm7, %v2759_v27, %v2760_v26 }
 0x579   : >> { %2767 = vst.msk [vmem:[#allocation2 + $0x110] sm:$0xf] %vm395_vm9, %v2763_v30  ;;  %v2762_v18 = vsel %vm443_vm12, %v2756_v63, %v2761_v31  ;;  %v2771_v41 = vpop.permute.xlu1 %2770  ;;  %v2769_v43 = vpop.permute.xlu0 %2768 }
 0x57a   : >> { %2766 = vst [vmem:[#allocation2 + $0x108] sm:$0xff] %v2762_v18  ;;  %v2773_v47 = vrot.slane %v2771_v41, 4  ;;  %v2772_v48 = vrot.slane %v2769_v43, 4 }
 0x57c   : >> { %v2776_v53 = vsel %vm2653_vm11, %v2771_v41, %v2773_v47  ;;  %v2774_v3 = vsel %vm388_vm7, %v2772_v48, %v2773_v47 }
 0x57d   : >> { %2780 = vst.msk [vmem:[#allocation2 + $0x11c] sm:$0xf] %vm395_vm9, %v2776_v53  ;;  %v2775_v9 = vsel %vm2653_vm11, %v2769_v43, %v2774_v3  ;;  %v2785_v11 = vpop.permute.xlu1 %2784  ;;  %v2783_v33 = vpop.permute.xlu0 %2782 }
 0x57e   : >> { %2779 = vst [vmem:[#allocation2 + $0x114] sm:$0xff] %v2775_v9  ;;  %v2789_v25 = vrot.slane %v2785_v11, 4  ;;  %v2788_v24 = vrot.slane %v2783_v33, 4 }
 0x580   : >> { %v2790_v35 = vsel %vm388_vm7, %v2788_v24, %v2789_v25 }
 0x581   : >> { %v2791_v54 = vsel %vm2670_vm13, %v2790_v35, %v2785_v11  ;;  %v2800_v57 = vpop.permute.xlu1 %2799  ;;  %v2798_v2 = vpop.permute.xlu0 %2797 }
 0x582   : >> { %2795 = vst [vmem:[#allocation2 + $0x120] sm:$0xff] %v2791_v54  ;;  %v2804_v32 = vrot.slane %v2800_v57, 4  ;;  %v2803_v13 = vrot.slane %v2798_v2, 4 }
 0x584   : >> { %v2805_v34 = vsel %vm388_vm7, %v2803_v13, %v2804_v32 }
 0x585   : >> { %v2806_v7 = vsel %vm2686_vm15, %v2805_v34, %v2800_v57  ;;  %v2802_v12 = vpop.permute.xlu1 %2801  ;;  %v2787_v22 = vpop.permute.xlu0 %2786 }
 0x586   : >> { %2810 = vst [vmem:[#allocation2 + $0x12c] sm:$0xff] %v2806_v7  ;;  %v2807_v49 = vsel %vm2686_vm15, %v2804_v32, %v2802_v12  ;;  %v2792_v14 = vsel %vm2670_vm13, %v2789_v25, %v2787_v22 }
 0x587   : >> { %2811 = vst.msk [vmem:[#allocation2 + $0x134] sm:$0xf] %vm395_vm9, %v2807_v49  ;;  %2796 = vst.msk [vmem:[#allocation2 + $0x128] sm:$0xf] %vm395_vm9, %v2792_v14 }
 0x588 PF: >> { %2816 = sbr.rel (!%p5835_p9) target bundleno = 1426 (0x592), region = 79  ;;  %v4947_v5 = vmov (%p5835_p9), 0  }
 0x589   : >> { %2817 = vst [vmem:[#allocation2 + $0xd8] sm:$0xff] (%p5835_p9), %v4947_v5  ;;  %2818 = vst.msk [vmem:[#allocation2 + $0xe0] sm:$0xf] (%p5835_p9), %vm395_vm9, %v4947_v5 }
 0x58a   : >> { %2819 = vst [vmem:[#allocation2 + $0xe4] sm:$0xff] (%p5835_p9), %v4947_v5  ;;  %2820 = vst.msk [vmem:[#allocation2 + $0xec] sm:$0xf] (%p5835_p9), %vm395_vm9, %v4947_v5 }
 0x58b   : >> { %2821 = vst [vmem:[#allocation2 + $0xf0] sm:$0xff] (%p5835_p9), %v4947_v5  ;;  %2822 = vst.msk [vmem:[#allocation2 + $0xf8] sm:$0xf] (%p5835_p9), %vm395_vm9, %v4947_v5 }
 0x58c   : >> { %2823 = vst [vmem:[#allocation2 + $0xfc] sm:$0xff] (%p5835_p9), %v4947_v5  ;;  %2824 = vst.msk [vmem:[#allocation2 + $0x104] sm:$0xf] (%p5835_p9), %vm395_vm9, %v4947_v5 }
 0x58d   : >> { %2825 = vst [vmem:[#allocation2 + $0x108] sm:$0xff] %v4947_v5  ;;  %2826 = vst.msk [vmem:[#allocation2 + $0x110] sm:$0xf] %vm395_vm9, %v4947_v5 }
 0x58e   : >> { %2827 = vst [vmem:[#allocation2 + $0x114] sm:$0xff] %v4947_v5  ;;  %2828 = vst.msk [vmem:[#allocation2 + $0x11c] sm:$0xf] %vm395_vm9, %v4947_v5 }
 0x58f   : >> { %2829 = vst [vmem:[#allocation2 + $0x120] sm:$0xff] %v4947_v5  ;;  %2830 = vst.msk [vmem:[#allocation2 + $0x128] sm:$0xf] %vm395_vm9, %v4947_v5 }
 0x590   : >> { %2831 = vst [vmem:[#allocation2 + $0x12c] sm:$0xff] %v4947_v5  ;;  %2832 = vst.msk [vmem:[#allocation2 + $0x134] sm:$0xf] %vm395_vm9, %v4947_v5 }
 0x591   : >> { %2833 = vst [vmem:[#allocation2 + $0x138] sm:$0xff] %v4947_v5  ;;  %2834 = vst.msk [vmem:[#allocation2 + $0x140] sm:$0xf] %vm395_vm9, %v4947_v5 }
 0x592 PF: >> { %v4771_v19 = vld [vmem:[%s6158_s2 + $0x8] ss:$24 sps:$4 sm:$0xff]   ;;  %3187 = vmatprep.subr.bf16.mxu0 %v4909_v6  ;;  %v4773_v20 = vld [vmem:[%s6158_s2 + $0x4] ss:$24 sps:$4 sm:$0xff]   ;;  %s4948_s18 = smov 40   ;;  %vm2912_vm0 = vcmask 326656  }
 0x593   : >> { %2908 = vrot.lane.b32.xlu0 %v4771_v19, %s4948_s18  ;;  %v4774_v8 = vld [vmem:[%s6158_s2 + $0xc] ss:$24 sps:$4 sm:$0xff]   ;;  %2906 = vrot.lane.b32.xlu1 %v4773_v20, %s4948_s18  ;;  %v4777_v59 = vld [vmem:[#allocation2 + $0xa8] ss:$12 sps:$4 sm:$0xff]   ;;  %v4778_v1 = vld [vmem:[#allocation2 + $0xb0] ss:$12 sps:$4 sm:$0xff]  }
 0x594   : >> { %v4775_v58 = vld [vmem:[#allocation2 + $0xac] ss:$12 sps:$4 sm:$0xff]   ;;  %v4779_v16 = vld [vmem:[#allocation2 + $0x94] ss:$12 sps:$4 sm:$0xff]   ;;  %v4781_v28 = vld [vmem:[#allocation2 + $0x90] ss:$12 sps:$4 sm:$0xff]   ;;  %3188 = vmatpush1.bf16.msra.mxu0 %v4778_v1 }
 0x595   : >> { %3144 = vmatprep.subr.bf16.mxu1 %v4775_v58  ;;  %v4782_v29 = vld [vmem:[#allocation2 + $0x98] ss:$12 sps:$4 sm:$0xff]   ;;  %v4783_v23 = vld [vmem:[#allocation2 + $0x7c] ss:$12 sps:$4 sm:$0xff]   ;;  %3189 = vmatprep.subr.bf16.mxu0 %v4909_v6  ;;  %v4786_v44 = vld [vmem:[#allocation2 + $0x80] ss:$12 sps:$4 sm:$0xff]  }
 0x596   : >> { %3145 = vmatpush1.bf16.msra.mxu1 %v4777_v59  ;;  %v4785_v36 = vld [vmem:[#allocation2 + $0x78] ss:$12 sps:$4 sm:$0xff]   ;;  %v4789_v40 = vld [vmem:[#allocation2 + $0x60] ss:$12 sps:$4 sm:$0xff]   ;;  %v4790_v4 = vld [vmem:[#allocation2 + $0x68] ss:$12 sps:$4 sm:$0xff]  }
 0x597   : >> { %2910 = vrot.lane.b32.xlu0 %v4774_v8, %s4948_s18  ;;  %3146 = vmatprep.subr.bf16.mxu1 %v4779_v16  ;;  %v4787_v37 = vld [vmem:[#allocation2 + $0x64] ss:$12 sps:$4 sm:$0xff]   ;;  %v4791_v46 = vld [vmem:[#allocation2 + $0x4c] ss:$12 sps:$4 sm:$0xff]   ;;  %v4793_v55 = vld [vmem:[#allocation2 + $0x48] ss:$12 sps:$4 sm:$0xff]  }
 0x598   : >> { %3190 = vmatpush1.bf16.msra.mxu0 %v4782_v29  ;;  %v4794_v51 = vld [vmem:[#allocation2 + $0x50] ss:$12 sps:$4 sm:$0xff]   ;;  %v4795_v45 = vld [vmem:[#allocation2 + $0x34] ss:$12 sps:$4 sm:$0xff]   ;;  %v4798_v60 = vld [vmem:[#allocation2 + $0x38] ss:$12 sps:$4 sm:$0xff]  }
 0x599   : >> { %3191 = vmatprep.subr.bf16.mxu0 %v4909_v6  ;;  %v4797_v21 = vld [vmem:[#allocation2 + $0x30] ss:$12 sps:$4 sm:$0xff]   ;;  %v4801_v63 = vld [vmem:[#allocation2 + $0x18] ss:$12 sps:$4 sm:$0xff]   ;;  %v4802_v26 = vld [vmem:[#allocation2 + $0x20] ss:$12 sps:$4 sm:$0xff]  }
 0x59a   : >> { %3147 = vmatpush1.bf16.msra.mxu1 %v4781_v28  ;;  %v4799_v61 = vld [vmem:[#allocation2 + $0x1c] ss:$12 sps:$4 sm:$0xff]   ;;  %v4803_v27 = vld [vmem:[#allocation2 + $0x4] ss:$12 sps:$4 sm:$0xff]   ;;  %v4805_v31 = vld [vmem:[#allocation2] ss:$12 sps:$4 sm:$0xff]  }
 0x59b   : >> { %3148 = vmatprep.subr.bf16.mxu1 %v4783_v23  ;;  %v2891_v30 = vld [vmem:[#allocation2 + $0x138] sm:$0xff]  ;;  %v4806_v18 = vld [vmem:[#allocation2 + $0x8] ss:$12 sps:$4 sm:$0xff]   ;;  %v4809_v47 = vld [vmem:[#allocation2 + $0x140] ss:$0 sps:$4 sm:$0xff]   ;;  %p3252_p10 = scmp.ge.s32.totalorder %s4905_s23, 8 }
 0x59c   : >> { %3192 = vmatpush1.bf16.msra.mxu0 %v4786_v44  ;;  %v4523_v41 = vcombine.high %v2891_v30, %v2891_v30  ;;  %v4522_v43 = vcombine.low %v2891_v30, %v2891_v30  ;;  %v4810_v53 = vld [vmem:[#allocation2 + $0x124] ss:$12 sps:$4 sm:$0xff]   ;;  %v3142_v3 = vsel %vm388_vm7, %v4809_v47, 0  ;;  %v4812_v9 = vld [vmem:[#allocation2 + $0x120] ss:$12 sps:$4 sm:$0xff]   ;;  %v3230_v20 = vsub.s32 1, %v5768_v15 }
 0x59d   : >> { %3193 = vmatprep.subr.bf16.mxu0 %v4909_v6  ;;  %v4813_v11 = vld [vmem:[#allocation2 + $0x128] ss:$12 sps:$4 sm:$0xff]   ;;  %v4814_v33 = vld [vmem:[#allocation2 + $0x10c] ss:$12 sps:$4 sm:$0xff]   ;;  %v4817_v24 = vld [vmem:[#allocation2 + $0x110] ss:$12 sps:$4 sm:$0xff]   ;;  %p5940_p11 = pnand %p3252_p10, %p2435_p5 }
 0x59e   : >> { %3149 = vmatpush1.bf16.msra.mxu1 %v4785_v36  ;;  %v3136_v48 = vsel %vm388_vm7, %v4522_v43, 0  ;;  %v4816_v25 = vld [vmem:[#allocation2 + $0x108] ss:$12 sps:$4 sm:$0xff]   ;;  %v4820_v54 = vld [vmem:[#allocation2 + $0xf0] ss:$12 sps:$4 sm:$0xff]   ;;  %v3231_v8 = vrot.slane %v5674_v56, %v3230_v20  ;;  %v3239_v58 = vrot.slane %v5661_v39, %v3230_v20  ;;  %v3235_v59 = vrot.slane %v5666_v52, %v3230_v20  ;;  %s4949_s27 = smov (!%p5940_p11), 108  }
 0x59f   : >> { %3150 = vmatprep.subr.bf16.mxu1 %v4787_v37  ;;  %v4818_v35 = vld [vmem:[#allocation2 + $0xf4] ss:$12 sps:$4 sm:$0xff]   ;;  %v4821_v57 = vld [vmem:[#allocation2 + $0xf8] ss:$12 sps:$4 sm:$0xff]   ;;  %v4822_v2 = vld [vmem:[#allocation2 + $0xdc] ss:$12 sps:$4 sm:$0xff]  }
 0x5a0   : >> { %3194 = vmatpush1.bf16.msra.mxu0 %v4790_v4  ;;  %v4824_v32 = vld [vmem:[#allocation2 + $0xd8] ss:$12 sps:$4 sm:$0xff]   ;;  %v4825_v13 = vld [vmem:[#allocation2 + $0xe0] ss:$12 sps:$4 sm:$0xff]   ;;  %v4829_v12 = vld [vmem:[#allocation2 + $0xc8] ss:$12 sps:$4 sm:$0xff]  }
 0x5a1   : >> { %3195 = vmatprep.subr.bf16.mxu0 %v4909_v6  ;;  %v4826_v34 = vld [vmem:[#allocation2 + $0xc4] ss:$12 sps:$4 sm:$0xff]   ;;  %v4828_v7 = vld [vmem:[#allocation2 + $0xc0] ss:$12 sps:$4 sm:$0xff]   ;;  %s4950_s28 = smov (!%p5940_p11), 118   ;;  %s4951_s29 = smov (!%p5940_p11), 74  }
 0x5a2   : >> { %3151 = vmatpush1.bf16.msra.mxu1 %v4789_v40  ;;  %s4952_s11 = smov (!%p5940_p11), 64   ;;  %s4953_s12 = smov (!%p5940_p11), 54  }
 0x5a3   : >> { %3152 = vmatprep.subr.bf16.mxu1 %v4791_v46  ;;  %s4954_s13 = smov (!%p5940_p11), 20   ;;  %s4955_s26 = smov (!%p5940_p11), 10  }
 0x5a4   : >> { %3196 = vmatpush1.bf16.msra.mxu0 %v4794_v51 }
 0x5a5   : >> { %3197 = vmatprep.subr.bf16.mxu0 %v4909_v6 }
 0x5a6   : >> { %3153 = vmatpush1.bf16.msra.mxu1 %v4793_v55 }
 0x5a7   : >> { %3154 = vmatprep.subr.bf16.mxu1 %v4795_v45 }
 0x5a8   : >> { %3198 = vmatpush1.bf16.msra.mxu0 %v4798_v60 }
 0x5a9   : >> { %3199 = vmatprep.subr.bf16.mxu0 %v4909_v6 }
 0x5aa   : >> { %3155 = vmatpush1.bf16.msra.mxu1 %v4797_v21 }
 0x5ab   : >> { %3156 = vmatprep.subr.bf16.mxu1 %v4799_v61 }
 0x5ac   : >> { %3200 = vmatpush1.bf16.msra.mxu0 %v4802_v26 }
 0x5ad   : >> { %3201 = vmatprep.subr.bf16.mxu0 %v4909_v6 }
 0x5ae   : >> { %3157 = vmatpush1.bf16.msra.mxu1 %v4801_v63 }
 0x5af   : >> { %3158 = vmatprep.subr.bf16.mxu1 %v4803_v27 }
 0x5b0   : >> { %3202 = vmatpush1.bf16.msra.mxu0 %v4806_v18 }
 0x5b1   : >> { %3207 = vmatprep.subr.bf16.mxu0 %v4909_v6 }
 0x5b2   : >> { %3159 = vmatpush1.bf16.msra.mxu1 %v4805_v31 }
 0x5b3   : >> { %4525 = vmatprep.subr.msk.bf16.mxu1 %vm388_vm7, %v4523_v41 }
 0x5b4   : >> { %3208 = vmatpush2.bf16.msra.mxu0 %v3142_v3 }
 0x5b5   : >> { %3209 = vmatprep.subr.bf16.mxu0 %v4909_v6 }
 0x5b6   : >> { %3165 = vmatpush2.bf16.msra.mxu1 %v3136_v48 }
 0x5b7   : >> { %3166 = vmatprep.subr.bf16.mxu1 %v4810_v53 }
 0x5b8   : >> { %3210 = vmatpush2.bf16.msra.mxu0 %v4813_v11 }
 0x5b9   : >> { %3211 = vmatprep.subr.bf16.mxu0 %v4909_v6 }
 0x5ba   : >> { %3167 = vmatpush2.bf16.msra.mxu1 %v4812_v9 }
 0x5bb   : >> { %3168 = vmatprep.subr.bf16.mxu1 %v4814_v33 }
 0x5bc   : >> { %3212 = vmatpush2.bf16.msra.mxu0 %v4817_v24 }
 0x5bd   : >> { %3213 = vmatprep.subr.bf16.mxu0 %v4909_v6 }
 0x5be   : >> { %3169 = vmatpush2.bf16.msra.mxu1 %v4816_v25 }
 0x5bf   : >> { %3170 = vmatprep.subr.bf16.mxu1 %v4818_v35 }
 0x5c0   : >> { %3214 = vmatpush2.bf16.msra.mxu0 %v4821_v57 }
 0x5c1   : >> { %3215 = vmatprep.subr.bf16.mxu0 %v4909_v6 }
 0x5c2   : >> { %3171 = vmatpush2.bf16.msra.mxu1 %v4820_v54 }
 0x5c3   : >> { %3172 = vmatprep.subr.bf16.mxu1 %v4822_v2 }
 0x5c4   : >> { %3216 = vmatpush2.bf16.msra.mxu0 %v4825_v13 }
 0x5c5   : >> { %3217 = vmatprep.subr.bf16.mxu0 %v4909_v6 }
 0x5c6   : >> { %3173 = vmatpush2.bf16.msra.mxu1 %v4824_v32 }
 0x5c7   : >> { %3174 = vmatprep.subr.bf16.mxu1 %v4826_v34 }
 0x5c8   : >> { %3218 = vmatpush2.bf16.msra.mxu0 %v4829_v12 }
 0x5ca   : >> { %3175 = vmatpush2.bf16.msra.mxu1 %v4828_v7 }
 0x605   : >> { %v2909_v22 = vpop.permute.xlu0 %2908  ;;  %v2907_v49 = vpop.permute.xlu1 %2906 }
 0x606   : >> { %v2913_v19 = vsel %vm2912_vm0, %v2907_v49, %v2909_v22 }
 0x609   : >> { %v2911_v14 = vpop.permute.xlu0 %2910 }
 0x60a   : >> { %v2914_v5 = vsel %vm2912_vm0, %v2909_v22, %v2911_v14 }
 0x60b   : >> { %4526 = vmatprep.mubr.msk.bf16.mxu1 %vm2313_vm14, %v2914_v5  ;;  %4527 = vmatprep.mubr.msk.bf16.mxu0 %vm2313_vm14, %v2914_v5 }
 0x60c   : >> { %3177 = vmatmul.mubr.bf16.vlgmr.msra.gmra.mxu1 %v2913_v19  ;;  %3220 = vmatmul.mubr.bf16.vlgmr.msra.gmra.mxu0 %v2913_v19 }
 0x6cc   : >> { %v3178_v1 = vpop.f32.mrf.mxu1  ;;  %v3221_v16 = vpop.f32.mrf.mxu0 }
 0x6cd   : >> { %v3240_v28 = vmul.f32 %v3231_v8, %v3178_v1  ;;  %v3242_v29 = vmul.f32 %v3239_v58, %v3221_v16 }
 0x6ce   : >> { %v3180_v23 = vpop.f32.mrf.mxu1  ;;  %v3223_v36 = vpop.f32.mrf.mxu0 }
 0x6cf   : >> { %v5949_v44 = vadd.f32 %v3240_v28, %v5776_v10  ;;  %v5952_v37 = vadd.f32 %v3242_v29, %v5773_v62  ;;  %v3241_v40 = vmul.f32 %v3235_v59, %v3180_v23 }
 0x6d0   : >> { %v3182_v4 = vpop.f32.mrf.mxu1  ;;  %v3224_v46 = vpop.f32.mrf.mxu0 }
 0x6d1   : >> { %v5955_v55 = vadd.f32 %v3241_v40, %v5780_v17  ;;  %v3243_v51 = vmul.f32 %v3231_v8, %v3182_v4  ;;  %v3245_v45 = vmul.f32 %v3239_v58, %v3224_v46  ;;  %3256 = sbr.rel (%p5940_p11) target bundleno = 1895 (0x767), region = 83 }
 0x6d2   : >> { %v3184_v21 = vpop.f32.mrf.mxu1  ;;  %v3226_v60 = vpop.f32.mrf.mxu0 }
 0x6d3   : >> { %v5958_v61 = vadd.f32 %v3243_v51, %v5782_v42  ;;  %v5961_v63 = vadd.f32 %v3245_v45, %v5778_v0  ;;  %v3244_v10 = vmul.f32 %v3235_v59, %v3184_v21 }
 0x6d5   : >> { %v5964_v62 = vadd.f32 %v3244_v10, %v5784_v50 }
 0x6d6   : >> { %v4529_v17 = vld [vmem:[%s5054_s25 - $0x100] sm:$0xff]  ;;  %v4530_v26 = vld [vmem:[%s5054_s25 - $0xf8] sm:$0xff]  ;;  %v4531_v27 = vld [vmem:[%s5054_s25 - $0xf0] sm:$0xff]  ;;  %vm3289_vm1 = vcmask 883712   ;;  %vm3276_vm2 = vcmask 965632   ;;  %vm3303_vm3 = vcmask 605184  }
 0x6d7   : >> { %3282 = vrot.lane.b32.xlu1 %v4529_v17, %s4949_s27  ;;  %3265 = vst [vmem:[#allocation2] sm:$0xff] %v4529_v17  ;;  %3269 = vrot.lane.b32.xlu0 %v4529_v17, %s4950_s28  ;;  %3266 = vst.msk [vmem:[#allocation2 + $0x8] sm:$0xf] %vm395_vm9, %v4530_v26  ;;  %v4532_v0 = vld [vmem:[%s5054_s25 - $0xe8] sm:$0xff]  ;;  %v3365_v42 = vrot.slane %v4531_v27, 4  ;;  %vm3329_vm5 = vcmask 441344  }
 0x6d8   : >> { %v3366_v50 = vrot.slane %v4532_v0, 4  ;;  %vm3344_vm6 = vcmask 162816   ;;  %vm3358_vm8 = vcmask 80896  }
 0x6da   : >> { %v3367_v30 = vsel %vm388_vm7, %v3365_v42, %v3366_v50  ;;  %3371 = vst.msk [vmem:[#allocation2 + $0x68] sm:$0xf] %vm395_vm9, %v3366_v50 }
 0x6db   : >> { %3284 = vrot.lane.b32.xlu1 %v4530_v26, %s4949_s27  ;;  %3271 = vrot.lane.b32.xlu0 %v4530_v26, %s4950_s28  ;;  %3370 = vst [vmem:[#allocation2 + $0x60] sm:$0xff] %v3367_v30 }
 0x6df   : >> { %3298 = vrot.lane.b32.xlu1 %v4531_v27, %s4951_s29  ;;  %3296 = vrot.lane.b32.xlu0 %v4530_v26, %s4951_s29 }
 0x6e3   : >> { %3311 = vrot.lane.b32.xlu1 %v4531_v27, %s4952_s11  ;;  %3309 = vrot.lane.b32.xlu0 %v4530_v26, %s4952_s11 }
 0x6e7   : >> { %3324 = vrot.lane.b32.xlu1 %v4531_v27, %s4953_s12  ;;  %3322 = vrot.lane.b32.xlu0 %v4530_v26, %s4953_s12 }
 0x6eb   : >> { %3339 = vrot.lane.b32.xlu1 %v4532_v0, %s4954_s13  ;;  %3337 = vrot.lane.b32.xlu0 %v4531_v27, %s4954_s13 }
 0x6ef   : >> { %3353 = vrot.lane.b32.xlu1 %v4532_v0, %s4955_s26  ;;  %3351 = vrot.lane.b32.xlu0 %v4531_v27, %s4955_s26 }
 0x749   : >> { %v3283_v31 = vpop.permute.xlu1 %3282  ;;  %v3270_v18 = vpop.permute.xlu0 %3269 }
 0x74a   : >> { %v3286_v47 = vrot.slane %v3283_v31, 4  ;;  %v3273_v48 = vrot.slane %v3270_v18, 4 }
 0x74d   : >> { %v3285_v41 = vpop.permute.xlu1 %3284  ;;  %v3272_v43 = vpop.permute.xlu0 %3271 }
 0x74e   : >> { %v3287_v53 = vrot.slane %v3285_v41, 4  ;;  %3294 = vst.msk [vmem:[#allocation2 + $0x20] sm:$0xf] %vm395_vm9, %v3285_v41  ;;  %v3274_v3 = vrot.slane %v3272_v43, 4  ;;  %3281 = vst.msk [vmem:[#allocation2 + $0x14] sm:$0xf] %vm395_vm9, %v3272_v43 }
 0x750   : >> { %v3288_v9 = vsel %vm388_vm7, %v3286_v47, %v3287_v53  ;;  %v3275_v11 = vsel %vm388_vm7, %v3273_v48, %v3274_v3 }
 0x751   : >> { %v3290_v33 = vsel %vm3289_vm1, %v3283_v31, %v3288_v9  ;;  %v3277_v25 = vsel %vm3276_vm2, %v3270_v18, %v3275_v11  ;;  %v3299_v24 = vpop.permute.xlu1 %3298  ;;  %v3297_v35 = vpop.permute.xlu0 %3296 }
 0x752   : >> { %3293 = vst [vmem:[#allocation2 + $0x18] sm:$0xff] %v3290_v33  ;;  %3280 = vst [vmem:[#allocation2 + $0xc] sm:$0xff] %v3277_v25  ;;  %v3301_v54 = vrot.slane %v3299_v24, 4  ;;  %v3300_v57 = vrot.slane %v3297_v35, 4 }
 0x753   : >> { %3308 = vst.msk [vmem:[#allocation2 + $0x2c] sm:$0xf] %vm395_vm9, %v3299_v24 }
 0x754   : >> { %v3302_v2 = vsel %vm388_vm7, %v3300_v57, %v3301_v54 }
 0x755   : >> { %v3304_v32 = vsel %vm3303_vm3, %v3297_v35, %v3302_v2  ;;  %v3312_v13 = vpop.permute.xlu1 %3311  ;;  %v3310_v34 = vpop.permute.xlu0 %3309 }
 0x756   : >> { %3307 = vst [vmem:[#allocation2 + $0x24] sm:$0xff] %v3304_v32  ;;  %v3314_v7 = vrot.slane %v3312_v13, 4  ;;  %v3313_v12 = vrot.slane %v3310_v34, 4 }
 0x758   : >> { %v3317_v22 = vsel %vm443_vm12, %v3312_v13, %v3314_v7  ;;  %v3315_v49 = vsel %vm388_vm7, %v3313_v12, %v3314_v7 }
 0x759   : >> { %3321 = vst.msk [vmem:[#allocation2 + $0x38] sm:$0xf] %vm395_vm9, %v3317_v22  ;;  %v3316_v14 = vsel %vm443_vm12, %v3310_v34, %v3315_v49  ;;  %v3325_v5 = vpop.permute.xlu1 %3324  ;;  %v3323_v19 = vpop.permute.xlu0 %3322 }
 0x75a   : >> { %3320 = vst [vmem:[#allocation2 + $0x30] sm:$0xff] %v3316_v14  ;;  %v3327_v20 = vrot.slane %v3325_v5, 4  ;;  %v3326_v8 = vrot.slane %v3323_v19, 4 }
 0x75c   : >> { %v3331_v58 = vsel %vm3329_vm5, %v3325_v5, %v3327_v20  ;;  %v3328_v59 = vsel %vm388_vm7, %v3326_v8, %v3327_v20 }
 0x75d   : >> { %3335 = vst.msk [vmem:[#allocation2 + $0x44] sm:$0xf] %vm395_vm9, %v3331_v58  ;;  %v3330_v1 = vsel %vm3329_vm5, %v3323_v19, %v3328_v59  ;;  %v3340_v16 = vpop.permute.xlu1 %3339  ;;  %v3338_v28 = vpop.permute.xlu0 %3337 }
 0x75e   : >> { %3334 = vst [vmem:[#allocation2 + $0x3c] sm:$0xff] %v3330_v1  ;;  %v3342_v29 = vrot.slane %v3340_v16, 4  ;;  %v3341_v23 = vrot.slane %v3338_v28, 4 }
 0x760   : >> { %v3346_v36 = vsel %vm3344_vm6, %v3340_v16, %v3342_v29  ;;  %v3343_v40 = vsel %vm388_vm7, %v3341_v23, %v3342_v29 }
 0x761   : >> { %3350 = vst.msk [vmem:[#allocation2 + $0x50] sm:$0xf] %vm395_vm9, %v3346_v36  ;;  %v3345_v4 = vsel %vm3344_vm6, %v3338_v28, %v3343_v40  ;;  %v3354_v46 = vpop.permute.xlu1 %3353  ;;  %v3352_v51 = vpop.permute.xlu0 %3351 }
 0x762   : >> { %3349 = vst [vmem:[#allocation2 + $0x48] sm:$0xff] %v3345_v4  ;;  %v3356_v45 = vrot.slane %v3354_v46, 4  ;;  %v3355_v21 = vrot.slane %v3352_v51, 4 }
 0x764   : >> { %v3360_v60 = vsel %vm3358_vm8, %v3354_v46, %v3356_v45  ;;  %v3357_v10 = vsel %vm388_vm7, %v3355_v21, %v3356_v45 }
 0x765   : >> { %3364 = vst.msk [vmem:[#allocation2 + $0x5c] sm:$0xf] %vm395_vm9, %v3360_v60  ;;  %v3359_v17 = vsel %vm3358_vm8, %v3352_v51, %v3357_v10 }
 0x766   : >> { %3363 = vst [vmem:[#allocation2 + $0x54] sm:$0xff] %v3359_v17 }
 0x767 PF: >> { %3374 = sbr.rel (!%p5940_p11) target bundleno = 1905 (0x771), region = 87  ;;  %v4956_v26 = vmov (%p5940_p11), 0  }
 0x768   : >> { %3375 = vst [vmem:[#allocation2] sm:$0xff] (%p5940_p11), %v4956_v26  ;;  %3376 = vst.msk [vmem:[#allocation2 + $0x8] sm:$0xf] (%p5940_p11), %vm395_vm9, %v4956_v26 }
 0x769   : >> { %3377 = vst [vmem:[#allocation2 + $0xc] sm:$0xff] (%p5940_p11), %v4956_v26  ;;  %3378 = vst.msk [vmem:[#allocation2 + $0x14] sm:$0xf] (%p5940_p11), %vm395_vm9, %v4956_v26 }
 0x76a   : >> { %3379 = vst [vmem:[#allocation2 + $0x18] sm:$0xff] (%p5940_p11), %v4956_v26  ;;  %3380 = vst.msk [vmem:[#allocation2 + $0x20] sm:$0xf] (%p5940_p11), %vm395_vm9, %v4956_v26 }
 0x76b   : >> { %3381 = vst [vmem:[#allocation2 + $0x24] sm:$0xff] (%p5940_p11), %v4956_v26  ;;  %3382 = vst.msk [vmem:[#allocation2 + $0x2c] sm:$0xf] (%p5940_p11), %vm395_vm9, %v4956_v26 }
 0x76c   : >> { %3383 = vst [vmem:[#allocation2 + $0x30] sm:$0xff] %v4956_v26  ;;  %3384 = vst.msk [vmem:[#allocation2 + $0x38] sm:$0xf] %vm395_vm9, %v4956_v26 }
 0x76d   : >> { %3385 = vst [vmem:[#allocation2 + $0x3c] sm:$0xff] %v4956_v26  ;;  %3386 = vst.msk [vmem:[#allocation2 + $0x44] sm:$0xf] %vm395_vm9, %v4956_v26 }
 0x76e   : >> { %3387 = vst [vmem:[#allocation2 + $0x48] sm:$0xff] %v4956_v26  ;;  %3388 = vst.msk [vmem:[#allocation2 + $0x50] sm:$0xf] %vm395_vm9, %v4956_v26 }
 0x76f   : >> { %3389 = vst [vmem:[#allocation2 + $0x54] sm:$0xff] %v4956_v26  ;;  %3390 = vst.msk [vmem:[#allocation2 + $0x5c] sm:$0xf] %vm395_vm9, %v4956_v26 }
 0x770   : >> { %3391 = vst [vmem:[#allocation2 + $0x60] sm:$0xff] %v4956_v26  ;;  %3392 = vst.msk [vmem:[#allocation2 + $0x68] sm:$0xf] %vm395_vm9, %v4956_v26 }
 0x771 PF: >> { %v4533_v27 = vld [vmem:[%s5054_s25 + $0x40] sm:$0xff]  ;;  %v4534_v0 = vld [vmem:[%s5054_s25 + $0x48] sm:$0xff]  ;;  %v4535_v42 = vld [vmem:[%s5054_s25 + $0x50] sm:$0xff]  ;;  %s4957_s14 = smov 108   ;;  %s4958_s16 = smov 118   ;;  %vm3421_vm10 = vcmask 883712  }
 0x772   : >> { %3414 = vrot.lane.b32.xlu1 %v4533_v27, %s4957_s14  ;;  %3397 = vst [vmem:[#allocation2 + $0x6c] sm:$0xff] %v4533_v27  ;;  %3401 = vrot.lane.b32.xlu0 %v4533_v27, %s4958_s16  ;;  %3398 = vst.msk [vmem:[#allocation2 + $0x74] sm:$0xf] %vm395_vm9, %v4534_v0  ;;  %v4536_v50 = vld [vmem:[%s5054_s25 + $0x58] sm:$0xff]  ;;  %v3497_v30 = vrot.slane %v4535_v42, 4  ;;  %s4959_s17 = smov 74  }
 0x773   : >> { %v3498_v31 = vrot.slane %v4536_v50, 4  ;;  %p3504_p12 = scmp.lt.s32.totalorder %s4905_s23, 3  ;;  %s4960_s20 = smov 54   ;;  %vm3408_vm11 = vcmask 965632   ;;  %vm3435_vm13 = vcmask 605184   ;;  %vm3461_vm15 = vcmask 441344  }
 0x774   : >> { %s4961_s21 = smov 20   ;;  %s4962_s24 = smov 10   ;;  %vm3476_vm0 = vcmask 162816   ;;  %vm3490_vm1 = vcmask 80896  }
 0x775   : >> { %v3499_v18 = vsel %vm388_vm7, %v3497_v30, %v3498_v31  ;;  %3503 = vst.msk [vmem:[#allocation2 + $0xd4] sm:$0xf] %vm395_vm9, %v3498_v31  ;;  %p6014_p13 = pnand %p3504_p12, %p2695_p7 }
 0x776   : >> { %3416 = vrot.lane.b32.xlu1 %v4534_v0, %s4957_s14  ;;  %3403 = vrot.lane.b32.xlu0 %v4534_v0, %s4958_s16  ;;  %3502 = vst [vmem:[#allocation2 + $0xcc] sm:$0xff] %v3499_v18  ;;  %s4963_s27 = smov (!%p6014_p13), 108   ;;  %s4964_s28 = smov (!%p6014_p13), 118  }
 0x777   : >> { %s4965_s29 = smov (!%p6014_p13), 74   ;;  %s4966_s11 = smov (!%p6014_p13), 64  }
 0x778   : >> { %s4967_s12 = smov (!%p6014_p13), 54   ;;  %s4968_s13 = smov (!%p6014_p13), 20  }
 0x779   : >> { %s4969_s26 = smov (!%p6014_p13), 10  }
 0x77a   : >> { %3430 = vrot.lane.b32.xlu1 %v4535_v42, %s4959_s17  ;;  %3428 = vrot.lane.b32.xlu0 %v4534_v0, %s4959_s17 }
 0x77e   : >> { %3443 = vrot.lane.b32.xlu1 %v4535_v42, %s4911_s10  ;;  %3441 = vrot.lane.b32.xlu0 %v4534_v0, %s4911_s10 }
 0x782   : >> { %3456 = vrot.lane.b32.xlu1 %v4535_v42, %s4960_s20  ;;  %3454 = vrot.lane.b32.xlu0 %v4534_v0, %s4960_s20 }
 0x786   : >> { %3471 = vrot.lane.b32.xlu1 %v4536_v50, %s4961_s21  ;;  %3469 = vrot.lane.b32.xlu0 %v4535_v42, %s4961_s21 }
 0x78a   : >> { %3485 = vrot.lane.b32.xlu1 %v4536_v50, %s4962_s24  ;;  %3483 = vrot.lane.b32.xlu0 %v4535_v42, %s4962_s24 }
 0x7e4   : >> { %v3415_v41 = vpop.permute.xlu1 %3414  ;;  %v3402_v43 = vpop.permute.xlu0 %3401 }
 0x7e5   : >> { %v3418_v53 = vrot.slane %v3415_v41, 4  ;;  %v3405_v3 = vrot.slane %v3402_v43, 4 }
 0x7e8   : >> { %v3417_v47 = vpop.permute.xlu1 %3416  ;;  %v3404_v48 = vpop.permute.xlu0 %3403 }
 0x7e9   : >> { %v3419_v9 = vrot.slane %v3417_v47, 4  ;;  %3426 = vst.msk [vmem:[#allocation2 + $0x8c] sm:$0xf] %vm395_vm9, %v3417_v47  ;;  %v3406_v11 = vrot.slane %v3404_v48, 4  ;;  %3413 = vst.msk [vmem:[#allocation2 + $0x80] sm:$0xf] %vm395_vm9, %v3404_v48 }
 0x7eb   : >> { %v3420_v33 = vsel %vm388_vm7, %v3418_v53, %v3419_v9  ;;  %v3407_v25 = vsel %vm388_vm7, %v3405_v3, %v3406_v11 }
 0x7ec   : >> { %v3422_v24 = vsel %vm3421_vm10, %v3415_v41, %v3420_v33  ;;  %v3409_v35 = vsel %vm3408_vm11, %v3402_v43, %v3407_v25  ;;  %v3431_v54 = vpop.permute.xlu1 %3430  ;;  %v3429_v57 = vpop.permute.xlu0 %3428 }
 0x7ed   : >> { %3425 = vst [vmem:[#allocation2 + $0x84] sm:$0xff] %v3422_v24  ;;  %3412 = vst [vmem:[#allocation2 + $0x78] sm:$0xff] %v3409_v35  ;;  %v3433_v2 = vrot.slane %v3431_v54, 4  ;;  %v3432_v32 = vrot.slane %v3429_v57, 4 }
 0x7ee   : >> { %3440 = vst.msk [vmem:[#allocation2 + $0x98] sm:$0xf] %vm395_vm9, %v3431_v54 }
 0x7ef   : >> { %v3434_v13 = vsel %vm388_vm7, %v3432_v32, %v3433_v2 }
 0x7f0   : >> { %v3436_v34 = vsel %vm3435_vm13, %v3429_v57, %v3434_v13  ;;  %v3444_v7 = vpop.permute.xlu1 %3443  ;;  %v3442_v12 = vpop.permute.xlu0 %3441 }
 0x7f1   : >> { %3439 = vst [vmem:[#allocation2 + $0x90] sm:$0xff] %v3436_v34  ;;  %v3446_v22 = vrot.slane %v3444_v7, 4  ;;  %v3445_v49 = vrot.slane %v3442_v12, 4 }
 0x7f3   : >> { %v3449_v14 = vsel %vm443_vm12, %v3444_v7, %v3446_v22  ;;  %v3447_v5 = vsel %vm388_vm7, %v3445_v49, %v3446_v22 }
 0x7f4   : >> { %3453 = vst.msk [vmem:[#allocation2 + $0xa4] sm:$0xf] %vm395_vm9, %v3449_v14  ;;  %v3448_v19 = vsel %vm443_vm12, %v3442_v12, %v3447_v5  ;;  %v3457_v20 = vpop.permute.xlu1 %3456  ;;  %v3455_v8 = vpop.permute.xlu0 %3454 }
 0x7f5   : >> { %3452 = vst [vmem:[#allocation2 + $0x9c] sm:$0xff] %v3448_v19  ;;  %v3459_v58 = vrot.slane %v3457_v20, 4  ;;  %v3458_v59 = vrot.slane %v3455_v8, 4 }
 0x7f7   : >> { %v3463_v1 = vsel %vm3461_vm15, %v3457_v20, %v3459_v58  ;;  %v3460_v16 = vsel %vm388_vm7, %v3458_v59, %v3459_v58 }
 0x7f8   : >> { %3467 = vst.msk [vmem:[#allocation2 + $0xb0] sm:$0xf] %vm395_vm9, %v3463_v1  ;;  %v3462_v28 = vsel %vm3461_vm15, %v3455_v8, %v3460_v16  ;;  %v3472_v29 = vpop.permute.xlu1 %3471  ;;  %v3470_v23 = vpop.permute.xlu0 %3469 }
 0x7f9   : >> { %3466 = vst [vmem:[#allocation2 + $0xa8] sm:$0xff] %v3462_v28  ;;  %v3474_v36 = vrot.slane %v3472_v29, 4  ;;  %v3473_v40 = vrot.slane %v3470_v23, 4 }
 0x7fb   : >> { %v3478_v4 = vsel %vm3476_vm0, %v3472_v29, %v3474_v36  ;;  %v3475_v46 = vsel %vm388_vm7, %v3473_v40, %v3474_v36 }
 0x7fc   : >> { %3482 = vst.msk [vmem:[#allocation2 + $0xbc] sm:$0xf] %vm395_vm9, %v3478_v4  ;;  %v3477_v51 = vsel %vm3476_vm0, %v3470_v23, %v3475_v46  ;;  %v3486_v45 = vpop.permute.xlu1 %3485  ;;  %v3484_v21 = vpop.permute.xlu0 %3483 }
 0x7fd   : >> { %3481 = vst [vmem:[#allocation2 + $0xb4] sm:$0xff] %v3477_v51  ;;  %v3488_v60 = vrot.slane %v3486_v45, 4  ;;  %v3487_v10 = vrot.slane %v3484_v21, 4  ;;  %3508 = sbr.rel (%p6014_p13) target bundleno = 2195 (0x893), region = 91 }
 0x7ff   : >> { %v3492_v17 = vsel %vm3490_vm1, %v3486_v45, %v3488_v60  ;;  %v3489_v26 = vsel %vm388_vm7, %v3487_v10, %v3488_v60 }
 0x800   : >> { %3496 = vst.msk [vmem:[#allocation2 + $0xc8] sm:$0xf] %vm395_vm9, %v3492_v17  ;;  %v3491_v27 = vsel %vm3490_vm1, %v3484_v21, %v3489_v26 }
 0x801   : >> { %3495 = vst [vmem:[#allocation2 + $0xc0] sm:$0xff] %v3491_v27 }
 0x802   : >> { %v4538_v0 = vld [vmem:[%s5054_s25 + $0x180] sm:$0xff]  ;;  %v4539_v42 = vld [vmem:[%s5054_s25 + $0x188] sm:$0xff]  ;;  %v4540_v50 = vld [vmem:[%s5054_s25 + $0x190] sm:$0xff] }
 0x803   : >> { %3533 = vrot.lane.b32.xlu1 %v4538_v0, %s4963_s27  ;;  %3517 = vst [vmem:[#allocation2 + $0xd8] sm:$0xff] %v4538_v0  ;;  %3521 = vrot.lane.b32.xlu0 %v4538_v0, %s4964_s28  ;;  %3518 = vst.msk [vmem:[#allocation2 + $0xe0] sm:$0xf] %vm395_vm9, %v4539_v42  ;;  %v4541_v30 = vld [vmem:[%s5054_s25 + $0x198] sm:$0xff]  ;;  %v3611_v31 = vrot.slane %v4540_v50, 4 }
 0x804   : >> { %v3612_v18 = vrot.slane %v4541_v30, 4 }
 0x806   : >> { %v3613_v41 = vsel %vm388_vm7, %v3611_v31, %v3612_v18  ;;  %3617 = vst.msk [vmem:[#allocation2 + $0x140] sm:$0xf] %vm395_vm9, %v3612_v18 }
 0x807   : >> { %3535 = vrot.lane.b32.xlu1 %v4539_v42, %s4963_s27  ;;  %3523 = vrot.lane.b32.xlu0 %v4539_v42, %s4964_s28  ;;  %3616 = vst [vmem:[#allocation2 + $0x138] sm:$0xff] %v3613_v41 }
 0x80b   : >> { %3548 = vrot.lane.b32.xlu1 %v4540_v50, %s4965_s29  ;;  %3546 = vrot.lane.b32.xlu0 %v4539_v42, %s4965_s29 }
 0x80f   : >> { %3560 = vrot.lane.b32.xlu1 %v4540_v50, %s4966_s11  ;;  %3558 = vrot.lane.b32.xlu0 %v4539_v42, %s4966_s11 }
 0x813   : >> { %3573 = vrot.lane.b32.xlu1 %v4540_v50, %s4967_s12  ;;  %3571 = vrot.lane.b32.xlu0 %v4539_v42, %s4967_s12 }
 0x817   : >> { %3587 = vrot.lane.b32.xlu1 %v4541_v30, %s4968_s13  ;;  %3585 = vrot.lane.b32.xlu0 %v4540_v50, %s4968_s13 }
 0x81b   : >> { %3600 = vrot.lane.b32.xlu1 %v4541_v30, %s4969_s26  ;;  %3598 = vrot.lane.b32.xlu0 %v4540_v50, %s4969_s26 }
 0x875   : >> { %v3534_v43 = vpop.permute.xlu1 %3533  ;;  %v3522_v47 = vpop.permute.xlu0 %3521 }
 0x876   : >> { %v3537_v3 = vrot.slane %v3534_v43, 4  ;;  %v3525_v9 = vrot.slane %v3522_v47, 4 }
 0x879   : >> { %v3536_v48 = vpop.permute.xlu1 %3535  ;;  %v3524_v53 = vpop.permute.xlu0 %3523 }
 0x87a   : >> { %v3538_v11 = vrot.slane %v3536_v48, 4  ;;  %3544 = vst.msk [vmem:[#allocation2 + $0xf8] sm:$0xf] %vm395_vm9, %v3536_v48  ;;  %v3526_v33 = vrot.slane %v3524_v53, 4  ;;  %3532 = vst.msk [vmem:[#allocation2 + $0xec] sm:$0xf] %vm395_vm9, %v3524_v53 }
 0x87c   : >> { %v3539_v25 = vsel %vm388_vm7, %v3537_v3, %v3538_v11  ;;  %v3527_v24 = vsel %vm388_vm7, %v3525_v9, %v3526_v33 }
 0x87d   : >> { %v3540_v35 = vsel %vm3421_vm10, %v3534_v43, %v3539_v25  ;;  %v3528_v54 = vsel %vm3408_vm11, %v3522_v47, %v3527_v24  ;;  %v3549_v57 = vpop.permute.xlu1 %3548  ;;  %v3547_v2 = vpop.permute.xlu0 %3546 }
 0x87e   : >> { %3543 = vst [vmem:[#allocation2 + $0xf0] sm:$0xff] %v3540_v35  ;;  %3531 = vst [vmem:[#allocation2 + $0xe4] sm:$0xff] %v3528_v54  ;;  %v3551_v32 = vrot.slane %v3549_v57, 4  ;;  %v3550_v13 = vrot.slane %v3547_v2, 4 }
 0x87f   : >> { %3557 = vst.msk [vmem:[#allocation2 + $0x104] sm:$0xf] %vm395_vm9, %v3549_v57 }
 0x880   : >> { %v3552_v34 = vsel %vm388_vm7, %v3550_v13, %v3551_v32 }
 0x881   : >> { %v3553_v7 = vsel %vm3435_vm13, %v3547_v2, %v3552_v34  ;;  %v3561_v12 = vpop.permute.xlu1 %3560  ;;  %v3559_v22 = vpop.permute.xlu0 %3558 }
 0x882   : >> { %3556 = vst [vmem:[#allocation2 + $0xfc] sm:$0xff] %v3553_v7  ;;  %v3563_v49 = vrot.slane %v3561_v12, 4  ;;  %v3562_v14 = vrot.slane %v3559_v22, 4 }
 0x884   : >> { %v3566_v5 = vsel %vm443_vm12, %v3561_v12, %v3563_v49  ;;  %v3564_v19 = vsel %vm388_vm7, %v3562_v14, %v3563_v49 }
 0x885   : >> { %3570 = vst.msk [vmem:[#allocation2 + $0x110] sm:$0xf] %vm395_vm9, %v3566_v5  ;;  %v3565_v20 = vsel %vm443_vm12, %v3559_v22, %v3564_v19  ;;  %v3574_v8 = vpop.permute.xlu1 %3573  ;;  %v3572_v58 = vpop.permute.xlu0 %3571 }
 0x886   : >> { %3569 = vst [vmem:[#allocation2 + $0x108] sm:$0xff] %v3565_v20  ;;  %v3576_v59 = vrot.slane %v3574_v8, 4  ;;  %v3575_v1 = vrot.slane %v3572_v58, 4 }
 0x888   : >> { %v3579_v16 = vsel %vm3461_vm15, %v3574_v8, %v3576_v59  ;;  %v3577_v28 = vsel %vm388_vm7, %v3575_v1, %v3576_v59 }
 0x889   : >> { %3583 = vst.msk [vmem:[#allocation2 + $0x11c] sm:$0xf] %vm395_vm9, %v3579_v16  ;;  %v3578_v29 = vsel %vm3461_vm15, %v3572_v58, %v3577_v28  ;;  %v3588_v23 = vpop.permute.xlu1 %3587  ;;  %v3586_v36 = vpop.permute.xlu0 %3585 }
 0x88a   : >> { %3582 = vst [vmem:[#allocation2 + $0x114] sm:$0xff] %v3578_v29  ;;  %v3590_v40 = vrot.slane %v3588_v23, 4  ;;  %v3589_v4 = vrot.slane %v3586_v36, 4 }
 0x88c   : >> { %v3593_v46 = vsel %vm3476_vm0, %v3588_v23, %v3590_v40  ;;  %v3591_v51 = vsel %vm388_vm7, %v3589_v4, %v3590_v40 }
 0x88d   : >> { %3597 = vst.msk [vmem:[#allocation2 + $0x128] sm:$0xf] %vm395_vm9, %v3593_v46  ;;  %v3592_v45 = vsel %vm3476_vm0, %v3586_v36, %v3591_v51  ;;  %v3601_v21 = vpop.permute.xlu1 %3600  ;;  %v3599_v60 = vpop.permute.xlu0 %3598 }
 0x88e   : >> { %3596 = vst [vmem:[#allocation2 + $0x120] sm:$0xff] %v3592_v45  ;;  %v3603_v10 = vrot.slane %v3601_v21, 4  ;;  %v3602_v17 = vrot.slane %v3599_v60, 4 }
 0x890   : >> { %v3606_v26 = vsel %vm3490_vm1, %v3601_v21, %v3603_v10  ;;  %v3604_v27 = vsel %vm388_vm7, %v3602_v17, %v3603_v10 }
 0x891   : >> { %3610 = vst.msk [vmem:[#allocation2 + $0x134] sm:$0xf] %vm395_vm9, %v3606_v26  ;;  %v3605_v0 = vsel %vm3490_vm1, %v3599_v60, %v3604_v27 }
 0x892   : >> { %3609 = vst [vmem:[#allocation2 + $0x12c] sm:$0xff] %v3605_v0 }
 0x893 PF: >> { %3620 = sbr.rel (!%p6014_p13) target bundleno = 2205 (0x89d), region = 95  ;;  %v4970_v42 = vmov (%p6014_p13), 0  }
 0x894   : >> { %3621 = vst [vmem:[#allocation2 + $0xd8] sm:$0xff] (%p6014_p13), %v4970_v42  ;;  %3622 = vst.msk [vmem:[#allocation2 + $0xe0] sm:$0xf] (%p6014_p13), %vm395_vm9, %v4970_v42 }
 0x895   : >> { %3623 = vst [vmem:[#allocation2 + $0xe4] sm:$0xff] (%p6014_p13), %v4970_v42  ;;  %3624 = vst.msk [vmem:[#allocation2 + $0xec] sm:$0xf] (%p6014_p13), %vm395_vm9, %v4970_v42 }
 0x896   : >> { %3625 = vst [vmem:[#allocation2 + $0xf0] sm:$0xff] (%p6014_p13), %v4970_v42  ;;  %3626 = vst.msk [vmem:[#allocation2 + $0xf8] sm:$0xf] (%p6014_p13), %vm395_vm9, %v4970_v42 }
 0x897   : >> { %3627 = vst [vmem:[#allocation2 + $0xfc] sm:$0xff] (%p6014_p13), %v4970_v42  ;;  %3628 = vst.msk [vmem:[#allocation2 + $0x104] sm:$0xf] (%p6014_p13), %vm395_vm9, %v4970_v42 }
 0x898   : >> { %3629 = vst [vmem:[#allocation2 + $0x108] sm:$0xff] %v4970_v42  ;;  %3630 = vst.msk [vmem:[#allocation2 + $0x110] sm:$0xf] %vm395_vm9, %v4970_v42 }
 0x899   : >> { %3631 = vst [vmem:[#allocation2 + $0x114] sm:$0xff] %v4970_v42  ;;  %3632 = vst.msk [vmem:[#allocation2 + $0x11c] sm:$0xf] %vm395_vm9, %v4970_v42 }
 0x89a   : >> { %3633 = vst [vmem:[#allocation2 + $0x120] sm:$0xff] %v4970_v42  ;;  %3634 = vst.msk [vmem:[#allocation2 + $0x128] sm:$0xf] %vm395_vm9, %v4970_v42 }
 0x89b   : >> { %3635 = vst [vmem:[#allocation2 + $0x12c] sm:$0xff] %v4970_v42  ;;  %3636 = vst.msk [vmem:[#allocation2 + $0x134] sm:$0xf] %vm395_vm9, %v4970_v42 }
 0x89c   : >> { %3637 = vst [vmem:[#allocation2 + $0x138] sm:$0xff] %v4970_v42  ;;  %3638 = vst.msk [vmem:[#allocation2 + $0x140] sm:$0xf] %vm395_vm9, %v4970_v42 }
 0x89d PF: >> { %v4590_v50 = vld [vmem:[%s5054_s25 + $0x48] sm:$0xff]  ;;  %3991 = vmatprep.subr.bf16.mxu0 %v4909_v6  ;;  %v4591_v31 = vld [vmem:[%s5054_s25 + $0x50] sm:$0xff]  ;;  %s4971_s17 = smov 80   ;;  %v4842_v11 = vld [vmem:[#allocation2 + $0x98] ss:$12 sps:$4 sm:$0xff]   ;;  %s4972_s25 = smov 120  }
 0x89e   : >> { %4060 = vrot.lane.b32.xlu0 %v4590_v50, %s4911_s10  ;;  %v4830_v30 = vld [vmem:[%s6158_s2 + $0x10] ss:$24 sps:$4 sm:$0xff]   ;;  %v4832_v18 = vld [vmem:[%s6158_s2 + $0xc] ss:$24 sps:$4 sm:$0xff]   ;;  %v4839_v3 = vld [vmem:[#allocation2 + $0x94] ss:$12 sps:$4 sm:$0xff]  }
 0x89f   : >> { %3712 = vrot.lane.b32.xlu1 %v4830_v30, %s4971_s17  ;;  %v4833_v41 = vld [vmem:[%s6158_s2 + $0x14] ss:$24 sps:$4 sm:$0xff]   ;;  %v4838_v53 = vld [vmem:[#allocation2 + $0xb0] ss:$12 sps:$4 sm:$0xff]   ;;  %v4845_v25 = vld [vmem:[#allocation2 + $0x78] ss:$12 sps:$4 sm:$0xff]  }
 0x8a0   : >> { %v4835_v43 = vld [vmem:[#allocation2 + $0xac] ss:$12 sps:$4 sm:$0xff]   ;;  %v4837_v48 = vld [vmem:[#allocation2 + $0xa8] ss:$12 sps:$4 sm:$0xff]   ;;  %v4841_v9 = vld [vmem:[#allocation2 + $0x90] ss:$12 sps:$4 sm:$0xff]   ;;  %3992 = vmatpush1.bf16.msra.mxu0 %v4838_v53 }
 0x8a1   : >> { %v4834_v47 = vld [vmem:[%s6158_s2 + $0x14] ss:$24 sps:$4 sm:$0xff]   ;;  %3948 = vmatprep.subr.bf16.mxu1 %v4835_v43  ;;  %v4843_v33 = vld [vmem:[#allocation2 + $0x7c] ss:$12 sps:$4 sm:$0xff]   ;;  %3993 = vmatprep.subr.bf16.mxu0 %v4909_v6  ;;  %v4847_v35 = vld [vmem:[#allocation2 + $0x64] ss:$12 sps:$4 sm:$0xff]  }
 0x8a2   : >> { %4062 = vrot.lane.b32.xlu0 %v4591_v31, %s4911_s10  ;;  %3949 = vmatpush1.bf16.msra.mxu1 %v4837_v48  ;;  %v4846_v24 = vld [vmem:[#allocation2 + $0x80] ss:$12 sps:$4 sm:$0xff]   ;;  %v4850_v57 = vld [vmem:[#allocation2 + $0x68] ss:$12 sps:$4 sm:$0xff]   ;;  %v4854_v13 = vld [vmem:[#allocation2 + $0x50] ss:$12 sps:$4 sm:$0xff]  }
 0x8a3   : >> { %3714 = vrot.lane.b32.xlu1 %v4833_v41, %s4971_s17  ;;  %3950 = vmatprep.subr.bf16.mxu1 %v4839_v3  ;;  %v4849_v54 = vld [vmem:[#allocation2 + $0x60] ss:$12 sps:$4 sm:$0xff]   ;;  %v4853_v32 = vld [vmem:[#allocation2 + $0x48] ss:$12 sps:$4 sm:$0xff]   ;;  %v4857_v7 = vld [vmem:[#allocation2 + $0x30] ss:$12 sps:$4 sm:$0xff]  }
 0x8a4   : >> { %3994 = vmatpush1.bf16.msra.mxu0 %v4842_v11  ;;  %v4851_v2 = vld [vmem:[#allocation2 + $0x4c] ss:$12 sps:$4 sm:$0xff]   ;;  %v4855_v34 = vld [vmem:[#allocation2 + $0x34] ss:$12 sps:$4 sm:$0xff]   ;;  %v4859_v22 = vld [vmem:[#allocation2 + $0x1c] ss:$12 sps:$4 sm:$0xff]  }
 0x8a5   : >> { %3995 = vmatprep.subr.bf16.mxu0 %v4909_v6  ;;  %v4858_v12 = vld [vmem:[#allocation2 + $0x38] ss:$12 sps:$4 sm:$0xff]   ;;  %v4862_v14 = vld [vmem:[#allocation2 + $0x20] ss:$12 sps:$4 sm:$0xff]   ;;  %v4866_v8 = vld [vmem:[#allocation2 + $0x8] ss:$12 sps:$4 sm:$0xff]  }
 0x8a6   : >> { %3710 = vrot.lane.b32.xlu0 %v4832_v18, %s4971_s17  ;;  %3951 = vmatpush1.bf16.msra.mxu1 %v4841_v9  ;;  %v4861_v49 = vld [vmem:[#allocation2 + $0x18] ss:$12 sps:$4 sm:$0xff]   ;;  %v4865_v20 = vld [vmem:[#allocation2] ss:$12 sps:$4 sm:$0xff]   ;;  %v4873_v36 = vld [vmem:[#allocation2 + $0x128] ss:$12 sps:$4 sm:$0xff]  }
 0x8a7   : >> { %4082 = vrot.lane.b32.xlu1 %v4834_v47, %s4972_s25  ;;  %3952 = vmatprep.subr.bf16.mxu1 %v4843_v33  ;;  %v4863_v5 = vld [vmem:[#allocation2 + $0x4] ss:$12 sps:$4 sm:$0xff]   ;;  %v3695_v19 = vld [vmem:[#allocation2 + $0x138] sm:$0xff]  ;;  %v4869_v1 = vld [vmem:[#allocation2 + $0x140] ss:$0 sps:$4 sm:$0xff]   ;;  %vm3716_vm2 = vcmask 654336  }
 0x8a8   : >> { %3996 = vmatpush1.bf16.msra.mxu0 %v4846_v24  ;;  %v4585_v58 = vcombine.high %v3695_v19, %v3695_v19  ;;  %v4584_v59 = vcombine.low %v3695_v19, %v3695_v19  ;;  %v4870_v28 = vld [vmem:[#allocation2 + $0x124] ss:$12 sps:$4 sm:$0xff]   ;;  %v3946_v29 = vsel %vm388_vm7, %v4869_v1, 0  ;;  %v4872_v23 = vld [vmem:[#allocation2 + $0x120] ss:$12 sps:$4 sm:$0xff]   ;;  %s4604_s10 = smul.u32 48, %s4905_s23 }
 0x8a9   : >> { %3997 = vmatprep.subr.bf16.mxu0 %v4909_v6  ;;  %v4874_v40 = vld [vmem:[#allocation2 + $0x10c] ss:$12 sps:$4 sm:$0xff]   ;;  %v4876_v4 = vld [vmem:[#allocation2 + $0x108] ss:$12 sps:$4 sm:$0xff]   ;;  %v4877_v46 = vld [vmem:[#allocation2 + $0x110] ss:$12 sps:$4 sm:$0xff]  }
 0x8aa   : >> { %3953 = vmatpush1.bf16.msra.mxu1 %v4845_v25  ;;  %v3940_v16 = vsel %vm388_vm7, %v4584_v59, 0  ;;  %v4878_v51 = vld [vmem:[#allocation2 + $0xf4] ss:$12 sps:$4 sm:$0xff]   ;;  %v4880_v45 = vld [vmem:[#allocation2 + $0xf0] ss:$12 sps:$4 sm:$0xff]   ;;  %s4221_s29 = scalar_lea.vmem %s5044_s22, %s4604_s10  ;;  %s373_s23 = sadd.s32 1, %s4905_s23  }
 0x8ab   : >> { %3954 = vmatprep.subr.bf16.mxu1 %v4847_v35  ;;  %v4881_v21 = vld [vmem:[#allocation2 + $0xf8] ss:$12 sps:$4 sm:$0xff]   ;;  %v4882_v60 = vld [vmem:[#allocation2 + $0xdc] ss:$12 sps:$4 sm:$0xff]   ;;  %v4885_v17 = vld [vmem:[#allocation2 + $0xe0] ss:$12 sps:$4 sm:$0xff]  }
 0x8ac   : >> { %3998 = vmatpush1.bf16.msra.mxu0 %v4850_v57  ;;  %v4884_v10 = vld [vmem:[#allocation2 + $0xd8] ss:$12 sps:$4 sm:$0xff]   ;;  %v4888_v27 = vld [vmem:[#allocation2 + $0xc0] ss:$12 sps:$4 sm:$0xff]   ;;  %v4889_v0 = vld [vmem:[#allocation2 + $0xc8] ss:$12 sps:$4 sm:$0xff]  }
 0x8ad   : >> { %3999 = vmatprep.subr.bf16.mxu0 %v4909_v6  ;;  %v4886_v26 = vld [vmem:[#allocation2 + $0xc4] ss:$12 sps:$4 sm:$0xff]   ;;  %v4034_v57 = vsub.s32 2, %v5768_v15  ;;  %p370_p0 = scmp.ge.s32.totalorder %s373_s23, 11  }
 0x8ae   : >> { %3955 = vmatpush1.bf16.msra.mxu1 %v4849_v54 }
 0x8af   : >> { %3956 = vmatprep.subr.bf16.mxu1 %v4851_v2 }
 0x8b0   : >> { %4000 = vmatpush1.bf16.msra.mxu0 %v4854_v13  ;;  %v4035_v13 = vrot.slane %v5674_v56, %v4034_v57 }
 0x8b1   : >> { %4001 = vmatprep.subr.bf16.mxu0 %v4909_v6 }
 0x8b2   : >> { %3957 = vmatpush1.bf16.msra.mxu1 %v4853_v32 }
 0x8b3   : >> { %3958 = vmatprep.subr.bf16.mxu1 %v4855_v34 }
 0x8b4   : >> { %4002 = vmatpush1.bf16.msra.mxu0 %v4858_v12  ;;  %v4043_v12 = vrot.slane %v5661_v39, %v4034_v57 }
 0x8b5   : >> { %4003 = vmatprep.subr.bf16.mxu0 %v4909_v6 }
 0x8b6   : >> { %3959 = vmatpush1.bf16.msra.mxu1 %v4857_v7 }
 0x8b7   : >> { %3960 = vmatprep.subr.bf16.mxu1 %v4859_v22 }
 0x8b8   : >> { %4004 = vmatpush1.bf16.msra.mxu0 %v4862_v14 }
 0x8b9   : >> { %4005 = vmatprep.subr.bf16.mxu0 %v4909_v6 }
 0x8ba   : >> { %3961 = vmatpush1.bf16.msra.mxu1 %v4861_v49 }
 0x8bb   : >> { %3962 = vmatprep.subr.bf16.mxu1 %v4863_v5 }
 0x8bc   : >> { %4006 = vmatpush1.bf16.msra.mxu0 %v4866_v8 }
 0x8bd   : >> { %4011 = vmatprep.subr.bf16.mxu0 %v4909_v6 }
 0x8be   : >> { %3963 = vmatpush1.bf16.msra.mxu1 %v4865_v20 }
 0x8bf   : >> { %4587 = vmatprep.subr.msk.bf16.mxu1 %vm388_vm7, %v4585_v58 }
 0x8c0   : >> { %4012 = vmatpush2.bf16.msra.mxu0 %v3946_v29 }
 0x8c1   : >> { %4013 = vmatprep.subr.bf16.mxu0 %v4909_v6 }
 0x8c2   : >> { %3969 = vmatpush2.bf16.msra.mxu1 %v3940_v16 }
 0x8c3   : >> { %3970 = vmatprep.subr.bf16.mxu1 %v4870_v28 }
 0x8c4   : >> { %4014 = vmatpush2.bf16.msra.mxu0 %v4873_v36 }
 0x8c5   : >> { %4015 = vmatprep.subr.bf16.mxu0 %v4909_v6 }
 0x8c6   : >> { %3971 = vmatpush2.bf16.msra.mxu1 %v4872_v23 }
 0x8c7   : >> { %3972 = vmatprep.subr.bf16.mxu1 %v4874_v40 }
 0x8c8   : >> { %4016 = vmatpush2.bf16.msra.mxu0 %v4877_v46 }
 0x8c9   : >> { %4017 = vmatprep.subr.bf16.mxu0 %v4909_v6 }
 0x8ca   : >> { %3973 = vmatpush2.bf16.msra.mxu1 %v4876_v4 }
 0x8cb   : >> { %3974 = vmatprep.subr.bf16.mxu1 %v4878_v51 }
 0x8cc   : >> { %4018 = vmatpush2.bf16.msra.mxu0 %v4881_v21 }
 0x8cd   : >> { %4019 = vmatprep.subr.bf16.mxu0 %v4909_v6 }
 0x8ce   : >> { %3975 = vmatpush2.bf16.msra.mxu1 %v4880_v45 }
 0x8cf   : >> { %3976 = vmatprep.subr.bf16.mxu1 %v4882_v60 }
 0x8d0   : >> { %4020 = vmatpush2.bf16.msra.mxu0 %v4885_v17 }
 0x8d1   : >> { %4021 = vmatprep.subr.bf16.mxu0 %v4909_v6 }
 0x8d2   : >> { %3977 = vmatpush2.bf16.msra.mxu1 %v4884_v10 }
 0x8d3   : >> { %3978 = vmatprep.subr.bf16.mxu1 %v4886_v26 }
 0x8d4   : >> { %4022 = vmatpush2.bf16.msra.mxu0 %v4889_v0 }
 0x8d5   : >> { %4630 = vmatprep.subr.bf16.mxu0 %v4920_v38 }
 0x8d6   : >> { %3979 = vmatpush2.bf16.msra.mxu1 %v4888_v27 }
 0x910   : >> { %v4061_v42 = vpop.permute.xlu0 %4060 }
 0x911   : >> { %v3713_v50 = vpop.permute.xlu1 %3712  ;;  %v4064_v31 = vrot.slane %v4061_v42, 4 }
 0x914   : >> { %v4063_v30 = vpop.permute.xlu0 %4062 }
 0x915   : >> { %v4065_v18 = vrot.slane %v4063_v30, 4  ;;  %v3715_v41 = vpop.permute.xlu1 %3714 }
 0x916   : >> { %v3718_v48 = vsel %vm3716_vm2, %v3713_v50, %v3715_v41 }
 0x917   : >> { %v4066_v43 = vsel %vm388_vm7, %v4064_v31, %v4065_v18  ;;  %v4068_v47 = vsel %vm443_vm12, %v4063_v30, %v4065_v18  ;;  %4588 = vmatprep.mubr.msk.bf16.mxu1 %vm2313_vm14, %v3718_v48  ;;  %4589 = vmatprep.mubr.msk.bf16.mxu0 %vm2313_vm14, %v3718_v48 }
 0x918   : >> { %v4067_v53 = vsel %vm443_vm12, %v4061_v42, %v4066_v43  ;;  %4072 = vst.msk [vmem:[#allocation2 + $0x8] sm:$0xf] %vm395_vm9, %v4068_v47  ;;  %v3711_v3 = vpop.permute.xlu0 %3710  ;;  %vm4092_vm9 = vcmask 64512  }
 0x919   : >> { %4071 = vst [vmem:[#allocation2] sm:$0xff] %v4067_v53  ;;  %v3717_v9 = vsel %vm3716_vm2, %v3711_v3, %v3713_v50  ;;  %v4594_v11 = vcombine.high %v4067_v53, %v4067_v53  ;;  %v4593_v33 = vcombine.low %v4067_v53, %v4067_v53  ;;  %v4083_v35 = vpop.permute.xlu1 %4082 }
 0x91a   : >> { %3981 = vmatmul.mubr.bf16.vlgmr.msra.gmra.mxu1 %v3717_v9  ;;  %4024 = vmatmul.mubr.bf16.vlgmr.msra.gmra.mxu0 %v3717_v9 }
 0x91b   : >> { %4596 = vmatprep.subr.msk.bf16.mxu1 %vm388_vm7, %v4594_v11  ;;  %v4097_v25 = vsel %vm388_vm7, %v4593_v33, 0  ;;  %4632 = vmatprep.mubr.msk.bf16.mxu0 %vm4921_vm4, %v4920_v38  ;;  %v4191_v38 = vsub.s32 3, %v5768_v15 }
 0x91c   : >> { %4120 = vmatpush1.bf16.msra.mxu1 %v4097_v25  ;;  %4137 = vmatprep.mubr.bf16.mxu1 %v4909_v6  ;;  %v4039_v6 = vrot.slane %v5666_v52, %v4034_v57 }
 0x91d   : >> { %v4192_v5 = vrot.slane %v5674_v56, %v4191_v38  ;;  %v4196_v58 = vrot.slane %v5666_v52, %v4191_v38  ;;  %v4200_v15 = vrot.slane %v5661_v39, %v4191_v38 }
 0x91f   : >> { %v4890_v24 = vld [vmem:[#allocation2 + $0x8] ss:$0 sps:$4 sm:$0xff]  }
 0x920   : >> { %v4103_v54 = vsel %vm388_vm7, %v4890_v24, 0 }
 0x921   : >> { %4631 = vmatpush3.bf16.msra.mxu0 %v4103_v54 }
 0x922   : >> { %4597 = vmatmul.mubr.msk.bf16.vlgmr.msra.gmra.mxu1 %vm4092_vm9, %v4083_v35 }
 0x924   : >> { %4633 = vmatmul.mubr.msk.bf16.vlgmr.msra.gmra.mxu0 %vm4092_vm9, %v4083_v35 }
 0x9da   : >> { %v3982_v2 = vpop.f32.mrf.mxu1  ;;  %v4025_v32 = vpop.f32.mrf.mxu0 }
 0x9db   : >> { %v4044_v14 = vmul.f32 %v4035_v13, %v3982_v2  ;;  %v4046_v59 = vmul.f32 %v4043_v12, %v4025_v32 }
 0x9dc   : >> { %v3984_v34 = vpop.f32.mrf.mxu1  ;;  %v4027_v7 = vpop.f32.mrf.mxu0 }
 0x9dd   : >> { %v4045_v8 = vmul.f32 %v4039_v6, %v3984_v34  ;;  %v4050_v16 = vadd.f32 %v4044_v14, %v5949_v44  ;;  %v4052_v51 = vadd.f32 %v4046_v59, %v5952_v37 }
 0x9de   : >> { %v3986_v22 = vpop.f32.mrf.mxu1  ;;  %v4028_v49 = vpop.f32.mrf.mxu0 }
 0x9df   : >> { %v4047_v28 = vmul.f32 %v4035_v13, %v3986_v22  ;;  %v4051_v36 = vadd.f32 %v4045_v8, %v5955_v55  ;;  %v4049_v52 = vmul.f32 %v4043_v12, %v4028_v49 }
 0x9e0   : >> { %v3988_v19 = vpop.f32.mrf.mxu1  ;;  %v4030_v20 = vpop.f32.mrf.mxu0 }
 0x9e1   : >> { %v4048_v40 = vmul.f32 %v4039_v6, %v3988_v19  ;;  %v4053_v39 = vadd.f32 %v4047_v28, %v5958_v61  ;;  %v4055_v37 = vadd.f32 %v4049_v52, %v5961_v63 }
 0x9e2   : >> { %v4139_v1 = vpop.f32.mrf.mxu1 }
 0x9e3   : >> { %v4201_v29 = vmul.f32 %v4192_v5, %v4139_v1  ;;  %v4054_v55 = vadd.f32 %v4048_v40, %v5964_v62 }
 0x9e4   : >> { %v4141_v23 = vpop.f32.mrf.mxu1  ;;  %v4182_v56 = vpop.f32.mrf.mxu0 }
 0x9e5   : >> { %v4207_v4 = vadd.f32 %v4201_v29, %v4050_v16  ;;  %v4202_v46 = vmul.f32 %v4196_v58, %v4141_v23  ;;  %v4203_v45 = vmul.f32 %v4200_v15, %v4182_v56 }
 0x9e6   : >> { %v4143_v21 = vpop.f32.mrf.mxu1  ;;  %v4634_v10 = vpop.f32.mrf.mxu0 }
 0x9e7   : >> { %v4213_v60 = vmax.f32 %v4207_v4, 0.0  ;;  %v4208_v44 = vadd.f32 %v4202_v46, %v4051_v36  ;;  %v4204_v17 = vmul.f32 %v4192_v5, %v4143_v21  ;;  %v4209_v26 = vadd.f32 %v4203_v45, %v4052_v51 }
 0x9e8   : >> { %v4145_v27 = vpop.f32.mrf.mxu1  ;;  %v4185_v42 = vpop.f32.mrf.mxu0 }
 0x9e9   : >> { %4222 = vst [vmem:[%s4221_s29] sm:$0xff] %v4213_v60  ;;  %v4214_v0 = vmax.f32 %v4208_v44, 0.0  ;;  %v4210_v50 = vadd.f32 %v4204_v17, %v4053_v39  ;;  %v4205_v30 = vmul.f32 %v4196_v58, %v4145_v27  ;;  %v4215_v31 = vmax.f32 %v4209_v26, 0.0 }
 0x9ea   : >> { %v4206_v18 = vmul.f32 %v4200_v15, %v4185_v42  ;;  %v4635_v61 = vpop.f32.mrf.mxu0 }
 0x9eb   : >> { %4223 = vst [vmem:[%s4221_s29 + $0x8] sm:$0xff] %v4214_v0  ;;  %v4216_v41 = vmax.f32 %v4210_v50, 0.0  ;;  %v4211_v43 = vadd.f32 %v4205_v30, %v4054_v55  ;;  %4224 = vst [vmem:[%s4221_s29 + $0x10] sm:$0xff] %v4215_v31 }
 0x9ec   : >> { %v4212_v47 = vadd.f32 %v4206_v18, %v4055_v37  ;;  %372 = sbr.rel (!%p370_p0) target bundleno = 18 (0x12), region = 139 }
 0x9ed   : >> { %4225 = vst [vmem:[%s4221_s29 + $0x18] sm:$0xff] %v4216_v41  ;;  %v4217_v48 = vmax.f32 %v4211_v43, 0.0 }
 0x9ee   : >> { %v4218_v53 = vmax.f32 %v4212_v47, 0.0 }
 0x9ef   : >> { %4226 = vst [vmem:[%s4221_s29 + $0x20] sm:$0xff] %v4217_v48 }
 0x9f0   : >> { %4227 = vst [vmem:[%s4221_s29 + $0x28] sm:$0xff] %v4218_v53 }
 0x9f1 PF: > { %s19_s30 = sadd.s32 1, %s4901_s30  }
 0x9f2   : > { %p16_p1 = scmp.ge.s32.totalorder %s19_s30, 4  }
 0x9f4   :  { %18 = sbr.rel (!%p16_p1) target bundleno = 1 (0x1), region = 150 }

</bundles_post_ra>
